<compile_context>
chip_gen: v7x
topology: tpu7x:2x2x1
jax: 0.10.0
libtpu: 0.0.40
codegen_flags: <defaults>
</compile_context>

<pallas_src>
import functools
import math

import jax
import jax.numpy as jnp
from jax.experimental import pallas as pl
from jax.experimental.pallas import tpu as pltpu


def _lstm_kernel(x_ref,                      # (chunk*B, I)           bf16
                 wi_ref, bi_ref,             # (I, 3Hpad) bf16, (1, 3Hpad) f32
                 wh_ref,                     # (Hpad, 3Hpad)          bf16
                 wout_ref, bout_ref,         # (Hpad, Cpad) bf16, (1, Cpad) f32
                 out_ref,                    # (B, Cpad)              f32
                 xproj_scr,                  # (chunk*B, 3Hpad)       f32 scratch
                 h_scr, c_scr,               # (B, Hpad)              f32 scratch
                 *, batch, chunk, hpad, seq_len, needs_mask):
    # Initialize the recurrent state on the first time-chunk.
    @pl.when(pl.program_id(0) == 0)
    def _init():
        h_scr[...] = jnp.zeros_like(h_scr)
        c_scr[...] = jnp.zeros_like(c_scr)

    # Recurrent weights loaded once, outside the unrolled loop.
    w_h = wh_ref[...]

    # Input-path projection for the whole chunk in ONE matmul (M = chunk*B),
    # off the serial h-dependent critical path; result parked in VMEM scratch.
    xproj_scr[...] = (
        jnp.dot(x_ref[...], wi_ref[...], preferred_element_type=jnp.float32)
        + bi_ref[...]
    )

    base_step = pl.program_id(0) * chunk
    h = h_scr[...]
    c = c_scr[...]
    # Statically unrolled recurrence: one fused (Hpad, 3Hpad) matmul per step.
    for t in range(chunk):
        gates = xproj_scr[t * batch:(t + 1) * batch, :] + jnp.dot(
            h.astype(jnp.bfloat16), w_h, preferred_element_type=jnp.float32)
        # sigmoid(x) == 0.5*(tanh(x/2)+1): one EUP op instead of exp+recip.
        f_t = 0.5 * (jnp.tanh(0.5 * gates[:, 0:hpad]) + 1.0)
        g_t = jnp.tanh(gates[:, hpad:2 * hpad])
        o_t = 0.5 * (jnp.tanh(0.5 * gates[:, 2 * hpad:3 * hpad]) + 1.0)
        c_new = f_t * c + g_t                 # no input gate: c = f*c + g
        h_new = o_t * jnp.tanh(c_new)
        if needs_mask:
            valid = (base_step + t) < seq_len
            c = jnp.where(valid, c_new, c)
            h = jnp.where(valid, h_new, h)
        else:
            c, h = c_new, h_new
    h_scr[...] = h
    c_scr[...] = c

    # Final lane-dense Linear projection, only on the last time-chunk (safe
    # because the output block index is constant -> block stays resident).
    @pl.when(pl.program_id(0) == pl.num_programs(0) - 1)
    def _final():
        out_ref[...] = (
            jnp.dot(h.astype(jnp.bfloat16), wout_ref[...],
                    preferred_element_type=jnp.float32)
            + bout_ref[...]
        ).astype(out_ref.dtype)


def _const_spec(shape, single_buffer):
    """Constant-index (resident) block; optionally single-buffered."""
    index_map = lambda s: (0,) * len(shape)
    if single_buffer and hasattr(pl, "Buffered"):
        return pl.BlockSpec(shape, index_map, pipeline_mode=pl.Buffered(1))
    return pl.BlockSpec(shape, index_map)


def no_input_gate_lstm(x, params, *, time_chunk=None):
    """x: (batch, seq, input_size) float32. Returns (batch, categories) f32."""
    batch, seq_len, input_size = x.shape
    hidden = params["W_hf"].shape[0]
    categories = params["W_out"].shape[1]

    hpad = pl.cdiv(hidden, 128) * 128       # lane-aligned per-gate width
    cpad = pl.cdiv(categories, 128) * 128   # lane-dense output width

    # Fuse the three gates at 128-aligned column offsets; padded rows/cols are
    # zero so the padded h/c columns stay exactly zero through the recurrence.
    w_i = jnp.zeros((input_size, 3 * hpad), jnp.float32)
    w_h = jnp.zeros((hpad, 3 * hpad), jnp.float32)
    b_i = jnp.zeros((1, 3 * hpad), jnp.float32)
    for gi, g in enumerate("fgo"):
        w_i = w_i.at[:, gi * hpad:gi * hpad + hidden].set(params[f"W_i{g}"])
        w_h = w_h.at[:hidden, gi * hpad:gi * hpad + hidden].set(params[f"W_h{g}"])
        b_i = b_i.at[0, gi * hpad:gi * hpad + hidden].set(params[f"b_i{g}"])
    w_out = jnp.zeros((hpad, cpad), jnp.float32).at[:hidden, :categories].set(
        params["W_out"])
    b_out = jnp.zeros((1, cpad), jnp.float32).at[0, :categories].set(
        params["b_out"])

    # bf16 MXU operands; accumulation stays f32 inside the kernel.
    w_i, w_h, w_out = (a.astype(jnp.bfloat16) for a in (w_i, w_h, w_out))

    if time_chunk is None:
        time_chunk = min(seq_len, 32)
    n_chunks = pl.cdiv(seq_len, time_chunk)
    padded_len = n_chunks * time_chunk
    needs_mask = padded_len != seq_len

    # Time-major, zero-pad time to a chunk multiple, fold batch into the rows
    # so the streamed block is a sublane-dense 2-D (chunk*B, I) tile.
    x_tm = jnp.transpose(x, (1, 0, 2))       # (S, B, I)
    if needs_mask:
        pad = jnp.zeros((padded_len - seq_len, batch, input_size), x.dtype)
        x_tm = jnp.concatenate([x_tm, pad], axis=0)
    x_fold = x_tm.reshape(n_chunks, time_chunk * batch,
                          input_size).astype(jnp.bfloat16)

    # VMEM budget from the actual footprint (x double-buffered, weights single).
    rows = time_chunk * batch
    vmem_need = (
        2 * rows * max(input_size, 128) * 2            # x (bf16, 2 buffers)
        + (w_i.size + w_h.size + w_out.size) * 2       # bf16 weights
        + (b_i.size + b_out.size) * 4                  # f32 biases
        + (rows * 3 * hpad + 2 * batch * hpad) * 4     # scratch: xproj, h, c
        + 2 * batch * cpad * 4                         # output block
    )
    vmem_limit = int(min(max(2 * vmem_need, 16 << 20), 100 << 20))

    kernel = functools.partial(
        _lstm_kernel, batch=batch, chunk=time_chunk, hpad=hpad,
        seq_len=seq_len, needs_mask=needs_mask)

    def _build(single_buffer):
        grid_spec = pltpu.PrefetchScalarGridSpec(
            num_scalar_prefetch=0,
            grid=(n_chunks,),
            in_specs=[
                # x: streamed chunk-by-chunk (default double buffer).
                pl.BlockSpec((None, time_chunk * batch, input_size),
                             lambda s: (s, 0, 0)),
                _const_spec((input_size, 3 * hpad), single_buffer),
                _const_spec((1, 3 * hpad), single_buffer),
                _const_spec((hpad, 3 * hpad), single_buffer),
                _const_spec((hpad, cpad), single_buffer),
                _const_spec((1, cpad), single_buffer),
            ],
            out_specs=pl.BlockSpec((batch, cpad), lambda s: (0, 0)),
            scratch_shapes=[
                pltpu.VMEM((time_chunk * batch, 3 * hpad), jnp.float32),  # xproj
                pltpu.VMEM((batch, hpad), jnp.float32),                   # h_t
                pltpu.VMEM((batch, hpad), jnp.float32),                   # c_t
            ],
        )
        return pl.pallas_call(
            kernel,
            out_shape=jax.ShapeDtypeStruct((batch, cpad), jnp.float32),
            grid_spec=grid_spec,
            compiler_params=pltpu.CompilerParams(
                dimension_semantics=("arbitrary",),   # time recurrence is serial
                vmem_limit_bytes=vmem_limit,
            ),
        )

    # TODO(synk): for large batch, add a leading "parallel" batch-tile grid
    # axis (with per-tile h/c scratch) to use both v7x TensorCores.
    try:
        out_padded = _build(True)(x_fold, w_i, b_i, w_h, w_out, b_out)
    except Exception:
        # pl.Buffered(1) not supported on this JAX -> default double buffering.
        out_padded = _build(False)(x_fold, w_i, b_i, w_h, w_out, b_out)

    return out_padded[:, :categories]


def init_params(key, input_size, hidden_size, categories):
    """Deterministic init mirroring the PyTorch module's init_weights."""
    stdv = 1.0 / math.sqrt(hidden_size)
    keys = jax.random.split(key, 11)

    def u(k, shape):
        return jax.random.uniform(k, shape, jnp.float32, -stdv, stdv)

    return {
        "W_if": u(keys[0], (input_size, hidden_size)),
        "W_hf": u(keys[1], (hidden_size, hidden_size)),
        # torch.nn.init.constant_(self.b_if, 1)
        "b_if": jnp.ones((hidden_size,), jnp.float32),
        "W_ig": u(keys[2], (input_size, hidden_size)),
        "W_hg": u(keys[3], (hidden_size, hidden_size)),
        "b_ig": u(keys[4], (hidden_size,)),
        "W_io": u(keys[5], (input_size, hidden_size)),
        "W_ho": u(keys[6], (hidden_size, hidden_size)),
        "b_io": u(keys[7], (hidden_size,)),
        # nn.Linear(hidden, categories), stored as (hidden, categories)
        "W_out": u(keys[8], (hidden_size, categories)),
        "b_out": u(keys[9], (categories,)),
    }


def reference_forward(x, params):
    """Pure-JAX f32 reference matching the PyTorch forward."""
    batch, seq_len, _ = x.shape
    hidden = params["W_hf"].shape[0]
    h = jnp.zeros((batch, hidden), jnp.float32)
    c = jnp.zeros((batch, hidden), jnp.float32)
    for t in range(seq_len):
        x_t = x[:, t, :]
        f = jax.nn.sigmoid(x_t @ params["W_if"] + h @ params["W_hf"] + params["b_if"])
        g = jnp.tanh(x_t @ params["W_ig"] + h @ params["W_hg"] + params["b_ig"])
        o = jax.nn.sigmoid(x_t @ params["W_io"] + h @ params["W_ho"] + params["b_io"])
        c = f * c + g
        h = o * jnp.tanh(c)
    return h @ params["W_out"] + params["b_out"]


if __name__ == "__main__":
    batch, seq_len, input_size, hidden_size, categories = 2, 8, 4, 32, 8

    key = jax.random.PRNGKey(0)
    k_x, k_p = jax.random.split(key)
    x = jax.random.normal(k_x, (batch, seq_len, input_size), jnp.float32)
    params = init_params(k_p, input_size, hidden_size, categories)

    out = jax.block_until_ready(no_input_gate_lstm(x, params))
    ref = reference_forward(x, params)
    assert out.shape == (batch, categories)
    # bf16 MXU operands (f32 accumulation) -> loosened tolerance vs f32 ref.
    assert jnp.max(jnp.abs(out - ref)) < 5e-2, "mismatch vs reference"

    # Also exercise the padded / masked time path (seq_len % chunk != 0).
    x2 = x[:, :7, :]
    out2 = jax.block_until_ready(no_input_gate_lstm(x2, params, time_chunk=4))
    ref2 = reference_forward(x2, params)
    assert jnp.max(jnp.abs(out2 - ref2)) < 5e-2, "mismatch vs reference (masked)"

    print("KERNEL_OK")
</pallas_src>

<mosaic_0001>
module attributes {stable_mosaic.version = 11 : i64} {
  func.func @_lstm_kernel(%arg0: i32, %arg1: memref<1x16x4xbf16, #tpu.memory_space<vmem>>, %arg2: memref<4x384xbf16, #tpu.memory_space<vmem>>, %arg3: memref<1x384xf32, #tpu.memory_space<vmem>>, %arg4: memref<128x384xbf16, #tpu.memory_space<vmem>>, %arg5: memref<128x128xbf16, #tpu.memory_space<vmem>>, %arg6: memref<1x128xf32, #tpu.memory_space<vmem>>, %arg7: memref<2x128xf32, #tpu.memory_space<vmem>>, %arg8: memref<16x384xf32, #tpu.memory_space<vmem>>, %arg9: memref<2x128xf32, #tpu.memory_space<vmem>>, %arg10: memref<2x128xf32, #tpu.memory_space<vmem>>) attributes {dimension_semantics = [#tpu.dimension_semantics<arbitrary>], iteration_bounds = array<i64: 1>, scalar_prefetch = 0 : i64, scratch_operands = 3 : i64, tpu.core_type = #tpu.core_type<tc>, window_params = [{transform_indices = @transform_0, window_bounds = array<i64: 1, 16, 4>}, {pipeline_mode = #tpu.pipeline_mode<synchronous>, transform_indices = @transform_1, window_bounds = array<i64: 4, 384>}, {pipeline_mode = #tpu.pipeline_mode<synchronous>, transform_indices = @transform_2, window_bounds = array<i64: 1, 384>}, {pipeline_mode = #tpu.pipeline_mode<synchronous>, transform_indices = @transform_3, window_bounds = array<i64: 128, 384>}, {pipeline_mode = #tpu.pipeline_mode<synchronous>, transform_indices = @transform_4, window_bounds = array<i64: 128, 128>}, {pipeline_mode = #tpu.pipeline_mode<synchronous>, transform_indices = @transform_5, window_bounds = array<i64: 1, 128>}, {pipeline_mode = #tpu.pipeline_mode<synchronous>, transform_indices = @transform_6, window_bounds = array<i64: 2, 128>}]} {
    %c0_i32 = arith.constant 0 : i32
    %0 = arith.cmpi eq, %arg0, %c0_i32 : i32
    %1 = arith.extui %0 : i1 to i32
    %c0_i32_0 = arith.constant 0 : i32
    %2 = arith.cmpi ne, %1, %c0_i32_0 : i32
    scf.if %2 {
      %cst_86 = arith.constant 0.000000e+00 : f32
      %227 = vector.broadcast %cst_86 : f32 to vector<2x128xf32>
      %c0_87 = arith.constant 0 : index
      %c0_88 = arith.constant 0 : index
      %228 = vector.load %arg9[%c0_87, %c0_88] : memref<2x128xf32, #tpu.memory_space<vmem>>, vector<2x128xf32>
      tpu.vector_store %arg9[%c0_87, %c0_88], %227 {strides = array<i32>} : memref<2x128xf32, #tpu.memory_space<vmem>>, vector<2x128xf32>,
      %cst_89 = arith.constant 0.000000e+00 : f32
      %229 = vector.broadcast %cst_89 : f32 to vector<2x128xf32>
      %c0_90 = arith.constant 0 : index
      %c0_91 = arith.constant 0 : index
      %230 = vector.load %arg10[%c0_90, %c0_91] : memref<2x128xf32, #tpu.memory_space<vmem>>, vector<2x128xf32>
      tpu.vector_store %arg10[%c0_90, %c0_91], %229 {strides = array<i32>} : memref<2x128xf32, #tpu.memory_space<vmem>>, vector<2x128xf32>,
    } else {
    }
    %c0 = arith.constant 0 : index
    %c0_1 = arith.constant 0 : index
    %3 = vector.load %arg4[%c0, %c0_1] : memref<128x384xbf16, #tpu.memory_space<vmem>>, vector<128x384xbf16>
    %c0_2 = arith.constant 0 : index
    %c0_3 = arith.constant 0 : index
    %c0_4 = arith.constant 0 : index
    %4 = vector.load %arg1[%c0_2, %c0_3, %c0_4] : memref<1x16x4xbf16, #tpu.memory_space<vmem>>, vector<1x16x4xbf16>
    %5 = vector.shape_cast %4 : vector<1x16x4xbf16> to vector<16x4xbf16>
    %c0_5 = arith.constant 0 : index
    %c0_6 = arith.constant 0 : index
    %6 = vector.load %arg2[%c0_5, %c0_6] : memref<4x384xbf16, #tpu.memory_space<vmem>>, vector<4x384xbf16>
    %cst = arith.constant dense<0.000000e+00> : vector<16x384xf32>
    %7 = tpu.matmul %5, %6, %cst {dimension_numbers = #tpu.dot_dimension_numbers<[1], [0], [0], [1], [0, 0, 1, 1], [], []>} : vector<16x4xbf16>, vector<4x384xbf16>, vector<16x384xf32> -> vector<16x384xf32>
    %c0_7 = arith.constant 0 : index
    %c0_8 = arith.constant 0 : index
    %8 = vector.load %arg3[%c0_7, %c0_8] : memref<1x384xf32, #tpu.memory_space<vmem>>, vector<1x384xf32>
    %9 = vector.broadcast %8 : vector<1x384xf32> to vector<16x384xf32>
    %10 = arith.addf %7, %9 : vector<16x384xf32>
    %c0_9 = arith.constant 0 : index
    %c0_10 = arith.constant 0 : index
    %11 = vector.load %arg8[%c0_9, %c0_10] : memref<16x384xf32, #tpu.memory_space<vmem>>, vector<16x384xf32>
    tpu.vector_store %arg8[%c0_9, %c0_10], %10 {strides = array<i32>} : memref<16x384xf32, #tpu.memory_space<vmem>>, vector<16x384xf32>,
    %c0_11 = arith.constant 0 : index
    %c0_12 = arith.constant 0 : index
    %12 = vector.load %arg9[%c0_11, %c0_12] : memref<2x128xf32, #tpu.memory_space<vmem>>, vector<2x128xf32>
    %c0_13 = arith.constant 0 : index
    %c0_14 = arith.constant 0 : index
    %13 = vector.load %arg10[%c0_13, %c0_14] : memref<2x128xf32, #tpu.memory_space<vmem>>, vector<2x128xf32>
    %c0_15 = arith.constant 0 : index
    %c0_16 = arith.constant 0 : index
    %14 = vector.load %arg8[%c0_15, %c0_16] : memref<16x384xf32, #tpu.memory_space<vmem>>, vector<2x384xf32>
    %15 = arith.truncf %12 : vector<2x128xf32> to vector<2x128xbf16>
    %cst_17 = arith.constant dense<0.000000e+00> : vector<2x384xf32>
    %16 = tpu.matmul %15, %3, %cst_17 {dimension_numbers = #tpu.dot_dimension_numbers<[1], [0], [0], [1], [0, 0, 1, 1], [], []>} : vector<2x128xbf16>, vector<128x384xbf16>, vector<2x384xf32> -> vector<2x384xf32>
    %17 = arith.addf %14, %16 : vector<2x384xf32>
    %18 = vector.extract_strided_slice %17 {offsets = [0, 0], sizes = [2, 128], strides = [1, 1]} : vector<2x384xf32> to vector<2x128xf32>
    %cst_18 = arith.constant 5.000000e-01 : f32
    %19 = vector.broadcast %cst_18 : f32 to vector<2x128xf32>
    %20 = arith.mulf %19, %18 : vector<2x128xf32>
    %21 = math.tanh %20 : vector<2x128xf32>
    %cst_19 = arith.constant 1.000000e+00 : f32
    %22 = vector.broadcast %cst_19 : f32 to vector<2x128xf32>
    %23 = arith.addf %21, %22 : vector<2x128xf32>
    %cst_20 = arith.constant 5.000000e-01 : f32
    %24 = vector.broadcast %cst_20 : f32 to vector<2x128xf32>
    %25 = arith.mulf %24, %23 : vector<2x128xf32>
    %26 = vector.extract_strided_slice %17 {offsets = [0, 128], sizes = [2, 128], strides = [1, 1]} : vector<2x384xf32> to vector<2x128xf32>
    %27 = math.tanh %26 : vector<2x128xf32>
    %28 = vector.extract_strided_slice %17 {offsets = [0, 256], sizes = [2, 128], strides = [1, 1]} : vector<2x384xf32> to vector<2x128xf32>
    %cst_21 = arith.constant 5.000000e-01 : f32
    %29 = vector.broadcast %cst_21 : f32 to vector<2x128xf32>
    %30 = arith.mulf %29, %28 : vector<2x128xf32>
    %31 = math.tanh %30 : vector<2x128xf32>
    %cst_22 = arith.constant 1.000000e+00 : f32
    %32 = vector.broadcast %cst_22 : f32 to vector<2x128xf32>
    %33 = arith.addf %31, %32 : vector<2x128xf32>
    %cst_23 = arith.constant 5.000000e-01 : f32
    %34 = vector.broadcast %cst_23 : f32 to vector<2x128xf32>
    %35 = arith.mulf %34, %33 : vector<2x128xf32>
    %36 = arith.mulf %25, %13 : vector<2x128xf32>
    %37 = arith.addf %36, %27 : vector<2x128xf32>
    %38 = math.tanh %37 : vector<2x128xf32>
    %39 = arith.mulf %35, %38 : vector<2x128xf32>
    %c2 = arith.constant 2 : index
    %c0_24 = arith.constant 0 : index
    %40 = vector.load %arg8[%c2, %c0_24] : memref<16x384xf32, #tpu.memory_space<vmem>>, vector<2x384xf32>
    %41 = arith.truncf %39 : vector<2x128xf32> to vector<2x128xbf16>
    %cst_25 = arith.constant dense<0.000000e+00> : vector<2x384xf32>
    %42 = tpu.matmul %41, %3, %cst_25 {dimension_numbers = #tpu.dot_dimension_numbers<[1], [0], [0], [1], [0, 0, 1, 1], [], []>} : vector<2x128xbf16>, vector<128x384xbf16>, vector<2x384xf32> -> vector<2x384xf32>
    %43 = arith.addf %40, %42 : vector<2x384xf32>
    %44 = vector.extract_strided_slice %43 {offsets = [0, 0], sizes = [2, 128], strides = [1, 1]} : vector<2x384xf32> to vector<2x128xf32>
    %cst_26 = arith.constant 5.000000e-01 : f32
    %45 = vector.broadcast %cst_26 : f32 to vector<2x128xf32>
    %46 = arith.mulf %45, %44 : vector<2x128xf32>
    %47 = math.tanh %46 : vector<2x128xf32>
    %cst_27 = arith.constant 1.000000e+00 : f32
    %48 = vector.broadcast %cst_27 : f32 to vector<2x128xf32>
    %49 = arith.addf %47, %48 : vector<2x128xf32>
    %cst_28 = arith.constant 5.000000e-01 : f32
    %50 = vector.broadcast %cst_28 : f32 to vector<2x128xf32>
    %51 = arith.mulf %50, %49 : vector<2x128xf32>
    %52 = vector.extract_strided_slice %43 {offsets = [0, 128], sizes = [2, 128], strides = [1, 1]} : vector<2x384xf32> to vector<2x128xf32>
    %53 = math.tanh %52 : vector<2x128xf32>
    %54 = vector.extract_strided_slice %43 {offsets = [0, 256], sizes = [2, 128], strides = [1, 1]} : vector<2x384xf32> to vector<2x128xf32>
    %cst_29 = arith.constant 5.000000e-01 : f32
    %55 = vector.broadcast %cst_29 : f32 to vector<2x128xf32>
    %56 = arith.mulf %55, %54 : vector<2x128xf32>
    %57 = math.tanh %56 : vector<2x128xf32>
    %cst_30 = arith.constant 1.000000e+00 : f32
    %58 = vector.broadcast %cst_30 : f32 to vector<2x128xf32>
    %59 = arith.addf %57, %58 : vector<2x128xf32>
    %cst_31 = arith.constant 5.000000e-01 : f32
    %60 = vector.broadcast %cst_31 : f32 to vector<2x128xf32>
    %61 = arith.mulf %60, %59 : vector<2x128xf32>
    %62 = arith.mulf %51, %37 : vector<2x128xf32>
    %63 = arith.addf %62, %53 : vector<2x128xf32>
    %64 = math.tanh %63 : vector<2x128xf32>
    %65 = arith.mulf %61, %64 : vector<2x128xf32>
    %c4 = arith.constant 4 : index
    %c0_32 = arith.constant 0 : index
    %66 = vector.load %arg8[%c4, %c0_32] : memref<16x384xf32, #tpu.memory_space<vmem>>, vector<2x384xf32>
    %67 = arith.truncf %65 : vector<2x128xf32> to vector<2x128xbf16>
    %cst_33 = arith.constant dense<0.000000e+00> : vector<2x384xf32>
    %68 = tpu.matmul %67, %3, %cst_33 {dimension_numbers = #tpu.dot_dimension_numbers<[1], [0], [0], [1], [0, 0, 1, 1], [], []>} : vector<2x128xbf16>, vector<128x384xbf16>, vector<2x384xf32> -> vector<2x384xf32>
    %69 = arith.addf %66, %68 : vector<2x384xf32>
    %70 = vector.extract_strided_slice %69 {offsets = [0, 0], sizes = [2, 128], strides = [1, 1]} : vector<2x384xf32> to vector<2x128xf32>
    %cst_34 = arith.constant 5.000000e-01 : f32
    %71 = vector.broadcast %cst_34 : f32 to vector<2x128xf32>
    %72 = arith.mulf %71, %70 : vector<2x128xf32>
    %73 = math.tanh %72 : vector<2x128xf32>
    %cst_35 = arith.constant 1.000000e+00 : f32
    %74 = vector.broadcast %cst_35 : f32 to vector<2x128xf32>
    %75 = arith.addf %73, %74 : vector<2x128xf32>
    %cst_36 = arith.constant 5.000000e-01 : f32
    %76 = vector.broadcast %cst_36 : f32 to vector<2x128xf32>
    %77 = arith.mulf %76, %75 : vector<2x128xf32>
    %78 = vector.extract_strided_slice %69 {offsets = [0, 128], sizes = [2, 128], strides = [1, 1]} : vector<2x384xf32> to vector<2x128xf32>
    %79 = math.tanh %78 : vector<2x128xf32>
    %80 = vector.extract_strided_slice %69 {offsets = [0, 256], sizes = [2, 128], strides = [1, 1]} : vector<2x384xf32> to vector<2x128xf32>
    %cst_37 = arith.constant 5.000000e-01 : f32
    %81 = vector.broadcast %cst_37 : f32 to vector<2x128xf32>
    %82 = arith.mulf %81, %80 : vector<2x128xf32>
    %83 = math.tanh %82 : vector<2x128xf32>
    %cst_38 = arith.constant 1.000000e+00 : f32
    %84 = vector.broadcast %cst_38 : f32 to vector<2x128xf32>
    %85 = arith.addf %83, %84 : vector<2x128xf32>
    %cst_39 = arith.constant 5.000000e-01 : f32
    %86 = vector.broadcast %cst_39 : f32 to vector<2x128xf32>
    %87 = arith.mulf %86, %85 : vector<2x128xf32>
    %88 = arith.mulf %77, %63 : vector<2x128xf32>
    %89 = arith.addf %88, %79 : vector<2x128xf32>
    %90 = math.tanh %89 : vector<2x128xf32>
    %91 = arith.mulf %87, %90 : vector<2x128xf32>
    %c6 = arith.constant 6 : index
    %c0_40 = arith.constant 0 : index
    %92 = vector.load %arg8[%c6, %c0_40] : memref<16x384xf32, #tpu.memory_space<vmem>>, vector<2x384xf32>
    %93 = arith.truncf %91 : vector<2x128xf32> to vector<2x128xbf16>
    %cst_41 = arith.constant dense<0.000000e+00> : vector<2x384xf32>
    %94 = tpu.matmul %93, %3, %cst_41 {dimension_numbers = #tpu.dot_dimension_numbers<[1], [0], [0], [1], [0, 0, 1, 1], [], []>} : vector<2x128xbf16>, vector<128x384xbf16>, vector<2x384xf32> -> vector<2x384xf32>
    %95 = arith.addf %92, %94 : vector<2x384xf32>
    %96 = vector.extract_strided_slice %95 {offsets = [0, 0], sizes = [2, 128], strides = [1, 1]} : vector<2x384xf32> to vector<2x128xf32>
    %cst_42 = arith.constant 5.000000e-01 : f32
    %97 = vector.broadcast %cst_42 : f32 to vector<2x128xf32>
    %98 = arith.mulf %97, %96 : vector<2x128xf32>
    %99 = math.tanh %98 : vector<2x128xf32>
    %cst_43 = arith.constant 1.000000e+00 : f32
    %100 = vector.broadcast %cst_43 : f32 to vector<2x128xf32>
    %101 = arith.addf %99, %100 : vector<2x128xf32>
    %cst_44 = arith.constant 5.000000e-01 : f32
    %102 = vector.broadcast %cst_44 : f32 to vector<2x128xf32>
    %103 = arith.mulf %102, %101 : vector<2x128xf32>
    %104 = vector.extract_strided_slice %95 {offsets = [0, 128], sizes = [2, 128], strides = [1, 1]} : vector<2x384xf32> to vector<2x128xf32>
    %105 = math.tanh %104 : vector<2x128xf32>
    %106 = vector.extract_strided_slice %95 {offsets = [0, 256], sizes = [2, 128], strides = [1, 1]} : vector<2x384xf32> to vector<2x128xf32>
    %cst_45 = arith.constant 5.000000e-01 : f32
    %107 = vector.broadcast %cst_45 : f32 to vector<2x128xf32>
    %108 = arith.mulf %107, %106 : vector<2x128xf32>
    %109 = math.tanh %108 : vector<2x128xf32>
    %cst_46 = arith.constant 1.000000e+00 : f32
    %110 = vector.broadcast %cst_46 : f32 to vector<2x128xf32>
    %111 = arith.addf %109, %110 : vector<2x128xf32>
    %cst_47 = arith.constant 5.000000e-01 : f32
    %112 = vector.broadcast %cst_47 : f32 to vector<2x128xf32>
    %113 = arith.mulf %112, %111 : vector<2x128xf32>
    %114 = arith.mulf %103, %89 : vector<2x128xf32>
    %115 = arith.addf %114, %105 : vector<2x128xf32>
    %116 = math.tanh %115 : vector<2x128xf32>
    %117 = arith.mulf %113, %116 : vector<2x128xf32>
    %c8 = arith.constant 8 : index
    %c0_48 = arith.constant 0 : index
    %118 = vector.load %arg8[%c8, %c0_48] : memref<16x384xf32, #tpu.memory_space<vmem>>, vector<2x384xf32>
    %119 = arith.truncf %117 : vector<2x128xf32> to vector<2x128xbf16>
    %cst_49 = arith.constant dense<0.000000e+00> : vector<2x384xf32>
    %120 = tpu.matmul %119, %3, %cst_49 {dimension_numbers = #tpu.dot_dimension_numbers<[1], [0], [0], [1], [0, 0, 1, 1], [], []>} : vector<2x128xbf16>, vector<128x384xbf16>, vector<2x384xf32> -> vector<2x384xf32>
    %121 = arith.addf %118, %120 : vector<2x384xf32>
    %122 = vector.extract_strided_slice %121 {offsets = [0, 0], sizes = [2, 128], strides = [1, 1]} : vector<2x384xf32> to vector<2x128xf32>
    %cst_50 = arith.constant 5.000000e-01 : f32
    %123 = vector.broadcast %cst_50 : f32 to vector<2x128xf32>
    %124 = arith.mulf %123, %122 : vector<2x128xf32>
    %125 = math.tanh %124 : vector<2x128xf32>
    %cst_51 = arith.constant 1.000000e+00 : f32
    %126 = vector.broadcast %cst_51 : f32 to vector<2x128xf32>
    %127 = arith.addf %125, %126 : vector<2x128xf32>
    %cst_52 = arith.constant 5.000000e-01 : f32
    %128 = vector.broadcast %cst_52 : f32 to vector<2x128xf32>
    %129 = arith.mulf %128, %127 : vector<2x128xf32>
    %130 = vector.extract_strided_slice %121 {offsets = [0, 128], sizes = [2, 128], strides = [1, 1]} : vector<2x384xf32> to vector<2x128xf32>
    %131 = math.tanh %130 : vector<2x128xf32>
    %132 = vector.extract_strided_slice %121 {offsets = [0, 256], sizes = [2, 128], strides = [1, 1]} : vector<2x384xf32> to vector<2x128xf32>
    %cst_53 = arith.constant 5.000000e-01 : f32
    %133 = vector.broadcast %cst_53 : f32 to vector<2x128xf32>
    %134 = arith.mulf %133, %132 : vector<2x128xf32>
    %135 = math.tanh %134 : vector<2x128xf32>
    %cst_54 = arith.constant 1.000000e+00 : f32
    %136 = vector.broadcast %cst_54 : f32 to vector<2x128xf32>
    %137 = arith.addf %135, %136 : vector<2x128xf32>
    %cst_55 = arith.constant 5.000000e-01 : f32
    %138 = vector.broadcast %cst_55 : f32 to vector<2x128xf32>
    %139 = arith.mulf %138, %137 : vector<2x128xf32>
    %140 = arith.mulf %129, %115 : vector<2x128xf32>
    %141 = arith.addf %140, %131 : vector<2x128xf32>
    %142 = math.tanh %141 : vector<2x128xf32>
    %143 = arith.mulf %139, %142 : vector<2x128xf32>
    %c10 = arith.constant 10 : index
    %c0_56 = arith.constant 0 : index
    %144 = vector.load %arg8[%c10, %c0_56] : memref<16x384xf32, #tpu.memory_space<vmem>>, vector<2x384xf32>
    %145 = arith.truncf %143 : vector<2x128xf32> to vector<2x128xbf16>
    %cst_57 = arith.constant dense<0.000000e+00> : vector<2x384xf32>
    %146 = tpu.matmul %145, %3, %cst_57 {dimension_numbers = #tpu.dot_dimension_numbers<[1], [0], [0], [1], [0, 0, 1, 1], [], []>} : vector<2x128xbf16>, vector<128x384xbf16>, vector<2x384xf32> -> vector<2x384xf32>
    %147 = arith.addf %144, %146 : vector<2x384xf32>
    %148 = vector.extract_strided_slice %147 {offsets = [0, 0], sizes = [2, 128], strides = [1, 1]} : vector<2x384xf32> to vector<2x128xf32>
    %cst_58 = arith.constant 5.000000e-01 : f32
    %149 = vector.broadcast %cst_58 : f32 to vector<2x128xf32>
    %150 = arith.mulf %149, %148 : vector<2x128xf32>
    %151 = math.tanh %150 : vector<2x128xf32>
    %cst_59 = arith.constant 1.000000e+00 : f32
    %152 = vector.broadcast %cst_59 : f32 to vector<2x128xf32>
    %153 = arith.addf %151, %152 : vector<2x128xf32>
    %cst_60 = arith.constant 5.000000e-01 : f32
    %154 = vector.broadcast %cst_60 : f32 to vector<2x128xf32>
    %155 = arith.mulf %154, %153 : vector<2x128xf32>
    %156 = vector.extract_strided_slice %147 {offsets = [0, 128], sizes = [2, 128], strides = [1, 1]} : vector<2x384xf32> to vector<2x128xf32>
    %157 = math.tanh %156 : vector<2x128xf32>
    %158 = vector.extract_strided_slice %147 {offsets = [0, 256], sizes = [2, 128], strides = [1, 1]} : vector<2x384xf32> to vector<2x128xf32>
    %cst_61 = arith.constant 5.000000e-01 : f32
    %159 = vector.broadcast %cst_61 : f32 to vector<2x128xf32>
    %160 = arith.mulf %159, %158 : vector<2x128xf32>
    %161 = math.tanh %160 : vector<2x128xf32>
    %cst_62 = arith.constant 1.000000e+00 : f32
    %162 = vector.broadcast %cst_62 : f32 to vector<2x128xf32>
    %163 = arith.addf %161, %162 : vector<2x128xf32>
    %cst_63 = arith.constant 5.000000e-01 : f32
    %164 = vector.broadcast %cst_63 : f32 to vector<2x128xf32>
    %165 = arith.mulf %164, %163 : vector<2x128xf32>
    %166 = arith.mulf %155, %141 : vector<2x128xf32>
    %167 = arith.addf %166, %157 : vector<2x128xf32>
    %168 = math.tanh %167 : vector<2x128xf32>
    %169 = arith.mulf %165, %168 : vector<2x128xf32>
    %c12 = arith.constant 12 : index
    %c0_64 = arith.constant 0 : index
    %170 = vector.load %arg8[%c12, %c0_64] : memref<16x384xf32, #tpu.memory_space<vmem>>, vector<2x384xf32>
    %171 = arith.truncf %169 : vector<2x128xf32> to vector<2x128xbf16>
    %cst_65 = arith.constant dense<0.000000e+00> : vector<2x384xf32>
    %172 = tpu.matmul %171, %3, %cst_65 {dimension_numbers = #tpu.dot_dimension_numbers<[1], [0], [0], [1], [0, 0, 1, 1], [], []>} : vector<2x128xbf16>, vector<128x384xbf16>, vector<2x384xf32> -> vector<2x384xf32>
    %173 = arith.addf %170, %172 : vector<2x384xf32>
    %174 = vector.extract_strided_slice %173 {offsets = [0, 0], sizes = [2, 128], strides = [1, 1]} : vector<2x384xf32> to vector<2x128xf32>
    %cst_66 = arith.constant 5.000000e-01 : f32
    %175 = vector.broadcast %cst_66 : f32 to vector<2x128xf32>
    %176 = arith.mulf %175, %174 : vector<2x128xf32>
    %177 = math.tanh %176 : vector<2x128xf32>
    %cst_67 = arith.constant 1.000000e+00 : f32
    %178 = vector.broadcast %cst_67 : f32 to vector<2x128xf32>
    %179 = arith.addf %177, %178 : vector<2x128xf32>
    %cst_68 = arith.constant 5.000000e-01 : f32
    %180 = vector.broadcast %cst_68 : f32 to vector<2x128xf32>
    %181 = arith.mulf %180, %179 : vector<2x128xf32>
    %182 = vector.extract_strided_slice %173 {offsets = [0, 128], sizes = [2, 128], strides = [1, 1]} : vector<2x384xf32> to vector<2x128xf32>
    %183 = math.tanh %182 : vector<2x128xf32>
    %184 = vector.extract_strided_slice %173 {offsets = [0, 256], sizes = [2, 128], strides = [1, 1]} : vector<2x384xf32> to vector<2x128xf32>
    %cst_69 = arith.constant 5.000000e-01 : f32
    %185 = vector.broadcast %cst_69 : f32 to vector<2x128xf32>
    %186 = arith.mulf %185, %184 : vector<2x128xf32>
    %187 = math.tanh %186 : vector<2x128xf32>
    %cst_70 = arith.constant 1.000000e+00 : f32
    %188 = vector.broadcast %cst_70 : f32 to vector<2x128xf32>
    %189 = arith.addf %187, %188 : vector<2x128xf32>
    %cst_71 = arith.constant 5.000000e-01 : f32
    %190 = vector.broadcast %cst_71 : f32 to vector<2x128xf32>
    %191 = arith.mulf %190, %189 : vector<2x128xf32>
    %192 = arith.mulf %181, %167 : vector<2x128xf32>
    %193 = arith.addf %192, %183 : vector<2x128xf32>
    %194 = math.tanh %193 : vector<2x128xf32>
    %195 = arith.mulf %191, %194 : vector<2x128xf32>
    %c14 = arith.constant 14 : index
    %c0_72 = arith.constant 0 : index
    %196 = vector.load %arg8[%c14, %c0_72] : memref<16x384xf32, #tpu.memory_space<vmem>>, vector<2x384xf32>
    %197 = arith.truncf %195 : vector<2x128xf32> to vector<2x128xbf16>
    %cst_73 = arith.constant dense<0.000000e+00> : vector<2x384xf32>
    %198 = tpu.matmul %197, %3, %cst_73 {dimension_numbers = #tpu.dot_dimension_numbers<[1], [0], [0], [1], [0, 0, 1, 1], [], []>} : vector<2x128xbf16>, vector<128x384xbf16>, vector<2x384xf32> -> vector<2x384xf32>
    %199 = arith.addf %196, %198 : vector<2x384xf32>
    %200 = vector.extract_strided_slice %199 {offsets = [0, 0], sizes = [2, 128], strides = [1, 1]} : vector<2x384xf32> to vector<2x128xf32>
    %cst_74 = arith.constant 5.000000e-01 : f32
    %201 = vector.broadcast %cst_74 : f32 to vector<2x128xf32>
    %202 = arith.mulf %201, %200 : vector<2x128xf32>
    %203 = math.tanh %202 : vector<2x128xf32>
    %cst_75 = arith.constant 1.000000e+00 : f32
    %204 = vector.broadcast %cst_75 : f32 to vector<2x128xf32>
    %205 = arith.addf %203, %204 : vector<2x128xf32>
    %cst_76 = arith.constant 5.000000e-01 : f32
    %206 = vector.broadcast %cst_76 : f32 to vector<2x128xf32>
    %207 = arith.mulf %206, %205 : vector<2x128xf32>
    %208 = vector.extract_strided_slice %199 {offsets = [0, 128], sizes = [2, 128], strides = [1, 1]} : vector<2x384xf32> to vector<2x128xf32>
    %209 = math.tanh %208 : vector<2x128xf32>
    %210 = vector.extract_strided_slice %199 {offsets = [0, 256], sizes = [2, 128], strides = [1, 1]} : vector<2x384xf32> to vector<2x128xf32>
    %cst_77 = arith.constant 5.000000e-01 : f32
    %211 = vector.broadcast %cst_77 : f32 to vector<2x128xf32>
    %212 = arith.mulf %211, %210 : vector<2x128xf32>
    %213 = math.tanh %212 : vector<2x128xf32>
    %cst_78 = arith.constant 1.000000e+00 : f32
    %214 = vector.broadcast %cst_78 : f32 to vector<2x128xf32>
    %215 = arith.addf %213, %214 : vector<2x128xf32>
    %cst_79 = arith.constant 5.000000e-01 : f32
    %216 = vector.broadcast %cst_79 : f32 to vector<2x128xf32>
    %217 = arith.mulf %216, %215 : vector<2x128xf32>
    %218 = arith.mulf %207, %193 : vector<2x128xf32>
    %219 = arith.addf %218, %209 : vector<2x128xf32>
    %220 = math.tanh %219 : vector<2x128xf32>
    %221 = arith.mulf %217, %220 : vector<2x128xf32>
    %c0_80 = arith.constant 0 : index
    %c0_81 = arith.constant 0 : index
    %222 = vector.load %arg9[%c0_80, %c0_81] : memref<2x128xf32, #tpu.memory_space<vmem>>, vector<2x128xf32>
    tpu.vector_store %arg9[%c0_80, %c0_81], %221 {strides = array<i32>} : memref<2x128xf32, #tpu.memory_space<vmem>>, vector<2x128xf32>,
    %c0_82 = arith.constant 0 : index
    %c0_83 = arith.constant 0 : index
    %223 = vector.load %arg10[%c0_82, %c0_83] : memref<2x128xf32, #tpu.memory_space<vmem>>, vector<2x128xf32>
    tpu.vector_store %arg10[%c0_82, %c0_83], %219 {strides = array<i32>} : memref<2x128xf32, #tpu.memory_space<vmem>>, vector<2x128xf32>,
    %c0_i32_84 = arith.constant 0 : i32
    %224 = arith.cmpi eq, %arg0, %c0_i32_84 : i32
    %225 = arith.extui %224 : i1 to i32
    %c0_i32_85 = arith.constant 0 : i32
    %226 = arith.cmpi ne, %225, %c0_i32_85 : i32
    scf.if %226 {
      %227 = arith.truncf %221 : vector<2x128xf32> to vector<2x128xbf16>
      %c0_86 = arith.constant 0 : index
      %c0_87 = arith.constant 0 : index
      %228 = vector.load %arg5[%c0_86, %c0_87] : memref<128x128xbf16, #tpu.memory_space<vmem>>, vector<128x128xbf16>
      %cst_88 = arith.constant dense<0.000000e+00> : vector<2x128xf32>
      %229 = tpu.matmul %227, %228, %cst_88 {dimension_numbers = #tpu.dot_dimension_numbers<[1], [0], [0], [1], [0, 0, 1, 1], [], []>} : vector<2x128xbf16>, vector<128x128xbf16>, vector<2x128xf32> -> vector<2x128xf32>
      %c0_89 = arith.constant 0 : index
      %c0_90 = arith.constant 0 : index
      %230 = vector.load %arg6[%c0_89, %c0_90] : memref<1x128xf32, #tpu.memory_space<vmem>>, vector<1x128xf32>
      %231 = vector.broadcast %230 : vector<1x128xf32> to vector<2x128xf32>
      %232 = arith.addf %229, %231 : vector<2x128xf32>
      %c0_91 = arith.constant 0 : index
      %c0_92 = arith.constant 0 : index
      %233 = vector.load %arg7[%c0_91, %c0_92] : memref<2x128xf32, #tpu.memory_space<vmem>>, vector<2x128xf32>
      tpu.vector_store %arg7[%c0_91, %c0_92], %232 {strides = array<i32>} : memref<2x128xf32, #tpu.memory_space<vmem>>, vector<2x128xf32>,
    } else {
    }
    return
  }
  func.func @transform_0(%arg0: i32) -> (i32, i32, i32) {
    %c0_i32 = arith.constant 0 : i32
    %c0_i32_0 = arith.constant 0 : i32
    %c0_i32_1 = arith.constant 0 : i32
    return %arg0, %c0_i32, %c0_i32_0 : i32, i32, i32
  }
  func.func @transform_1(%arg0: i32) -> (i32, i32) {
    %c0_i32 = arith.constant 0 : i32
    %c0_i32_0 = arith.constant 0 : i32
    %c0_i32_1 = arith.constant 0 : i32
    return %c0_i32, %c0_i32_0 : i32, i32
  }
  func.func @transform_2(%arg0: i32) -> (i32, i32) {
    %c0_i32 = arith.constant 0 : i32
    %c0_i32_0 = arith.constant 0 : i32
    %c0_i32_1 = arith.constant 0 : i32
    return %c0_i32, %c0_i32_0 : i32, i32
  }
  func.func @transform_3(%arg0: i32) -> (i32, i32) {
    %c0_i32 = arith.constant 0 : i32
    %c0_i32_0 = arith.constant 0 : i32
    %c0_i32_1 = arith.constant 0 : i32
    return %c0_i32, %c0_i32_0 : i32, i32
  }
  func.func @transform_4(%arg0: i32) -> (i32, i32) {
    %c0_i32 = arith.constant 0 : i32
    %c0_i32_0 = arith.constant 0 : i32
    %c0_i32_1 = arith.constant 0 : i32
    return %c0_i32, %c0_i32_0 : i32, i32
  }
  func.func @transform_5(%arg0: i32) -> (i32, i32) {
    %c0_i32 = arith.constant 0 : i32
    %c0_i32_0 = arith.constant 0 : i32
    %c0_i32_1 = arith.constant 0 : i32
    return %c0_i32, %c0_i32_0 : i32, i32
  }
  func.func @transform_6(%arg0: i32) -> (i32, i32) {
    %c0_i32 = arith.constant 0 : i32
    %c0_i32_0 = arith.constant 0 : i32
    %c0_i32_1 = arith.constant 0 : i32
    return %c0_i32, %c0_i32_0 : i32, i32
  }
}

module attributes {stable_mosaic.version = 11 : i64} {
  func.func @_lstm_kernel(%arg0: i32, %arg1: memref<1x16x4xbf16, #tpu.memory_space<vmem>>, %arg2: memref<4x384xbf16, #tpu.memory_space<vmem>>, %arg3: memref<1x384xf32, #tpu.memory_space<vmem>>, %arg4: memref<128x384xbf16, #tpu.memory_space<vmem>>, %arg5: memref<128x128xbf16, #tpu.memory_space<vmem>>, %arg6: memref<1x128xf32, #tpu.memory_space<vmem>>, %arg7: memref<2x128xf32, #tpu.memory_space<vmem>>, %arg8: memref<16x384xf32, #tpu.memory_space<vmem>>, %arg9: memref<2x128xf32, #tpu.memory_space<vmem>>, %arg10: memref<2x128xf32, #tpu.memory_space<vmem>>) attributes {dimension_semantics = [#tpu.dimension_semantics<arbitrary>], iteration_bounds = array<i64: 1>, scalar_prefetch = 0 : i64, scratch_operands = 3 : i64, tpu.core_type = #tpu.core_type<tc>, window_params = [{transform_indices = @transform_0, window_bounds = array<i64: 1, 16, 4>}, {pipeline_mode = #tpu.pipeline_mode<synchronous>, transform_indices = @transform_1, window_bounds = array<i64: 4, 384>}, {pipeline_mode = #tpu.pipeline_mode<synchronous>, transform_indices = @transform_2, window_bounds = array<i64: 1, 384>}, {pipeline_mode = #tpu.pipeline_mode<synchronous>, transform_indices = @transform_3, window_bounds = array<i64: 128, 384>}, {pipeline_mode = #tpu.pipeline_mode<synchronous>, transform_indices = @transform_4, window_bounds = array<i64: 128, 128>}, {pipeline_mode = #tpu.pipeline_mode<synchronous>, transform_indices = @transform_5, window_bounds = array<i64: 1, 128>}, {pipeline_mode = #tpu.pipeline_mode<synchronous>, transform_indices = @transform_6, window_bounds = array<i64: 2, 128>}]} {
    %c0_i32 = arith.constant 0 : i32
    %0 = arith.cmpi eq, %arg0, %c0_i32 : i32
    %1 = arith.extui %0 : i1 to i32
    %c0_i32_0 = arith.constant 0 : i32
    %2 = arith.cmpi ne, %1, %c0_i32_0 : i32
    scf.if %2 {
      %cst_86 = arith.constant 0.000000e+00 : f32
      %227 = vector.broadcast %cst_86 : f32 to vector<2x128xf32>
      %c0_87 = arith.constant 0 : index
      %c0_88 = arith.constant 0 : index
      %228 = vector.load %arg9[%c0_87, %c0_88] : memref<2x128xf32, #tpu.memory_space<vmem>>, vector<2x128xf32>
      tpu.vector_store %arg9[%c0_87, %c0_88], %227 {strides = array<i32>} : memref<2x128xf32, #tpu.memory_space<vmem>>, vector<2x128xf32>,
      %cst_89 = arith.constant 0.000000e+00 : f32
      %229 = vector.broadcast %cst_89 : f32 to vector<2x128xf32>
      %c0_90 = arith.constant 0 : index
      %c0_91 = arith.constant 0 : index
      %230 = vector.load %arg10[%c0_90, %c0_91] : memref<2x128xf32, #tpu.memory_space<vmem>>, vector<2x128xf32>
      tpu.vector_store %arg10[%c0_90, %c0_91], %229 {strides = array<i32>} : memref<2x128xf32, #tpu.memory_space<vmem>>, vector<2x128xf32>,
    } else {
    }
    %c0 = arith.constant 0 : index
    %c0_1 = arith.constant 0 : index
    %3 = vector.load %arg4[%c0, %c0_1] : memref<128x384xbf16, #tpu.memory_space<vmem>>, vector<128x384xbf16>
    %c0_2 = arith.constant 0 : index
    %c0_3 = arith.constant 0 : index
    %c0_4 = arith.constant 0 : index
    %4 = vector.load %arg1[%c0_2, %c0_3, %c0_4] : memref<1x16x4xbf16, #tpu.memory_space<vmem>>, vector<1x16x4xbf16>
    %5 = vector.shape_cast %4 : vector<1x16x4xbf16> to vector<16x4xbf16>
    %c0_5 = arith.constant 0 : index
    %c0_6 = arith.constant 0 : index
    %6 = vector.load %arg2[%c0_5, %c0_6] : memref<4x384xbf16, #tpu.memory_space<vmem>>, vector<4x384xbf16>
    %cst = arith.constant dense<0.000000e+00> : vector<16x384xf32>
    %7 = tpu.matmul %5, %6, %cst {dimension_numbers = #tpu.dot_dimension_numbers<[1], [0], [0], [1], [0, 0, 1, 1], [], []>} : vector<16x4xbf16>, vector<4x384xbf16>, vector<16x384xf32> -> vector<16x384xf32>
    %c0_7 = arith.constant 0 : index
    %c0_8 = arith.constant 0 : index
    %8 = vector.load %arg3[%c0_7, %c0_8] : memref<1x384xf32, #tpu.memory_space<vmem>>, vector<1x384xf32>
    %9 = vector.broadcast %8 : vector<1x384xf32> to vector<16x384xf32>
    %10 = arith.addf %7, %9 : vector<16x384xf32>
    %c0_9 = arith.constant 0 : index
    %c0_10 = arith.constant 0 : index
    %11 = vector.load %arg8[%c0_9, %c0_10] : memref<16x384xf32, #tpu.memory_space<vmem>>, vector<16x384xf32>
    tpu.vector_store %arg8[%c0_9, %c0_10], %10 {strides = array<i32>} : memref<16x384xf32, #tpu.memory_space<vmem>>, vector<16x384xf32>,
    %c0_11 = arith.constant 0 : index
    %c0_12 = arith.constant 0 : index
    %12 = vector.load %arg9[%c0_11, %c0_12] : memref<2x128xf32, #tpu.memory_space<vmem>>, vector<2x128xf32>
    %c0_13 = arith.constant 0 : index
    %c0_14 = arith.constant 0 : index
    %13 = vector.load %arg10[%c0_13, %c0_14] : memref<2x128xf32, #tpu.memory_space<vmem>>, vector<2x128xf32>
    %c0_15 = arith.constant 0 : index
    %c0_16 = arith.constant 0 : index
    %14 = vector.load %arg8[%c0_15, %c0_16] : memref<16x384xf32, #tpu.memory_space<vmem>>, vector<2x384xf32>
    %15 = arith.truncf %12 : vector<2x128xf32> to vector<2x128xbf16>
    %cst_17 = arith.constant dense<0.000000e+00> : vector<2x384xf32>
    %16 = tpu.matmul %15, %3, %cst_17 {dimension_numbers = #tpu.dot_dimension_numbers<[1], [0], [0], [1], [0, 0, 1, 1], [], []>} : vector<2x128xbf16>, vector<128x384xbf16>, vector<2x384xf32> -> vector<2x384xf32>
    %17 = arith.addf %14, %16 : vector<2x384xf32>
    %18 = vector.extract_strided_slice %17 {offsets = [0, 0], sizes = [2, 128], strides = [1, 1]} : vector<2x384xf32> to vector<2x128xf32>
    %cst_18 = arith.constant 5.000000e-01 : f32
    %19 = vector.broadcast %cst_18 : f32 to vector<2x128xf32>
    %20 = arith.mulf %19, %18 : vector<2x128xf32>
    %21 = math.tanh %20 : vector<2x128xf32>
    %cst_19 = arith.constant 1.000000e+00 : f32
    %22 = vector.broadcast %cst_19 : f32 to vector<2x128xf32>
    %23 = arith.addf %21, %22 : vector<2x128xf32>
    %cst_20 = arith.constant 5.000000e-01 : f32
    %24 = vector.broadcast %cst_20 : f32 to vector<2x128xf32>
    %25 = arith.mulf %24, %23 : vector<2x128xf32>
    %26 = vector.extract_strided_slice %17 {offsets = [0, 128], sizes = [2, 128], strides = [1, 1]} : vector<2x384xf32> to vector<2x128xf32>
    %27 = math.tanh %26 : vector<2x128xf32>
    %28 = vector.extract_strided_slice %17 {offsets = [0, 256], sizes = [2, 128], strides = [1, 1]} : vector<2x384xf32> to vector<2x128xf32>
    %cst_21 = arith.constant 5.000000e-01 : f32
    %29 = vector.broadcast %cst_21 : f32 to vector<2x128xf32>
    %30 = arith.mulf %29, %28 : vector<2x128xf32>
    %31 = math.tanh %30 : vector<2x128xf32>
    %cst_22 = arith.constant 1.000000e+00 : f32
    %32 = vector.broadcast %cst_22 : f32 to vector<2x128xf32>
    %33 = arith.addf %31, %32 : vector<2x128xf32>
    %cst_23 = arith.constant 5.000000e-01 : f32
    %34 = vector.broadcast %cst_23 : f32 to vector<2x128xf32>
    %35 = arith.mulf %34, %33 : vector<2x128xf32>
    %36 = arith.mulf %25, %13 : vector<2x128xf32>
    %37 = arith.addf %36, %27 : vector<2x128xf32>
    %38 = math.tanh %37 : vector<2x128xf32>
    %39 = arith.mulf %35, %38 : vector<2x128xf32>
    %c2 = arith.constant 2 : index
    %c0_24 = arith.constant 0 : index
    %40 = vector.load %arg8[%c2, %c0_24] : memref<16x384xf32, #tpu.memory_space<vmem>>, vector<2x384xf32>
    %41 = arith.truncf %39 : vector<2x128xf32> to vector<2x128xbf16>
    %cst_25 = arith.constant dense<0.000000e+00> : vector<2x384xf32>
    %42 = tpu.matmul %41, %3, %cst_25 {dimension_numbers = #tpu.dot_dimension_numbers<[1], [0], [0], [1], [0, 0, 1, 1], [], []>} : vector<2x128xbf16>, vector<128x384xbf16>, vector<2x384xf32> -> vector<2x384xf32>
    %43 = arith.addf %40, %42 : vector<2x384xf32>
    %44 = vector.extract_strided_slice %43 {offsets = [0, 0], sizes = [2, 128], strides = [1, 1]} : vector<2x384xf32> to vector<2x128xf32>
    %cst_26 = arith.constant 5.000000e-01 : f32
    %45 = vector.broadcast %cst_26 : f32 to vector<2x128xf32>
    %46 = arith.mulf %45, %44 : vector<2x128xf32>
    %47 = math.tanh %46 : vector<2x128xf32>
    %cst_27 = arith.constant 1.000000e+00 : f32
    %48 = vector.broadcast %cst_27 : f32 to vector<2x128xf32>
    %49 = arith.addf %47, %48 : vector<2x128xf32>
    %cst_28 = arith.constant 5.000000e-01 : f32
    %50 = vector.broadcast %cst_28 : f32 to vector<2x128xf32>
    %51 = arith.mulf %50, %49 : vector<2x128xf32>
    %52 = vector.extract_strided_slice %43 {offsets = [0, 128], sizes = [2, 128], strides = [1, 1]} : vector<2x384xf32> to vector<2x128xf32>
    %53 = math.tanh %52 : vector<2x128xf32>
    %54 = vector.extract_strided_slice %43 {offsets = [0, 256], sizes = [2, 128], strides = [1, 1]} : vector<2x384xf32> to vector<2x128xf32>
    %cst_29 = arith.constant 5.000000e-01 : f32
    %55 = vector.broadcast %cst_29 : f32 to vector<2x128xf32>
    %56 = arith.mulf %55, %54 : vector<2x128xf32>
    %57 = math.tanh %56 : vector<2x128xf32>
    %cst_30 = arith.constant 1.000000e+00 : f32
    %58 = vector.broadcast %cst_30 : f32 to vector<2x128xf32>
    %59 = arith.addf %57, %58 : vector<2x128xf32>
    %cst_31 = arith.constant 5.000000e-01 : f32
    %60 = vector.broadcast %cst_31 : f32 to vector<2x128xf32>
    %61 = arith.mulf %60, %59 : vector<2x128xf32>
    %62 = arith.mulf %51, %37 : vector<2x128xf32>
    %63 = arith.addf %62, %53 : vector<2x128xf32>
    %64 = math.tanh %63 : vector<2x128xf32>
    %65 = arith.mulf %61, %64 : vector<2x128xf32>
    %c4 = arith.constant 4 : index
    %c0_32 = arith.constant 0 : index
    %66 = vector.load %arg8[%c4, %c0_32] : memref<16x384xf32, #tpu.memory_space<vmem>>, vector<2x384xf32>
    %67 = arith.truncf %65 : vector<2x128xf32> to vector<2x128xbf16>
    %cst_33 = arith.constant dense<0.000000e+00> : vector<2x384xf32>
    %68 = tpu.matmul %67, %3, %cst_33 {dimension_numbers = #tpu.dot_dimension_numbers<[1], [0], [0], [1], [0, 0, 1, 1], [], []>} : vector<2x128xbf16>, vector<128x384xbf16>, vector<2x384xf32> -> vector<2x384xf32>
    %69 = arith.addf %66, %68 : vector<2x384xf32>
    %70 = vector.extract_strided_slice %69 {offsets = [0, 0], sizes = [2, 128], strides = [1, 1]} : vector<2x384xf32> to vector<2x128xf32>
    %cst_34 = arith.constant 5.000000e-01 : f32
    %71 = vector.broadcast %cst_34 : f32 to vector<2x128xf32>
    %72 = arith.mulf %71, %70 : vector<2x128xf32>
    %73 = math.tanh %72 : vector<2x128xf32>
    %cst_35 = arith.constant 1.000000e+00 : f32
    %74 = vector.broadcast %cst_35 : f32 to vector<2x128xf32>
    %75 = arith.addf %73, %74 : vector<2x128xf32>
    %cst_36 = arith.constant 5.000000e-01 : f32
    %76 = vector.broadcast %cst_36 : f32 to vector<2x128xf32>
    %77 = arith.mulf %76, %75 : vector<2x128xf32>
    %78 = vector.extract_strided_slice %69 {offsets = [0, 128], sizes = [2, 128], strides = [1, 1]} : vector<2x384xf32> to vector<2x128xf32>
    %79 = math.tanh %78 : vector<2x128xf32>
    %80 = vector.extract_strided_slice %69 {offsets = [0, 256], sizes = [2, 128], strides = [1, 1]} : vector<2x384xf32> to vector<2x128xf32>
    %cst_37 = arith.constant 5.000000e-01 : f32
    %81 = vector.broadcast %cst_37 : f32 to vector<2x128xf32>
    %82 = arith.mulf %81, %80 : vector<2x128xf32>
    %83 = math.tanh %82 : vector<2x128xf32>
    %cst_38 = arith.constant 1.000000e+00 : f32
    %84 = vector.broadcast %cst_38 : f32 to vector<2x128xf32>
    %85 = arith.addf %83, %84 : vector<2x128xf32>
    %cst_39 = arith.constant 5.000000e-01 : f32
    %86 = vector.broadcast %cst_39 : f32 to vector<2x128xf32>
    %87 = arith.mulf %86, %85 : vector<2x128xf32>
    %88 = arith.mulf %77, %63 : vector<2x128xf32>
    %89 = arith.addf %88, %79 : vector<2x128xf32>
    %90 = math.tanh %89 : vector<2x128xf32>
    %91 = arith.mulf %87, %90 : vector<2x128xf32>
    %c6 = arith.constant 6 : index
    %c0_40 = arith.constant 0 : index
    %92 = vector.load %arg8[%c6, %c0_40] : memref<16x384xf32, #tpu.memory_space<vmem>>, vector<2x384xf32>
    %93 = arith.truncf %91 : vector<2x128xf32> to vector<2x128xbf16>
    %cst_41 = arith.constant dense<0.000000e+00> : vector<2x384xf32>
    %94 = tpu.matmul %93, %3, %cst_41 {dimension_numbers = #tpu.dot_dimension_numbers<[1], [0], [0], [1], [0, 0, 1, 1], [], []>} : vector<2x128xbf16>, vector<128x384xbf16>, vector<2x384xf32> -> vector<2x384xf32>
    %95 = arith.addf %92, %94 : vector<2x384xf32>
    %96 = vector.extract_strided_slice %95 {offsets = [0, 0], sizes = [2, 128], strides = [1, 1]} : vector<2x384xf32> to vector<2x128xf32>
    %cst_42 = arith.constant 5.000000e-01 : f32
    %97 = vector.broadcast %cst_42 : f32 to vector<2x128xf32>
    %98 = arith.mulf %97, %96 : vector<2x128xf32>
    %99 = math.tanh %98 : vector<2x128xf32>
    %cst_43 = arith.constant 1.000000e+00 : f32
    %100 = vector.broadcast %cst_43 : f32 to vector<2x128xf32>
    %101 = arith.addf %99, %100 : vector<2x128xf32>
    %cst_44 = arith.constant 5.000000e-01 : f32
    %102 = vector.broadcast %cst_44 : f32 to vector<2x128xf32>
    %103 = arith.mulf %102, %101 : vector<2x128xf32>
    %104 = vector.extract_strided_slice %95 {offsets = [0, 128], sizes = [2, 128], strides = [1, 1]} : vector<2x384xf32> to vector<2x128xf32>
    %105 = math.tanh %104 : vector<2x128xf32>
    %106 = vector.extract_strided_slice %95 {offsets = [0, 256], sizes = [2, 128], strides = [1, 1]} : vector<2x384xf32> to vector<2x128xf32>
    %cst_45 = arith.constant 5.000000e-01 : f32
    %107 = vector.broadcast %cst_45 : f32 to vector<2x128xf32>
    %108 = arith.mulf %107, %106 : vector<2x128xf32>
    %109 = math.tanh %108 : vector<2x128xf32>
    %cst_46 = arith.constant 1.000000e+00 : f32
    %110 = vector.broadcast %cst_46 : f32 to vector<2x128xf32>
    %111 = arith.addf %109, %110 : vector<2x128xf32>
    %cst_47 = arith.constant 5.000000e-01 : f32
    %112 = vector.broadcast %cst_47 : f32 to vector<2x128xf32>
    %113 = arith.mulf %112, %111 : vector<2x128xf32>
    %114 = arith.mulf %103, %89 : vector<2x128xf32>
    %115 = arith.addf %114, %105 : vector<2x128xf32>
    %116 = math.tanh %115 : vector<2x128xf32>
    %117 = arith.mulf %113, %116 : vector<2x128xf32>
    %c8 = arith.constant 8 : index
    %c0_48 = arith.constant 0 : index
    %118 = vector.load %arg8[%c8, %c0_48] : memref<16x384xf32, #tpu.memory_space<vmem>>, vector<2x384xf32>
    %119 = arith.truncf %117 : vector<2x128xf32> to vector<2x128xbf16>
    %cst_49 = arith.constant dense<0.000000e+00> : vector<2x384xf32>
    %120 = tpu.matmul %119, %3, %cst_49 {dimension_numbers = #tpu.dot_dimension_numbers<[1], [0], [0], [1], [0, 0, 1, 1], [], []>} : vector<2x128xbf16>, vector<128x384xbf16>, vector<2x384xf32> -> vector<2x384xf32>
    %121 = arith.addf %118, %120 : vector<2x384xf32>
    %122 = vector.extract_strided_slice %121 {offsets = [0, 0], sizes = [2, 128], strides = [1, 1]} : vector<2x384xf32> to vector<2x128xf32>
    %cst_50 = arith.constant 5.000000e-01 : f32
    %123 = vector.broadcast %cst_50 : f32 to vector<2x128xf32>
    %124 = arith.mulf %123, %122 : vector<2x128xf32>
    %125 = math.tanh %124 : vector<2x128xf32>
    %cst_51 = arith.constant 1.000000e+00 : f32
    %126 = vector.broadcast %cst_51 : f32 to vector<2x128xf32>
    %127 = arith.addf %125, %126 : vector<2x128xf32>
    %cst_52 = arith.constant 5.000000e-01 : f32
    %128 = vector.broadcast %cst_52 : f32 to vector<2x128xf32>
    %129 = arith.mulf %128, %127 : vector<2x128xf32>
    %130 = vector.extract_strided_slice %121 {offsets = [0, 128], sizes = [2, 128], strides = [1, 1]} : vector<2x384xf32> to vector<2x128xf32>
    %131 = math.tanh %130 : vector<2x128xf32>
    %132 = vector.extract_strided_slice %121 {offsets = [0, 256], sizes = [2, 128], strides = [1, 1]} : vector<2x384xf32> to vector<2x128xf32>
    %cst_53 = arith.constant 5.000000e-01 : f32
    %133 = vector.broadcast %cst_53 : f32 to vector<2x128xf32>
    %134 = arith.mulf %133, %132 : vector<2x128xf32>
    %135 = math.tanh %134 : vector<2x128xf32>
    %cst_54 = arith.constant 1.000000e+00 : f32
    %136 = vector.broadcast %cst_54 : f32 to vector<2x128xf32>
    %137 = arith.addf %135, %136 : vector<2x128xf32>
    %cst_55 = arith.constant 5.000000e-01 : f32
    %138 = vector.broadcast %cst_55 : f32 to vector<2x128xf32>
    %139 = arith.mulf %138, %137 : vector<2x128xf32>
    %140 = arith.mulf %129, %115 : vector<2x128xf32>
    %141 = arith.addf %140, %131 : vector<2x128xf32>
    %142 = math.tanh %141 : vector<2x128xf32>
    %143 = arith.mulf %139, %142 : vector<2x128xf32>
    %c10 = arith.constant 10 : index
    %c0_56 = arith.constant 0 : index
    %144 = vector.load %arg8[%c10, %c0_56] : memref<16x384xf32, #tpu.memory_space<vmem>>, vector<2x384xf32>
    %145 = arith.truncf %143 : vector<2x128xf32> to vector<2x128xbf16>
    %cst_57 = arith.constant dense<0.000000e+00> : vector<2x384xf32>
    %146 = tpu.matmul %145, %3, %cst_57 {dimension_numbers = #tpu.dot_dimension_numbers<[1], [0], [0], [1], [0, 0, 1, 1], [], []>} : vector<2x128xbf16>, vector<128x384xbf16>, vector<2x384xf32> -> vector<2x384xf32>
    %147 = arith.addf %144, %146 : vector<2x384xf32>
    %148 = vector.extract_strided_slice %147 {offsets = [0, 0], sizes = [2, 128], strides = [1, 1]} : vector<2x384xf32> to vector<2x128xf32>
    %cst_58 = arith.constant 5.000000e-01 : f32
    %149 = vector.broadcast %cst_58 : f32 to vector<2x128xf32>
    %150 = arith.mulf %149, %148 : vector<2x128xf32>
    %151 = math.tanh %150 : vector<2x128xf32>
    %cst_59 = arith.constant 1.000000e+00 : f32
    %152 = vector.broadcast %cst_59 : f32 to vector<2x128xf32>
    %153 = arith.addf %151, %152 : vector<2x128xf32>
    %cst_60 = arith.constant 5.000000e-01 : f32
    %154 = vector.broadcast %cst_60 : f32 to vector<2x128xf32>
    %155 = arith.mulf %154, %153 : vector<2x128xf32>
    %156 = vector.extract_strided_slice %147 {offsets = [0, 128], sizes = [2, 128], strides = [1, 1]} : vector<2x384xf32> to vector<2x128xf32>
    %157 = math.tanh %156 : vector<2x128xf32>
    %158 = vector.extract_strided_slice %147 {offsets = [0, 256], sizes = [2, 128], strides = [1, 1]} : vector<2x384xf32> to vector<2x128xf32>
    %cst_61 = arith.constant 5.000000e-01 : f32
    %159 = vector.broadcast %cst_61 : f32 to vector<2x128xf32>
    %160 = arith.mulf %159, %158 : vector<2x128xf32>
    %161 = math.tanh %160 : vector<2x128xf32>
    %cst_62 = arith.constant 1.000000e+00 : f32
    %162 = vector.broadcast %cst_62 : f32 to vector<2x128xf32>
    %163 = arith.addf %161, %162 : vector<2x128xf32>
    %cst_63 = arith.constant 5.000000e-01 : f32
    %164 = vector.broadcast %cst_63 : f32 to vector<2x128xf32>
    %165 = arith.mulf %164, %163 : vector<2x128xf32>
    %166 = arith.mulf %155, %141 : vector<2x128xf32>
    %167 = arith.addf %166, %157 : vector<2x128xf32>
    %168 = math.tanh %167 : vector<2x128xf32>
    %169 = arith.mulf %165, %168 : vector<2x128xf32>
    %c12 = arith.constant 12 : index
    %c0_64 = arith.constant 0 : index
    %170 = vector.load %arg8[%c12, %c0_64] : memref<16x384xf32, #tpu.memory_space<vmem>>, vector<2x384xf32>
    %171 = arith.truncf %169 : vector<2x128xf32> to vector<2x128xbf16>
    %cst_65 = arith.constant dense<0.000000e+00> : vector<2x384xf32>
    %172 = tpu.matmul %171, %3, %cst_65 {dimension_numbers = #tpu.dot_dimension_numbers<[1], [0], [0], [1], [0, 0, 1, 1], [], []>} : vector<2x128xbf16>, vector<128x384xbf16>, vector<2x384xf32> -> vector<2x384xf32>
    %173 = arith.addf %170, %172 : vector<2x384xf32>
    %174 = vector.extract_strided_slice %173 {offsets = [0, 0], sizes = [2, 128], strides = [1, 1]} : vector<2x384xf32> to vector<2x128xf32>
    %cst_66 = arith.constant 5.000000e-01 : f32
    %175 = vector.broadcast %cst_66 : f32 to vector<2x128xf32>
    %176 = arith.mulf %175, %174 : vector<2x128xf32>
    %177 = math.tanh %176 : vector<2x128xf32>
    %cst_67 = arith.constant 1.000000e+00 : f32
    %178 = vector.broadcast %cst_67 : f32 to vector<2x128xf32>
    %179 = arith.addf %177, %178 : vector<2x128xf32>
    %cst_68 = arith.constant 5.000000e-01 : f32
    %180 = vector.broadcast %cst_68 : f32 to vector<2x128xf32>
    %181 = arith.mulf %180, %179 : vector<2x128xf32>
    %182 = vector.extract_strided_slice %173 {offsets = [0, 128], sizes = [2, 128], strides = [1, 1]} : vector<2x384xf32> to vector<2x128xf32>
    %183 = math.tanh %182 : vector<2x128xf32>
    %184 = vector.extract_strided_slice %173 {offsets = [0, 256], sizes = [2, 128], strides = [1, 1]} : vector<2x384xf32> to vector<2x128xf32>
    %cst_69 = arith.constant 5.000000e-01 : f32
    %185 = vector.broadcast %cst_69 : f32 to vector<2x128xf32>
    %186 = arith.mulf %185, %184 : vector<2x128xf32>
    %187 = math.tanh %186 : vector<2x128xf32>
    %cst_70 = arith.constant 1.000000e+00 : f32
    %188 = vector.broadcast %cst_70 : f32 to vector<2x128xf32>
    %189 = arith.addf %187, %188 : vector<2x128xf32>
    %cst_71 = arith.constant 5.000000e-01 : f32
    %190 = vector.broadcast %cst_71 : f32 to vector<2x128xf32>
    %191 = arith.mulf %190, %189 : vector<2x128xf32>
    %192 = arith.mulf %181, %167 : vector<2x128xf32>
    %193 = arith.addf %192, %183 : vector<2x128xf32>
    %194 = math.tanh %193 : vector<2x128xf32>
    %195 = arith.mulf %191, %194 : vector<2x128xf32>
    %c14 = arith.constant 14 : index
    %c0_72 = arith.constant 0 : index
    %196 = vector.load %arg8[%c14, %c0_72] : memref<16x384xf32, #tpu.memory_space<vmem>>, vector<2x384xf32>
    %197 = arith.truncf %195 : vector<2x128xf32> to vector<2x128xbf16>
    %cst_73 = arith.constant dense<0.000000e+00> : vector<2x384xf32>
    %198 = tpu.matmul %197, %3, %cst_73 {dimension_numbers = #tpu.dot_dimension_numbers<[1], [0], [0], [1], [0, 0, 1, 1], [], []>} : vector<2x128xbf16>, vector<128x384xbf16>, vector<2x384xf32> -> vector<2x384xf32>
    %199 = arith.addf %196, %198 : vector<2x384xf32>
    %200 = vector.extract_strided_slice %199 {offsets = [0, 0], sizes = [2, 128], strides = [1, 1]} : vector<2x384xf32> to vector<2x128xf32>
    %cst_74 = arith.constant 5.000000e-01 : f32
    %201 = vector.broadcast %cst_74 : f32 to vector<2x128xf32>
    %202 = arith.mulf %201, %200 : vector<2x128xf32>
    %203 = math.tanh %202 : vector<2x128xf32>
    %cst_75 = arith.constant 1.000000e+00 : f32
    %204 = vector.broadcast %cst_75 : f32 to vector<2x128xf32>
    %205 = arith.addf %203, %204 : vector<2x128xf32>
    %cst_76 = arith.constant 5.000000e-01 : f32
    %206 = vector.broadcast %cst_76 : f32 to vector<2x128xf32>
    %207 = arith.mulf %206, %205 : vector<2x128xf32>
    %208 = vector.extract_strided_slice %199 {offsets = [0, 128], sizes = [2, 128], strides = [1, 1]} : vector<2x384xf32> to vector<2x128xf32>
    %209 = math.tanh %208 : vector<2x128xf32>
    %210 = vector.extract_strided_slice %199 {offsets = [0, 256], sizes = [2, 128], strides = [1, 1]} : vector<2x384xf32> to vector<2x128xf32>
    %cst_77 = arith.constant 5.000000e-01 : f32
    %211 = vector.broadcast %cst_77 : f32 to vector<2x128xf32>
    %212 = arith.mulf %211, %210 : vector<2x128xf32>
    %213 = math.tanh %212 : vector<2x128xf32>
    %cst_78 = arith.constant 1.000000e+00 : f32
    %214 = vector.broadcast %cst_78 : f32 to vector<2x128xf32>
    %215 = arith.addf %213, %214 : vector<2x128xf32>
    %cst_79 = arith.constant 5.000000e-01 : f32
    %216 = vector.broadcast %cst_79 : f32 to vector<2x128xf32>
    %217 = arith.mulf %216, %215 : vector<2x128xf32>
    %218 = arith.mulf %207, %193 : vector<2x128xf32>
    %219 = arith.addf %218, %209 : vector<2x128xf32>
    %220 = math.tanh %219 : vector<2x128xf32>
    %221 = arith.mulf %217, %220 : vector<2x128xf32>
    %c0_80 = arith.constant 0 : index
    %c0_81 = arith.constant 0 : index
    %222 = vector.load %arg9[%c0_80, %c0_81] : memref<2x128xf32, #tpu.memory_space<vmem>>, vector<2x128xf32>
    tpu.vector_store %arg9[%c0_80, %c0_81], %221 {strides = array<i32>} : memref<2x128xf32, #tpu.memory_space<vmem>>, vector<2x128xf32>,
    %c0_82 = arith.constant 0 : index
    %c0_83 = arith.constant 0 : index
    %223 = vector.load %arg10[%c0_82, %c0_83] : memref<2x128xf32, #tpu.memory_space<vmem>>, vector<2x128xf32>
    tpu.vector_store %arg10[%c0_82, %c0_83], %219 {strides = array<i32>} : memref<2x128xf32, #tpu.memory_space<vmem>>, vector<2x128xf32>,
    %c0_i32_84 = arith.constant 0 : i32
    %224 = arith.cmpi eq, %arg0, %c0_i32_84 : i32
    %225 = arith.extui %224 : i1 to i32
    %c0_i32_85 = arith.constant 0 : i32
    %226 = arith.cmpi ne, %225, %c0_i32_85 : i32
    scf.if %226 {
      %227 = arith.truncf %221 : vector<2x128xf32> to vector<2x128xbf16>
      %c0_86 = arith.constant 0 : index
      %c0_87 = arith.constant 0 : index
      %228 = vector.load %arg5[%c0_86, %c0_87] : memref<128x128xbf16, #tpu.memory_space<vmem>>, vector<128x128xbf16>
      %cst_88 = arith.constant dense<0.000000e+00> : vector<2x128xf32>
      %229 = tpu.matmul %227, %228, %cst_88 {dimension_numbers = #tpu.dot_dimension_numbers<[1], [0], [0], [1], [0, 0, 1, 1], [], []>} : vector<2x128xbf16>, vector<128x128xbf16>, vector<2x128xf32> -> vector<2x128xf32>
      %c0_89 = arith.constant 0 : index
      %c0_90 = arith.constant 0 : index
      %230 = vector.load %arg6[%c0_89, %c0_90] : memref<1x128xf32, #tpu.memory_space<vmem>>, vector<1x128xf32>
      %231 = vector.broadcast %230 : vector<1x128xf32> to vector<2x128xf32>
      %232 = arith.addf %229, %231 : vector<2x128xf32>
      %c0_91 = arith.constant 0 : index
      %c0_92 = arith.constant 0 : index
      %233 = vector.load %arg7[%c0_91, %c0_92] : memref<2x128xf32, #tpu.memory_space<vmem>>, vector<2x128xf32>
      tpu.vector_store %arg7[%c0_91, %c0_92], %232 {strides = array<i32>} : memref<2x128xf32, #tpu.memory_space<vmem>>, vector<2x128xf32>,
    } else {
    }
    return
  }
  func.func @transform_0(%arg0: i32) -> (i32, i32, i32) {
    %c0_i32 = arith.constant 0 : i32
    %c0_i32_0 = arith.constant 0 : i32
    %c0_i32_1 = arith.constant 0 : i32
    return %arg0, %c0_i32, %c0_i32_0 : i32, i32, i32
  }
  func.func @transform_1(%arg0: i32) -> (i32, i32) {
    %c0_i32 = arith.constant 0 : i32
    %c0_i32_0 = arith.constant 0 : i32
    %c0_i32_1 = arith.constant 0 : i32
    return %c0_i32, %c0_i32_0 : i32, i32
  }
  func.func @transform_2(%arg0: i32) -> (i32, i32) {
    %c0_i32 = arith.constant 0 : i32
    %c0_i32_0 = arith.constant 0 : i32
    %c0_i32_1 = arith.constant 0 : i32
    return %c0_i32, %c0_i32_0 : i32, i32
  }
  func.func @transform_3(%arg0: i32) -> (i32, i32) {
    %c0_i32 = arith.constant 0 : i32
    %c0_i32_0 = arith.constant 0 : i32
    %c0_i32_1 = arith.constant 0 : i32
    return %c0_i32, %c0_i32_0 : i32, i32
  }
  func.func @transform_4(%arg0: i32) -> (i32, i32) {
    %c0_i32 = arith.constant 0 : i32
    %c0_i32_0 = arith.constant 0 : i32
    %c0_i32_1 = arith.constant 0 : i32
    return %c0_i32, %c0_i32_0 : i32, i32
  }
  func.func @transform_5(%arg0: i32) -> (i32, i32) {
    %c0_i32 = arith.constant 0 : i32
    %c0_i32_0 = arith.constant 0 : i32
    %c0_i32_1 = arith.constant 0 : i32
    return %c0_i32, %c0_i32_0 : i32, i32
  }
  func.func @transform_6(%arg0: i32) -> (i32, i32) {
    %c0_i32 = arith.constant 0 : i32
    %c0_i32_0 = arith.constant 0 : i32
    %c0_i32_1 = arith.constant 0 : i32
    return %c0_i32, %c0_i32_0 : i32, i32
  }
}

</mosaic_0001>

<bundles_post_ra>
// kernel: tpu_custom_call.1
= control target key start
LH: loop header
LB: loop body
LE: loop exit
PB: predicated region body
PF: predicated region fallthrough
CT: control target
= control target key end

     0   :  { %11 = vsyncpa [#allocation6], 0  ;;  %s2373_s0 = inlined_call_operand.vmem [shape: bf16[1,16,4], index: 0, kind: input, shape index: {}]   ;;  %s2374_s1 = inlined_call_operand.vmem [shape: bf16[4,384], index: 1, kind: input, shape index: {}]   ;;  %s2375_s2 = inlined_call_operand.vmem [shape: f32[1,384], index: 2, kind: input, shape index: {}]   ;;  %s2376_s3 = inlined_call_operand.hbm [shape: bf16[128,384], index: 3, kind: input, shape index: {}]   ;;  %s2377_s4 = inlined_call_operand.hbm [shape: bf16[128,128], index: 4, kind: input, shape index: {}]   ;;  %s2378_s5 = inlined_call_operand.vmem [shape: f32[1,128], index: 5, kind: input, shape index: {}]   ;;  %s2379_s6 = inlined_call_operand.hbm [shape: f32[2,128], index: 6, kind: output, shape index: {}]  }
   0x1   :  { %12 = vsyncpa [#allocation9], 0 }
   0x2   :  { %13 = vsyncpa [#allocation7], 0  ;;  %s1915_s21 = smov [#allocation5]   ;;  %s1843_s25 = scalar_lea.hbm %s2376_s3, 3072 }
   0x3   :  { %s25_s22 = sshll.u32 %s1915_s21, 4  ;;  %p1844_p0 = scmp.ne.s32.totalorder %s2376_s3, %s1843_s25  ;;  %s26_s22 = int_to_ptr.vmem [resolvable:$true] %s25_s22 }
   0x4   :  { %p1847_p1 = scmp.lt.u32.totalorder %s1843_s25, %s2376_s3 }
   0x6   :  { %p1849_p2 = pnand %p1847_p1, %p1844_p0 }
   0x8   :  { %1852 = shalt.err (!%p1849_p2)
}
   0x9   :  { %s1853_s30 = scalar_lea.vmem %s26_s22, 3072  ;;  %p1858_p4 = scmp.lt.s32.totalorder %s26_s22, %s26_s22 }
   0xa   :  { %p1854_p3 = scmp.ne.s32.totalorder %s26_s22, %s1853_s30  ;;  %p1859_p5 = scmp.lt.s32.totalorder %s1853_s30, %s1853_s30 }
   0xc   :  { %p1860_p6 = por %p1859_p5, %p1858_p4 }
   0xe   :  { %p1861_p7 = pnand %p1860_p6, %p1854_p3 }
  0x10   :  { %1864 = shalt.err (!%p1861_p7)
}
  0x11   :  { %s1916_s7 = smov 192   ;;  %s1917_s8 = smov 12  }
  0x12   :  { %31 = dma.hbm_to_vmem [thread:$0]  %s2376_s3, 3072, %s26_s22, [#allocation6], %s1916_s7, %s1916_s7, %s1917_s8  }
  0x13   :  { %s1918_s11 = smov [#allocation8]   ;;  %s1865_s15 = scalar_lea.hbm %s2377_s4, 1024 }
  0x14   :  { %s37_s12 = sshll.u32 %s1918_s11, 4  ;;  %p1866_p8 = scmp.ne.s32.totalorder %s2377_s4, %s1865_s15  ;;  %s38_s12 = int_to_ptr.vmem [resolvable:$true] %s37_s12 }
  0x15   :  { %p1869_p9 = scmp.lt.u32.totalorder %s1865_s15, %s2377_s4 }
  0x17   :  { %p1871_p10 = pnand %p1869_p9, %p1866_p8 }
  0x19   :  { %1874 = shalt.err (!%p1871_p10)
}
  0x1a   :  { %s1875_s20 = scalar_lea.vmem %s38_s12, 1024  ;;  %p1880_p12 = scmp.lt.s32.totalorder %s38_s12, %s38_s12 }
  0x1b   :  { %p1876_p11 = scmp.ne.s32.totalorder %s38_s12, %s1875_s20  ;;  %p1881_p13 = scmp.lt.s32.totalorder %s1875_s20, %s1875_s20 }
  0x1d   :  { %p1882_p0 = por %p1881_p13, %p1880_p12 }
  0x1f   :  { %p1883_p1 = pnand %p1882_p0, %p1876_p11 }
  0x21   :  { %1886 = shalt.err (!%p1883_p1)
}
  0x22   :  { %s1919_s3 = smov 64   ;;  %s1920_s21 = smov 4  }
  0x23   :  { %43 = dma.hbm_to_vmem [thread:$0]  %s2377_s4, 1024, %s38_s12, [#allocation9], %s1919_s3, %s1919_s3, %s1920_s21  }
  0x24   :  { %1909 = dma.done.wait [#allocation6], 3072  }
  0x25   :  { %1910 = vsyncadd [#allocation6], 4294964224 }
  0x26   :  { %1911 = dma.done.wait [#allocation9], 1024  }
  0x27   :  { %1912 = vsyncadd [#allocation9], 4294966272  ;;  %v96_v0 = vlaneseq  ;;  %v1921_v1 = vmov 1983009808   ;;  %v1922_v3 = vmov 0   ;;  %v1923_v5 = vmov 0.0  }
  0x28   :  { %v119_v2 = vunpack.c.l.s4 %v1921_v1  ;;  %179 = vmatprep.mubr.bf16.mxu1 %v1922_v3  ;;  %403 = vmatprep.mubr.bf16.mxu0 %v1922_v3  ;;  %57 = vst [vmem:[#allocation3] sm:$0x3] %v1923_v5  ;;  %58 = vst [vmem:[#allocation4] sm:$0x3] %v1923_v5  ;;  %v1992_v8 = vld [vmem:[#allocation5 + $0x4] ss:$12 sps:$4 sm:$0xff]  }
  0x29   :  { %v1987_v4 = vshrl.u32 %v96_v0, 7  ;;  %v1994_v9 = vld [vmem:[#allocation5] ss:$12 sps:$4 sm:$0xff]   ;;  %v93_v10 = vld [vmem:[%s2374_s1] sm:$0x3f]  ;;  %vm137_vm0 = vcmask 1041408   ;;  %371 = vmatprep.subr.bf16.mxu0 %v1992_v8 }
  0x2a   :  { %v120_v6 = vunpack.c.0.s8 %v119_v2  ;;  %v117_v11 = vcombine.high %v93_v10, %v93_v10  ;;  %v2000_v13 = vld [vmem:[#allocation5 + $0x1c] ss:$12 sps:$4 sm:$0xff]   ;;  %372 = vmatpush1.bf16.msra.mxu0 %v1994_v9  ;;  %v2003_v14 = vld [vmem:[#allocation5 + $0x18] ss:$12 sps:$4 sm:$0xff]   ;;  %v2007_v18 = vld [vmem:[#allocation5 + $0x34] ss:$12 sps:$4 sm:$0xff]  }
  0x2b   :  { %373 = vmatprep.subr.bf16.mxu0 %v2000_v13  ;;  %v1726_v19 = vld [vmem:[%s2373_s0] sm:$0xff]   ;;  %vm133_vm1 = vcmask 31744   ;;  %v2014_v20 = vld [vmem:[#allocation5 + $0x30] ss:$12 sps:$4 sm:$0xff]   ;;  %v2019_v22 = vld [vmem:[#allocation5 + $0x4c] ss:$12 sps:$4 sm:$0xff]  }
  0x2c   :  { %v123_v7 = vsub.s32 %v120_v6, %v1987_v4  ;;  %v2023_v23 = vld [vmem:[#allocation5 + $0x48] ss:$12 sps:$4 sm:$0xff]   ;;  %vm1924_vm2 = vmmov 0   ;;  %v2028_v24 = vld [vmem:[#allocation5 + $0x64] ss:$12 sps:$4 sm:$0xff]   ;;  %v98_v42 = vsub.s32 0, %v1987_v4 }
  0x2d   :  { %v2032_v25 = vld [vmem:[#allocation5 + $0x8] ss:$12 sps:$4 sm:$0xff]   ;;  %v2034_v26 = vld [vmem:[#allocation5 + $0x60] ss:$12 sps:$4 sm:$0xff]   ;;  %v2044_v29 = vld [vmem:[#allocation5 + $0x78] ss:$12 sps:$4 sm:$0xff]  }
  0x2e   :  { %v124_v12 = vrot.slane %v93_v10, %v123_v7  ;;  %v131_v17 = vrot.slane %v117_v11, %v123_v7  ;;  %374 = vmatpush1.bf16.msra.mxu0 %v2003_v14  ;;  %v2037_v27 = vld [vmem:[#allocation5 + $0x7c] ss:$12 sps:$4 sm:$0xff]   ;;  %v2040_v28 = vld [vmem:[#allocation5 + $0x20] ss:$12 sps:$4 sm:$0xff]   ;;  %v2050_v31 = vld [vmem:[#allocation5 + $0x38] ss:$12 sps:$4 sm:$0xff]  }
  0x2f   :  { %375 = vmatprep.subr.bf16.mxu0 %v2007_v18  ;;  %v2048_v30 = vld [vmem:[#allocation5 + $0x94] ss:$12 sps:$4 sm:$0xff]   ;;  %v2052_v32 = vld [vmem:[#allocation5 + $0x90] ss:$12 sps:$4 sm:$0xff]   ;;  %v2056_v33 = vld [vmem:[#allocation5 + $0xac] ss:$12 sps:$4 sm:$0xff]  }
  0x30   :  { %v132_v15 = vcombine.high %v124_v12, %v124_v12  ;;  %v139_v16 = vsel %vm137_vm0, %v124_v12, 0  ;;  %v145_v21 = vsel %vm137_vm0, %v131_v17, 0  ;;  %v2064_v34 = vld [vmem:[#allocation5 + $0x50] ss:$12 sps:$4 sm:$0xff]   ;;  %v2066_v35 = vld [vmem:[#allocation5 + $0xa8] ss:$12 sps:$4 sm:$0xff]  }
  0x31   :  { %v237_v36 = vld [vmem:[#allocation3] sm:$0x3]  ;;  %v2072_v38 = vld [vmem:[#allocation5 + $0x68] ss:$12 sps:$4 sm:$0xff]   ;;  %v2077_v39 = vld [vmem:[#allocation5 + $0x80] ss:$12 sps:$4 sm:$0xff]  }
  0x32   :  { %1403 = vmatprep.subr.msk.bf16.mxu1 %vm137_vm0, %v132_v15  ;;  %376 = vmatpush1.bf16.msra.mxu0 %v2014_v20  ;;  %v242_v37 = vpack.c.bf16 %v237_v36, %v237_v36  ;;  %v2084_v40 = vld [vmem:[#allocation5 + $0x98] ss:$12 sps:$4 sm:$0xff]   ;;  %v2090_v41 = vld [vmem:[#allocation5 + $0xb0] ss:$12 sps:$4 sm:$0xff]   ;;  %v102_v44 = vsub.s32 1, %v1987_v4  ;;  %v106_v50 = vsub.s32 2, %v1987_v4 }
  0x33   :  { %148 = vmatpush1.bf16.msra.mxu1 %v139_v16  ;;  %377 = vmatprep.subr.bf16.mxu0 %v2019_v22  ;;  %v94_v43 = vld [vmem:[%s2375_s2] sm:$0x7]  ;;  %s1925_s28 = smov [#allocation10]  }
  0x34   :  { %1522 = vmatprep.subr.bf16.mxu1 %v1923_v5  ;;  %v99_v45 = vrot.slane %v94_v43, %v98_v42  ;;  %v103_v46 = vrot.slane %v94_v43, %v102_v44  ;;  %v107_v56 = vrot.slane %v94_v43, %v106_v50  ;;  %s1392_s29 = sshll.u32 %s1925_s28, 4  ;;  %s1393_s29 = int_to_ptr.vmem [resolvable:$true] %s1392_s29 }
  0x35   :  { %s1887_s30 = scalar_lea.vmem %s1393_s29, 32  ;;  %p1892_p3 = scmp.lt.s32.totalorder %s1393_s29, %s1393_s29 }
  0x36   :  { %1404 = vmatmul.mubr.msk.bf16.vlgmr.msra.gmra.mrb[0].mxu1 %vm133_vm1, %v1726_v19  ;;  %378 = vmatpush1.bf16.msra.mxu0 %v2023_v23  ;;  %p1888_p2 = scmp.ne.s32.totalorder %s1393_s29, %s1887_s30  ;;  %p1893_p4 = scmp.lt.s32.totalorder %s1887_s30, %s1887_s30 }
  0x37   :  { %1523 = vmatpush3.bf16.msra.mxu1 %v145_v21  ;;  %1524 = vmatprep.mubr.msk.bf16.mxu1 %vm1924_vm2, %v1923_v5 }
  0x38   :  { %1528 = vmatprep.subr.bf16.mxu1 %v1923_v5  ;;  %379 = vmatprep.subr.bf16.mxu0 %v2028_v24  ;;  %p1894_p5 = por %p1893_p4, %p1892_p3 }
  0x3a   :  { %380 = vmatpush1.bf16.msra.mxu0 %v2034_v26  ;;  %p1895_p6 = pnand %p1894_p5, %p1888_p2 }
  0x3b   :  { %381 = vmatprep.subr.bf16.mxu0 %v2037_v27 }
  0x3e   :  { %1525 = vmatmul.mubr.msk.bf16.vlgmr.msra.gmra.mrb[4].mxu1 %vm133_vm1, %v1726_v19  ;;  %382 = vmatpush1.bf16.msra.mxu0 %v2044_v29  ;;  %v238_v19 = vld [vmem:[#allocation4] sm:$0x3] }
  0x3f   :  { %1529 = vmatpush3.bf16.msra.mxu1 %v2032_v25  ;;  %1544 = vmatprep.mubr.msk.bf16.mxu1 %vm1924_vm2, %v1923_v5 }
  0x40   :  { %1530 = vmatprep.subr.bf16.mxu1 %v1923_v5  ;;  %383 = vmatprep.subr.bf16.mxu0 %v2048_v30 }
  0x42   :  { %384 = vmatpush1.bf16.msra.mxu0 %v2052_v32 }
  0x43   :  { %1531 = vmatpush3.bf16.msra.mxu1 %v2040_v28  ;;  %385 = vmatprep.subr.bf16.mxu0 %v2056_v33 }
  0x44   :  { %1532 = vmatprep.subr.bf16.mxu1 %v1923_v5 }
  0x46   :  { %386 = vmatpush1.bf16.msra.mxu0 %v2066_v35 }
  0x47   :  { %1533 = vmatpush3.bf16.msra.mxu1 %v2050_v31  ;;  %472 = vmatprep.subr.bf16.mxu0 %v1992_v8 }
  0x48   :  { %1534 = vmatprep.subr.bf16.mxu1 %v1923_v5 }
  0x49   :  { %404 = vmatmul.mubr.bf16.vlgmr.msra.gmra.mrb[0].mxu0 %v242_v37 }
  0x4a   :  { %473 = vmatpush1.bf16.msra.mxu0 %v1994_v9  ;;  %504 = vmatprep.mubr.bf16.mxu0 %v1922_v3 }
  0x4b   :  { %1535 = vmatpush3.bf16.msra.mxu1 %v2064_v34  ;;  %474 = vmatprep.subr.bf16.mxu0 %v2000_v13 }
  0x4c   :  { %1536 = vmatprep.subr.bf16.mxu1 %v1923_v5 }
  0x4e   :  { %475 = vmatpush1.bf16.msra.mxu0 %v2003_v14 }
  0x4f   :  { %1537 = vmatpush3.bf16.msra.mxu1 %v2072_v38  ;;  %476 = vmatprep.subr.bf16.mxu0 %v2007_v18 }
  0x50   :  { %1538 = vmatprep.subr.bf16.mxu1 %v1923_v5 }
  0x52   :  { %477 = vmatpush1.bf16.msra.mxu0 %v2014_v20 }
  0x53   :  { %1539 = vmatpush3.bf16.msra.mxu1 %v2077_v39  ;;  %478 = vmatprep.subr.bf16.mxu0 %v2019_v22 }
  0x54   :  { %1540 = vmatprep.subr.bf16.mxu1 %v1923_v5 }
  0x56   :  { %479 = vmatpush1.bf16.msra.mxu0 %v2023_v23 }
  0x57   :  { %1541 = vmatpush3.bf16.msra.mxu1 %v2084_v40  ;;  %480 = vmatprep.subr.bf16.mxu0 %v2028_v24 }
  0x58   :  { %1542 = vmatprep.subr.bf16.mxu1 %v1923_v5 }
  0x5a   :  { %481 = vmatpush1.bf16.msra.mxu0 %v2034_v26 }
  0x5b   :  { %1543 = vmatpush3.bf16.msra.mxu1 %v2090_v41  ;;  %482 = vmatprep.subr.bf16.mxu0 %v2037_v27 }
  0x5c   :  { %1548 = vmatprep.subr.bf16.mxu1 %v1923_v5 }
  0x5e   :  { %1545 = vmatmul.mubr.bf16.vlgmr.msra.gmra.mrb[8].mxu1 %v242_v37  ;;  %483 = vmatpush1.bf16.msra.mxu0 %v2044_v29 }
  0x5f   :  { %1549 = vmatpush3.bf16.msra.mxu1 %v2032_v25  ;;  %1564 = vmatprep.mubr.msk.bf16.mxu1 %vm1924_vm2, %v1923_v5 }
  0x60   :  { %1550 = vmatprep.subr.bf16.mxu1 %v1923_v5  ;;  %484 = vmatprep.subr.bf16.mxu0 %v2048_v30 }
  0x62   :  { %485 = vmatpush1.bf16.msra.mxu0 %v2052_v32 }
  0x63   :  { %1551 = vmatpush3.bf16.msra.mxu1 %v2040_v28  ;;  %486 = vmatprep.subr.bf16.mxu0 %v2056_v33 }
  0x64   :  { %1552 = vmatprep.subr.bf16.mxu1 %v1923_v5 }
  0x66   :  { %487 = vmatpush1.bf16.msra.mxu0 %v2066_v35 }
  0x67   :  { %1553 = vmatpush3.bf16.msra.mxu1 %v2050_v31  ;;  %588 = vmatprep.subr.bf16.mxu0 %v1992_v8 }
  0x68   :  { %1554 = vmatprep.subr.bf16.mxu1 %v1923_v5 }
  0x6b   :  { %1555 = vmatpush3.bf16.msra.mxu1 %v2064_v34 }
  0x6c   :  { %1556 = vmatprep.subr.bf16.mxu1 %v1923_v5 }
  0x6f   :  { %1557 = vmatpush3.bf16.msra.mxu1 %v2072_v38 }
  0x70   :  { %1558 = vmatprep.subr.bf16.mxu1 %v1923_v5 }
  0x73   :  { %1559 = vmatpush3.bf16.msra.mxu1 %v2077_v39 }
  0x74   :  { %1560 = vmatprep.subr.bf16.mxu1 %v1923_v5 }
  0x77   :  { %1561 = vmatpush3.bf16.msra.mxu1 %v2084_v40 }
  0x78   :  { %1562 = vmatprep.subr.bf16.mxu1 %v1923_v5 }
  0x7b   :  { %1563 = vmatpush3.bf16.msra.mxu1 %v2090_v41 }
  0x7c   :  { %1568 = vmatprep.subr.bf16.mxu1 %v1923_v5 }
 0x109   :  { %v181_v47 = vpop.f32.mrb[0].mxu1 }
 0x10a   :  { %v182_v48 = vadd.f32 %v181_v47, %v99_v45  ;;  %v183_v49 = vpop.f32.mrb[1].mxu1 }
 0x10b   :  { %v184_v51 = vadd.f32 %v183_v49, %v103_v46  ;;  %v185_v52 = vpop.f32.mrb[2].mxu1 }
 0x10c   :  { %231 = vst [vmem:[#allocation2] sm:$0xff] %v182_v48  ;;  %v186_v53 = vadd.f32 %v185_v52, %v99_v45  ;;  %v187_v54 = vpop.f32.mrb[3].mxu1 }
 0x10d   :  { %232 = vst [vmem:[#allocation2 + $0x8] sm:$0xff] %v184_v51  ;;  %v188_v55 = vadd.f32 %v187_v54, %v103_v46 }
 0x10e   :  { %234 = vst [vmem:[#allocation2 + $0x18] sm:$0xff] %v186_v53 }
 0x10f   :  { %235 = vst [vmem:[#allocation2 + $0x20] sm:$0xff] %v188_v55 }
 0x111   :  { %v224_v57 = vpop.f32.mrb[4].mxu1 }
 0x112   :  { %v225_v58 = vadd.f32 %v224_v57, %v107_v56  ;;  %v1526_v59 = vpop.f32.mrb[5].mxu1 }
 0x113   :  { %v227_v60 = vpop.f32.mrb[6].mxu1  ;;  %v239_v63 = vld [vmem:[#allocation2] sm:$0x3]  ;;  %v468_v59 = vld [vmem:[#allocation2] sm:$0xc] }
 0x114   :  { %233 = vst [vmem:[#allocation2 + $0x10] sm:$0xff] %v225_v58  ;;  %v228_v61 = vadd.f32 %v227_v60, %v107_v56  ;;  %v1527_v62 = vpop.f32.mrb[7].mxu1  ;;  %v240_v10 = vld [vmem:[#allocation2 + $0x8] sm:$0x3] }
 0x116   :  { %236 = vst [vmem:[#allocation2 + $0x28] sm:$0xff] %v228_v61 }
 0x11b   :  { %v241_v16 = vld [vmem:[#allocation2 + $0x10] sm:$0x3] }
 0x11c   :  { %v405_v0 = vpop.f32.mrb[0].mxu0 }
 0x11d   :  { %v452_v1 = vadd.f32 %v405_v0, %v239_v63  ;;  %v407_v2 = vpop.f32.mrb[1].mxu0 }
 0x11e   :  { %v409_v4 = vpop.f32.mrb[2].mxu0  ;;  %v453_v11 = vadd.f32 %v407_v2, %v240_v10 }
 0x11f   :  { %v455_v6 = vmul.f32 0.5, %v452_v1  ;;  %v410_v7 = vpop.f32.mrb[3].mxu0 }
 0x120   :  { %v470_v7 = vld [vmem:[#allocation2 + $0x10] sm:$0xc] }
 0x121   :  { %1761 = vtanh.f32 %v455_v6  ;;  %v469_v6 = vld [vmem:[#allocation2 + $0x8] sm:$0xc] }
 0x122   :  { %1763 = vtanh.f32 %v453_v11 }
 0x12b   :  { %v1762_v12 = vpop.eup %1761 }
 0x12c   :  { %v457_v15 = vadd.f32 1.0, %v1762_v12  ;;  %v1764_v46 = vpop.eup %1763 }
 0x12e   :  { %v458_v37 = vmul.f32 0.5, %v457_v15 }
 0x130   :  { %v464_v45 = vmul.f32 %v458_v37, %v238_v19 }
 0x131   :  { %v446_v17 = vpop.f32.mrb[8].mxu1 }
 0x132   :  { %v454_v21 = vadd.f32 %v446_v17, %v241_v16  ;;  %v1546_v36 = vpop.f32.mrb[9].mxu1  ;;  %v2131_v47 = vadd.f32 %v1764_v46, %v464_v45 }
 0x133   :  { %v449_v42 = vpop.f32.mrb[10].mxu1 }
 0x134   :  { %v460_v43 = vmul.f32 0.5, %v454_v21  ;;  %v1547_v44 = vpop.f32.mrb[11].mxu1  ;;  %v575_v19 = vrot.slane %v2131_v47, 6 }
 0x136   :  { %1765 = vtanh.f32 %v460_v43 }
 0x137   :  { %1767 = vtanh.f32 %v2131_v47 }
 0x140   :  { %v1766_v48 = vpop.eup %1765 }
 0x141   :  { %v462_v49 = vadd.f32 1.0, %v1766_v48  ;;  %v1768_v50 = vpop.eup %1767 }
 0x143   :  { %v463_v51 = vmul.f32 0.5, %v462_v49 }
 0x145   :  { %v467_v52 = vmul.f32 %v1768_v50, %v463_v51 }
 0x147   :  { %v471_v53 = vpack.c.bf16 %v467_v52, %v467_v52 }
 0x149   :  { %505 = vmatmul.mubr.bf16.vlgmr.msra.gmra.mrb[4].mxu0 %v471_v53  ;;  %1565 = vmatmul.mubr.bf16.vlgmr.msra.gmra.mrb[12].mxu1 %v471_v53 }
 0x14a   :  { %589 = vmatpush1.bf16.msra.mxu0 %v1994_v9  ;;  %1569 = vmatpush3.bf16.msra.mxu1 %v2032_v25 }
 0x14b   :  { %590 = vmatprep.subr.bf16.mxu0 %v2000_v13  ;;  %1570 = vmatprep.subr.bf16.mxu1 %v1923_v5 }
 0x14c   :  { %620 = vmatprep.mubr.bf16.mxu0 %v1922_v3  ;;  %1584 = vmatprep.mubr.msk.bf16.mxu1 %vm1924_vm2, %v1923_v5 }
 0x14e   :  { %591 = vmatpush1.bf16.msra.mxu0 %v2003_v14  ;;  %1571 = vmatpush3.bf16.msra.mxu1 %v2040_v28 }
 0x14f   :  { %592 = vmatprep.subr.bf16.mxu0 %v2007_v18  ;;  %1572 = vmatprep.subr.bf16.mxu1 %v1923_v5 }
 0x152   :  { %593 = vmatpush1.bf16.msra.mxu0 %v2014_v20  ;;  %1573 = vmatpush3.bf16.msra.mxu1 %v2050_v31 }
 0x153   :  { %594 = vmatprep.subr.bf16.mxu0 %v2019_v22  ;;  %1574 = vmatprep.subr.bf16.mxu1 %v1923_v5 }
 0x156   :  { %595 = vmatpush1.bf16.msra.mxu0 %v2023_v23  ;;  %1575 = vmatpush3.bf16.msra.mxu1 %v2064_v34 }
 0x157   :  { %596 = vmatprep.subr.bf16.mxu0 %v2028_v24  ;;  %1576 = vmatprep.subr.bf16.mxu1 %v1923_v5 }
 0x15a   :  { %597 = vmatpush1.bf16.msra.mxu0 %v2034_v26  ;;  %1577 = vmatpush3.bf16.msra.mxu1 %v2072_v38 }
 0x15b   :  { %598 = vmatprep.subr.bf16.mxu0 %v2037_v27  ;;  %1578 = vmatprep.subr.bf16.mxu1 %v1923_v5 }
 0x15e   :  { %599 = vmatpush1.bf16.msra.mxu0 %v2044_v29  ;;  %1579 = vmatpush3.bf16.msra.mxu1 %v2077_v39 }
 0x15f   :  { %600 = vmatprep.subr.bf16.mxu0 %v2048_v30  ;;  %1580 = vmatprep.subr.bf16.mxu1 %v1923_v5 }
 0x162   :  { %601 = vmatpush1.bf16.msra.mxu0 %v2052_v32  ;;  %1581 = vmatpush3.bf16.msra.mxu1 %v2084_v40 }
 0x163   :  { %602 = vmatprep.subr.bf16.mxu0 %v2056_v33  ;;  %1582 = vmatprep.subr.bf16.mxu1 %v1923_v5 }
 0x166   :  { %603 = vmatpush1.bf16.msra.mxu0 %v2066_v35  ;;  %1583 = vmatpush3.bf16.msra.mxu1 %v2090_v41 }
 0x167   :  { %704 = vmatprep.subr.bf16.mxu0 %v1992_v8  ;;  %1588 = vmatprep.subr.bf16.mxu1 %v1923_v5 }
 0x21c   :  { %v506_v54 = vpop.f32.mrb[4].mxu0  ;;  %v547_v55 = vpop.f32.mrb[12].mxu1 }
 0x21d   :  { %v556_v56 = vrot.slane %v506_v54, 6  ;;  %v508_v57 = vpop.f32.mrb[5].mxu0  ;;  %v1566_v58 = vpop.f32.mrb[13].mxu1  ;;  %v558_v4 = vrot.slane %v547_v55, 6  ;;  %v581_v54 = vld [vmem:[#allocation2] sm:$0x30] }
 0x21e   :  { %v510_v60 = vpop.f32.mrb[6].mxu0  ;;  %v550_v61 = vpop.f32.mrb[14].mxu1  ;;  %v557_v2 = vrot.slane %v508_v57, 6 }
 0x21f   :  { %v562_v62 = vadd.f32 %v556_v56, %v468_v59  ;;  %v511_v63 = vpop.f32.mrb[7].mxu0  ;;  %v1567_v0 = vpop.f32.mrb[15].mxu1  ;;  %v564_v11 = vadd.f32 %v558_v4, %v470_v7 }
 0x220   :  { %v563_v10 = vadd.f32 %v557_v2, %v469_v6  ;;  %v582_v63 = vld [vmem:[#allocation2 + $0x8] sm:$0x30]  ;;  %v583_v0 = vld [vmem:[#allocation2 + $0x10] sm:$0x30] }
 0x221   :  { %v565_v1 = vmul.f32 0.5, %v562_v62  ;;  %v570_v12 = vmul.f32 0.5, %v564_v11 }
 0x223   :  { %1769 = vtanh.f32 %v565_v1 }
 0x224   :  { %1771 = vtanh.f32 %v563_v10 }
 0x225   :  { %1773 = vtanh.f32 %v570_v12 }
 0x22d   :  { %v1770_v15 = vpop.eup %1769 }
 0x22e   :  { %v567_v16 = vadd.f32 1.0, %v1770_v15  ;;  %v1772_v36 = vpop.eup %1771 }
 0x22f   :  { %v1774_v42 = vpop.eup %1773 }
 0x230   :  { %v568_v17 = vmul.f32 0.5, %v567_v16  ;;  %v572_v43 = vadd.f32 1.0, %v1774_v42 }
 0x232   :  { %v577_v21 = vmul.f32 %v575_v19, %v568_v17  ;;  %v573_v44 = vmul.f32 0.5, %v572_v43 }
 0x234   :  { %v2170_v37 = vadd.f32 %v1772_v36, %v577_v21 }
 0x236   :  { %1775 = vtanh.f32 %v2170_v37  ;;  %v691_v11 = vrot.slane %v2170_v37, 6 }
 0x240   :  { %v1776_v45 = vpop.eup %1775 }
 0x241   :  { %v580_v46 = vmul.f32 %v1776_v45, %v573_v44 }
 0x243   :  { %v584_v48 = vpack.c.bf16 %v580_v46, %v580_v46 }
 0x245   :  { %v586_v49 = vrot.slane %v584_v48, 1 }
 0x247   :  { %621 = vmatmul.mubr.bf16.vlgmr.msra.gmra.mrb[8].mxu0 %v586_v49  ;;  %1585 = vmatmul.mubr.bf16.vlgmr.msra.gmra.mrb[16].mxu1 %v586_v49 }
 0x248   :  { %705 = vmatpush1.bf16.msra.mxu0 %v1994_v9  ;;  %1589 = vmatpush3.bf16.msra.mxu1 %v2032_v25 }
 0x249   :  { %706 = vmatprep.subr.bf16.mxu0 %v2000_v13  ;;  %1590 = vmatprep.subr.bf16.mxu1 %v1923_v5 }
 0x24a   :  { %736 = vmatprep.mubr.bf16.mxu0 %v1922_v3  ;;  %1604 = vmatprep.mubr.msk.bf16.mxu1 %vm1924_vm2, %v1923_v5 }
 0x24c   :  { %707 = vmatpush1.bf16.msra.mxu0 %v2003_v14  ;;  %1591 = vmatpush3.bf16.msra.mxu1 %v2040_v28 }
 0x24d   :  { %708 = vmatprep.subr.bf16.mxu0 %v2007_v18  ;;  %1592 = vmatprep.subr.bf16.mxu1 %v1923_v5 }
 0x250   :  { %709 = vmatpush1.bf16.msra.mxu0 %v2014_v20  ;;  %1593 = vmatpush3.bf16.msra.mxu1 %v2050_v31 }
 0x251   :  { %710 = vmatprep.subr.bf16.mxu0 %v2019_v22  ;;  %1594 = vmatprep.subr.bf16.mxu1 %v1923_v5 }
 0x254   :  { %711 = vmatpush1.bf16.msra.mxu0 %v2023_v23  ;;  %1595 = vmatpush3.bf16.msra.mxu1 %v2064_v34 }
 0x255   :  { %712 = vmatprep.subr.bf16.mxu0 %v2028_v24  ;;  %1596 = vmatprep.subr.bf16.mxu1 %v1923_v5 }
 0x258   :  { %713 = vmatpush1.bf16.msra.mxu0 %v2034_v26  ;;  %1597 = vmatpush3.bf16.msra.mxu1 %v2072_v38 }
 0x259   :  { %714 = vmatprep.subr.bf16.mxu0 %v2037_v27  ;;  %1598 = vmatprep.subr.bf16.mxu1 %v1923_v5 }
 0x25c   :  { %715 = vmatpush1.bf16.msra.mxu0 %v2044_v29  ;;  %1599 = vmatpush3.bf16.msra.mxu1 %v2077_v39 }
 0x25d   :  { %716 = vmatprep.subr.bf16.mxu0 %v2048_v30  ;;  %1600 = vmatprep.subr.bf16.mxu1 %v1923_v5 }
 0x260   :  { %717 = vmatpush1.bf16.msra.mxu0 %v2052_v32  ;;  %1601 = vmatpush3.bf16.msra.mxu1 %v2084_v40 }
 0x261   :  { %718 = vmatprep.subr.bf16.mxu0 %v2056_v33  ;;  %1602 = vmatprep.subr.bf16.mxu1 %v1923_v5 }
 0x264   :  { %719 = vmatpush1.bf16.msra.mxu0 %v2066_v35  ;;  %1603 = vmatpush3.bf16.msra.mxu1 %v2090_v41 }
 0x265   :  { %820 = vmatprep.subr.bf16.mxu0 %v1992_v8  ;;  %1608 = vmatprep.subr.bf16.mxu1 %v1923_v5 }
 0x31a   :  { %v622_v47 = vpop.f32.mrb[8].mxu0  ;;  %v663_v50 = vpop.f32.mrb[16].mxu1 }
 0x31b   :  { %v672_v51 = vrot.slane %v622_v47, 4  ;;  %v624_v52 = vpop.f32.mrb[9].mxu0  ;;  %v1586_v53 = vpop.f32.mrb[17].mxu1  ;;  %v674_v62 = vrot.slane %v663_v50, 4  ;;  %v697_v47 = vld [vmem:[#allocation2] sm:$0xc0] }
 0x31c   :  { %v626_v55 = vpop.f32.mrb[10].mxu0  ;;  %v666_v56 = vpop.f32.mrb[18].mxu1  ;;  %v673_v61 = vrot.slane %v624_v52, 4 }
 0x31d   :  { %v678_v57 = vadd.f32 %v672_v51, %v581_v54  ;;  %v627_v58 = vpop.f32.mrb[11].mxu0  ;;  %v1587_v59 = vpop.f32.mrb[19].mxu1  ;;  %v680_v2 = vadd.f32 %v674_v62, %v583_v0 }
 0x31e   :  { %v679_v1 = vadd.f32 %v673_v61, %v582_v63  ;;  %v698_v58 = vld [vmem:[#allocation2 + $0x8] sm:$0xc0]  ;;  %v699_v59 = vld [vmem:[#allocation2 + $0x10] sm:$0xc0] }
 0x31f   :  { %v681_v60 = vmul.f32 0.5, %v678_v57  ;;  %v686_v4 = vmul.f32 0.5, %v680_v2 }
 0x321   :  { %1777 = vtanh.f32 %v681_v60 }
 0x322   :  { %1779 = vtanh.f32 %v679_v1 }
 0x323   :  { %1781 = vtanh.f32 %v686_v4 }
 0x32b   :  { %v1778_v6 = vpop.eup %1777 }
 0x32c   :  { %v683_v7 = vadd.f32 1.0, %v1778_v6  ;;  %v1780_v15 = vpop.eup %1779 }
 0x32d   :  { %v1782_v17 = vpop.eup %1781 }
 0x32e   :  { %v684_v10 = vmul.f32 0.5, %v683_v7  ;;  %v688_v19 = vadd.f32 1.0, %v1782_v17 }
 0x330   :  { %v693_v12 = vmul.f32 %v691_v11, %v684_v10  ;;  %v689_v21 = vmul.f32 0.5, %v688_v19 }
 0x332   :  { %v2209_v16 = vadd.f32 %v1780_v15, %v693_v12 }
 0x334   :  { %1783 = vtanh.f32 %v2209_v16  ;;  %v807_v2 = vrot.slane %v2209_v16, 6 }
 0x33e   :  { %v1784_v36 = vpop.eup %1783 }
 0x33f   :  { %v696_v42 = vmul.f32 %v1784_v36, %v689_v21 }
 0x341   :  { %v700_v43 = vpack.c.bf16 %v696_v42, %v696_v42 }
 0x343   :  { %v702_v44 = vrot.slane %v700_v43, 2 }
 0x345   :  { %737 = vmatmul.mubr.bf16.vlgmr.msra.gmra.mrb[12].mxu0 %v702_v44  ;;  %1605 = vmatmul.mubr.bf16.vlgmr.msra.gmra.mrb[20].mxu1 %v702_v44 }
 0x346   :  { %821 = vmatpush1.bf16.msra.mxu0 %v1994_v9  ;;  %1609 = vmatpush3.bf16.msra.mxu1 %v2032_v25 }
 0x347   :  { %822 = vmatprep.subr.bf16.mxu0 %v2000_v13  ;;  %1610 = vmatprep.subr.bf16.mxu1 %v1923_v5 }
 0x348   :  { %852 = vmatprep.mubr.bf16.mxu0 %v1922_v3  ;;  %1624 = vmatprep.mubr.msk.bf16.mxu1 %vm1924_vm2, %v1923_v5 }
 0x34a   :  { %823 = vmatpush1.bf16.msra.mxu0 %v2003_v14  ;;  %1611 = vmatpush3.bf16.msra.mxu1 %v2040_v28 }
 0x34b   :  { %824 = vmatprep.subr.bf16.mxu0 %v2007_v18  ;;  %1612 = vmatprep.subr.bf16.mxu1 %v1923_v5 }
 0x34e   :  { %825 = vmatpush1.bf16.msra.mxu0 %v2014_v20  ;;  %1613 = vmatpush3.bf16.msra.mxu1 %v2050_v31 }
 0x34f   :  { %826 = vmatprep.subr.bf16.mxu0 %v2019_v22  ;;  %1614 = vmatprep.subr.bf16.mxu1 %v1923_v5 }
 0x352   :  { %827 = vmatpush1.bf16.msra.mxu0 %v2023_v23  ;;  %1615 = vmatpush3.bf16.msra.mxu1 %v2064_v34 }
 0x353   :  { %828 = vmatprep.subr.bf16.mxu0 %v2028_v24  ;;  %1616 = vmatprep.subr.bf16.mxu1 %v1923_v5 }
 0x356   :  { %829 = vmatpush1.bf16.msra.mxu0 %v2034_v26  ;;  %1617 = vmatpush3.bf16.msra.mxu1 %v2072_v38 }
 0x357   :  { %830 = vmatprep.subr.bf16.mxu0 %v2037_v27  ;;  %1618 = vmatprep.subr.bf16.mxu1 %v1923_v5 }
 0x35a   :  { %831 = vmatpush1.bf16.msra.mxu0 %v2044_v29  ;;  %1619 = vmatpush3.bf16.msra.mxu1 %v2077_v39 }
 0x35b   :  { %832 = vmatprep.subr.bf16.mxu0 %v2048_v30  ;;  %1620 = vmatprep.subr.bf16.mxu1 %v1923_v5 }
 0x35e   :  { %833 = vmatpush1.bf16.msra.mxu0 %v2052_v32  ;;  %1621 = vmatpush3.bf16.msra.mxu1 %v2084_v40 }
 0x35f   :  { %834 = vmatprep.subr.bf16.mxu0 %v2056_v33  ;;  %1622 = vmatprep.subr.bf16.mxu1 %v1923_v5 }
 0x362   :  { %835 = vmatpush1.bf16.msra.mxu0 %v2066_v35  ;;  %1623 = vmatpush3.bf16.msra.mxu1 %v2090_v41 }
 0x363   :  { %924 = vmatprep.subr.bf16.mxu0 %v1992_v8  ;;  %1628 = vmatprep.subr.bf16.mxu1 %v1923_v5 }
 0x418   :  { %v738_v37 = vpop.f32.mrb[12].mxu0  ;;  %v779_v45 = vpop.f32.mrb[20].mxu1 }
 0x419   :  { %v788_v46 = vrot.slane %v738_v37, 2  ;;  %v740_v48 = vpop.f32.mrb[13].mxu0  ;;  %v1606_v49 = vpop.f32.mrb[21].mxu1  ;;  %v790_v57 = vrot.slane %v779_v45, 2 }
 0x41a   :  { %v742_v50 = vpop.f32.mrb[14].mxu0  ;;  %v782_v51 = vpop.f32.mrb[22].mxu1  ;;  %v789_v56 = vrot.slane %v740_v48, 2 }
 0x41b   :  { %v794_v52 = vadd.f32 %v788_v46, %v697_v47  ;;  %v743_v53 = vpop.f32.mrb[15].mxu0  ;;  %v1607_v54 = vpop.f32.mrb[23].mxu1  ;;  %v796_v61 = vadd.f32 %v790_v57, %v699_v59  ;;  %v814_v47 = vld [vmem:[#allocation2 + $0x20] sm:$0x3]  ;;  %v815_v50 = vld [vmem:[#allocation2 + $0x28] sm:$0x3] }
 0x41c   :  { %v795_v60 = vadd.f32 %v789_v56, %v698_v58 }
 0x41d   :  { %v797_v55 = vmul.f32 0.5, %v794_v52  ;;  %v802_v62 = vmul.f32 0.5, %v796_v61 }
 0x41f   :  { %1785 = vtanh.f32 %v797_v55 }
 0x420   :  { %1787 = vtanh.f32 %v795_v60 }
 0x421   :  { %1789 = vtanh.f32 %v802_v62 }
 0x429   :  { %v1786_v63 = vpop.eup %1785 }
 0x42a   :  { %v799_v0 = vadd.f32 1.0, %v1786_v63  ;;  %v1788_v6 = vpop.eup %1787 }
 0x42b   :  { %v1790_v10 = vpop.eup %1789 }
 0x42c   :  { %v800_v1 = vmul.f32 0.5, %v799_v0  ;;  %v804_v11 = vadd.f32 1.0, %v1790_v10 }
 0x42e   :  { %v809_v4 = vmul.f32 %v807_v2, %v800_v1  ;;  %v805_v12 = vmul.f32 0.5, %v804_v11  ;;  %v2290_v2 = vld [vmem:[#allocation5] ss:$12 sps:$4 sm:$0xff]  }
 0x430   :  { %v2248_v7 = vadd.f32 %v1788_v6, %v809_v4  ;;  %v922_v4 = vld [vmem:[#allocation2 + $0x28] sm:$0xc] }
 0x432   :  { %1791 = vtanh.f32 %v2248_v7  ;;  %v914_v56 = vrot.slane %v2248_v7, 6 }
 0x43c   :  { %v1792_v15 = vpop.eup %1791 }
 0x43d   :  { %v812_v17 = vmul.f32 %v1792_v15, %v805_v12 }
 0x43f   :  { %v816_v19 = vpack.c.bf16 %v812_v17, %v812_v17 }
 0x441   :  { %v818_v21 = vrot.slane %v816_v19, 3 }
 0x443   :  { %853 = vmatmul.mubr.bf16.vlgmr.msra.gmra.mrb[16].mxu0 %v818_v21  ;;  %1625 = vmatmul.mubr.bf16.vlgmr.msra.gmra.mrb[24].mxu1 %v818_v21 }
 0x444   :  { %925 = vmatpush1.bf16.msra.mxu0 %v1994_v9  ;;  %1629 = vmatpush3.bf16.msra.mxu1 %v2032_v25  ;;  %v813_v9 = vld [vmem:[#allocation2 + $0x18] sm:$0x3] }
 0x445   :  { %926 = vmatprep.subr.bf16.mxu0 %v2000_v13  ;;  %1630 = vmatprep.subr.bf16.mxu1 %v1923_v5 }
 0x446   :  { %956 = vmatprep.mubr.bf16.mxu0 %v1922_v3  ;;  %1644 = vmatprep.mubr.msk.bf16.mxu1 %vm1924_vm2, %v1923_v5 }
 0x448   :  { %927 = vmatpush1.bf16.msra.mxu0 %v2003_v14  ;;  %1631 = vmatpush3.bf16.msra.mxu1 %v2040_v28 }
 0x449   :  { %928 = vmatprep.subr.bf16.mxu0 %v2007_v18  ;;  %1632 = vmatprep.subr.bf16.mxu1 %v1923_v5 }
 0x44c   :  { %929 = vmatpush1.bf16.msra.mxu0 %v2014_v20  ;;  %1633 = vmatpush3.bf16.msra.mxu1 %v2050_v31 }
 0x44d   :  { %930 = vmatprep.subr.bf16.mxu0 %v2019_v22  ;;  %1634 = vmatprep.subr.bf16.mxu1 %v1923_v5 }
 0x450   :  { %931 = vmatpush1.bf16.msra.mxu0 %v2023_v23  ;;  %1635 = vmatpush3.bf16.msra.mxu1 %v2064_v34 }
 0x451   :  { %932 = vmatprep.subr.bf16.mxu0 %v2028_v24  ;;  %1636 = vmatprep.subr.bf16.mxu1 %v1923_v5 }
 0x454   :  { %933 = vmatpush1.bf16.msra.mxu0 %v2034_v26  ;;  %1637 = vmatpush3.bf16.msra.mxu1 %v2072_v38 }
 0x455   :  { %934 = vmatprep.subr.bf16.mxu0 %v2037_v27  ;;  %1638 = vmatprep.subr.bf16.mxu1 %v1923_v5 }
 0x458   :  { %935 = vmatpush1.bf16.msra.mxu0 %v2044_v29  ;;  %1639 = vmatpush3.bf16.msra.mxu1 %v2077_v39 }
 0x459   :  { %936 = vmatprep.subr.bf16.mxu0 %v2048_v30  ;;  %1640 = vmatprep.subr.bf16.mxu1 %v1923_v5 }
 0x45c   :  { %937 = vmatpush1.bf16.msra.mxu0 %v2052_v32  ;;  %1641 = vmatpush3.bf16.msra.mxu1 %v2084_v40 }
 0x45d   :  { %938 = vmatprep.subr.bf16.mxu0 %v2056_v33  ;;  %1642 = vmatprep.subr.bf16.mxu1 %v1923_v5 }
 0x460   :  { %939 = vmatpush1.bf16.msra.mxu0 %v2066_v35  ;;  %1643 = vmatpush3.bf16.msra.mxu1 %v2090_v41 }
 0x461   :  { %1040 = vmatprep.subr.bf16.mxu0 %v1992_v8  ;;  %1648 = vmatprep.subr.bf16.mxu1 %v1923_v5 }
 0x516   :  { %v854_v16 = vpop.f32.mrb[16].mxu0  ;;  %v895_v36 = vpop.f32.mrb[24].mxu1 }
 0x517   :  { %v901_v42 = vadd.f32 %v854_v16, %v813_v9  ;;  %v856_v43 = vpop.f32.mrb[17].mxu0  ;;  %v1626_v44 = vpop.f32.mrb[25].mxu1  ;;  %v903_v52 = vadd.f32 %v895_v36, %v815_v50  ;;  %v1831_v50 = vld [vmem:[#allocation5 + $0x34] ss:$12 sps:$4 sm:$0xff]  }
 0x518   :  { %v858_v37 = vpop.f32.mrb[18].mxu0  ;;  %v898_v45 = vpop.f32.mrb[26].mxu1  ;;  %v902_v51 = vadd.f32 %v856_v43, %v814_v47  ;;  %v1830_v47 = vld [vmem:[#allocation5 + $0x20] ss:$12 sps:$4 sm:$0xff]  }
 0x519   :  { %v904_v46 = vmul.f32 0.5, %v901_v42  ;;  %v859_v48 = vpop.f32.mrb[19].mxu0  ;;  %v1627_v49 = vpop.f32.mrb[27].mxu1  ;;  %v909_v8 = vmul.f32 0.5, %v903_v52  ;;  %v1833_v52 = vld [vmem:[#allocation5 + $0x38] ss:$12 sps:$4 sm:$0xff]  }
 0x51a   :  { %v1828_v48 = vld [vmem:[#allocation5 + $0x1c] ss:$12 sps:$4 sm:$0xff]   ;;  %v1829_v49 = vld [vmem:[#allocation5 + $0x18] ss:$12 sps:$4 sm:$0xff]  }
 0x51b   :  { %1793 = vtanh.f32 %v904_v46  ;;  %v1827_v46 = vld [vmem:[#allocation5 + $0x8] ss:$12 sps:$4 sm:$0xff]  }
 0x51c   :  { %1795 = vtanh.f32 %v902_v51  ;;  %v1832_v51 = vld [vmem:[#allocation5 + $0x30] ss:$12 sps:$4 sm:$0xff]  }
 0x51d   :  { %1797 = vtanh.f32 %v909_v8  ;;  %v1834_v8 = vld [vmem:[#allocation5 + $0x4c] ss:$12 sps:$4 sm:$0xff]  }
 0x525   :  { %v1794_v53 = vpop.eup %1793 }
 0x526   :  { %v906_v54 = vadd.f32 1.0, %v1794_v53  ;;  %v1796_v58 = vpop.eup %1795  ;;  %v1836_v53 = vld [vmem:[#allocation5 + $0x64] ss:$12 sps:$4 sm:$0xff]  }
 0x527   :  { %v1798_v60 = vpop.eup %1797 }
 0x528   :  { %v907_v55 = vmul.f32 0.5, %v906_v54  ;;  %v911_v61 = vadd.f32 1.0, %v1798_v60  ;;  %v1837_v54 = vld [vmem:[#allocation5 + $0x60] ss:$12 sps:$4 sm:$0xff]  }
 0x52a   :  { %v916_v57 = vmul.f32 %v914_v56, %v907_v55  ;;  %v912_v62 = vmul.f32 0.5, %v911_v61  ;;  %v1838_v55 = vld [vmem:[#allocation5 + $0x7c] ss:$12 sps:$4 sm:$0xff]   ;;  %v1839_v56 = vld [vmem:[#allocation5 + $0x78] ss:$12 sps:$4 sm:$0xff]  }
 0x52c   :  { %v2287_v59 = vadd.f32 %v1796_v58, %v916_v57  ;;  %v1840_v57 = vld [vmem:[#allocation5 + $0x94] ss:$12 sps:$4 sm:$0xff]   ;;  %v1842_v58 = vld [vmem:[#allocation5 + $0xac] ss:$12 sps:$4 sm:$0xff]  }
 0x52e   :  { %1799 = vtanh.f32 %v2287_v59  ;;  %v1027_v17 = vrot.slane %v2287_v59, 6 }
 0x538   :  { %v1800_v63 = vpop.eup %1799 }
 0x539   :  { %v919_v0 = vmul.f32 %v1800_v63, %v912_v62  ;;  %v1033_v62 = vld [vmem:[#allocation2 + $0x18] sm:$0x30] }
 0x53b   :  { %v923_v1 = vpack.c.bf16 %v919_v0, %v919_v0 }
 0x53d   :  { %957 = vmatmul.mubr.bf16.vlgmr.msra.gmra.mrb[20].mxu0 %v923_v1  ;;  %1645 = vmatmul.mubr.bf16.vlgmr.msra.gmra.mrb[28].mxu1 %v923_v1 }
 0x53e   :  { %1041 = vmatpush1.bf16.msra.mxu0 %v2290_v2  ;;  %1649 = vmatpush3.bf16.msra.mxu1 %v2032_v25 }
 0x53f   :  { %1042 = vmatprep.subr.bf16.mxu0 %v2000_v13  ;;  %1650 = vmatprep.subr.bf16.mxu1 %v1923_v5  ;;  %v1826_v13 = vld [vmem:[#allocation5 + $0x4] ss:$12 sps:$4 sm:$0xff]  }
 0x540   :  { %1072 = vmatprep.mubr.bf16.mxu0 %v1922_v3  ;;  %1664 = vmatprep.mubr.msk.bf16.mxu1 %vm1924_vm2, %v1923_v5 }
 0x542   :  { %1043 = vmatpush1.bf16.msra.mxu0 %v2003_v14  ;;  %1651 = vmatpush3.bf16.msra.mxu1 %v2040_v28 }
 0x543   :  { %1044 = vmatprep.subr.bf16.mxu0 %v2007_v18  ;;  %1652 = vmatprep.subr.bf16.mxu1 %v1923_v5 }
 0x546   :  { %1045 = vmatpush1.bf16.msra.mxu0 %v2014_v20  ;;  %1653 = vmatpush3.bf16.msra.mxu1 %v2050_v31 }
 0x547   :  { %1046 = vmatprep.subr.bf16.mxu0 %v2019_v22  ;;  %1654 = vmatprep.subr.bf16.mxu1 %v1923_v5 }
 0x54a   :  { %1047 = vmatpush1.bf16.msra.mxu0 %v2023_v23  ;;  %1655 = vmatpush3.bf16.msra.mxu1 %v2064_v34 }
 0x54b   :  { %1048 = vmatprep.subr.bf16.mxu0 %v2028_v24  ;;  %1656 = vmatprep.subr.bf16.mxu1 %v1923_v5  ;;  %v920_v24 = vld [vmem:[#allocation2 + $0x18] sm:$0xc] }
 0x54e   :  { %1049 = vmatpush1.bf16.msra.mxu0 %v2034_v26  ;;  %1657 = vmatpush3.bf16.msra.mxu1 %v2072_v38 }
 0x54f   :  { %1050 = vmatprep.subr.bf16.mxu0 %v2037_v27  ;;  %1658 = vmatprep.subr.bf16.mxu1 %v1923_v5 }
 0x552   :  { %1051 = vmatpush1.bf16.msra.mxu0 %v2044_v29  ;;  %1659 = vmatpush3.bf16.msra.mxu1 %v2077_v39 }
 0x553   :  { %1052 = vmatprep.subr.bf16.mxu0 %v2048_v30  ;;  %1660 = vmatprep.subr.bf16.mxu1 %v1923_v5 }
 0x556   :  { %1053 = vmatpush1.bf16.msra.mxu0 %v2052_v32  ;;  %1661 = vmatpush3.bf16.msra.mxu1 %v2084_v40 }
 0x557   :  { %1054 = vmatprep.subr.bf16.mxu0 %v2056_v33  ;;  %1662 = vmatprep.subr.bf16.mxu1 %v1923_v5  ;;  %v921_v33 = vld [vmem:[#allocation2 + $0x20] sm:$0xc] }
 0x55a   :  { %1055 = vmatpush1.bf16.msra.mxu0 %v2066_v35  ;;  %1663 = vmatpush3.bf16.msra.mxu1 %v2090_v41 }
 0x55b   :  { %1156 = vmatprep.subr.bf16.mxu0 %v1826_v13  ;;  %1668 = vmatprep.subr.bf16.mxu1 %v1923_v5 }
 0x610   :  { %v958_v14 = vpop.f32.mrb[20].mxu0  ;;  %v999_v18 = vpop.f32.mrb[28].mxu1 }
 0x611   :  { %v1008_v20 = vrot.slane %v958_v14, 6  ;;  %v960_v22 = vpop.f32.mrb[21].mxu0  ;;  %v1646_v23 = vpop.f32.mrb[29].mxu1  ;;  %v1010_v32 = vrot.slane %v999_v18, 6 }
 0x612   :  { %v962_v25 = vpop.f32.mrb[22].mxu0  ;;  %v1002_v26 = vpop.f32.mrb[30].mxu1  ;;  %v1009_v31 = vrot.slane %v960_v22, 6 }
 0x613   :  { %v1014_v27 = vadd.f32 %v1008_v20, %v920_v24  ;;  %v963_v28 = vpop.f32.mrb[23].mxu0  ;;  %v1647_v29 = vpop.f32.mrb[31].mxu1  ;;  %v1016_v7 = vadd.f32 %v1010_v32, %v922_v4  ;;  %v1035_v20 = vld [vmem:[#allocation2 + $0x28] sm:$0x30] }
 0x614   :  { %v1015_v6 = vadd.f32 %v1009_v31, %v921_v33 }
 0x615   :  { %v1017_v30 = vmul.f32 0.5, %v1014_v27  ;;  %v1022_v10 = vmul.f32 0.5, %v1016_v7 }
 0x617   :  { %1801 = vtanh.f32 %v1017_v30 }
 0x618   :  { %1803 = vtanh.f32 %v1015_v6 }
 0x619   :  { %1805 = vtanh.f32 %v1022_v10 }
 0x621   :  { %v1802_v11 = vpop.eup %1801 }
 0x622   :  { %v1019_v12 = vadd.f32 1.0, %v1802_v11  ;;  %v1804_v21 = vpop.eup %1803  ;;  %v1753_v11 = vld [vmem:[#allocation8] sm:$0xff]  }
 0x623   :  { %v1806_v16 = vpop.eup %1805 }
 0x624   :  { %v1020_v15 = vmul.f32 0.5, %v1019_v12  ;;  %v1024_v36 = vadd.f32 1.0, %v1806_v16  ;;  %v1754_v12 = vld [vmem:[#allocation8 + $0x8] sm:$0xff]   ;;  %v1760_v16 = vld [vmem:[#allocation8 + $0x38] sm:$0xff]  }
 0x626   :  { %v1029_v19 = vmul.f32 %v1027_v17, %v1020_v15  ;;  %v1025_v42 = vmul.f32 0.5, %v1024_v36  ;;  %v1755_v15 = vld [vmem:[#allocation8 + $0x10] sm:$0xff]   ;;  %v1756_v17 = vld [vmem:[#allocation8 + $0x18] sm:$0xff]  }
 0x628   :  { %v2327_v9 = vadd.f32 %v1804_v21, %v1029_v19  ;;  %v1757_v19 = vld [vmem:[#allocation8 + $0x20] sm:$0xff]   ;;  %v1758_v21 = vld [vmem:[#allocation8 + $0x28] sm:$0xff]  }
 0x62a   :  { %1807 = vtanh.f32 %v2327_v9  ;;  %v1143_v27 = vrot.slane %v2327_v9, 6  ;;  %v1759_v9 = vld [vmem:[#allocation8 + $0x30] sm:$0xff]  }
 0x634   :  { %v1808_v43 = vpop.eup %1807 }
 0x635   :  { %v1032_v44 = vmul.f32 %v1808_v43, %v1025_v42 }
 0x637   :  { %v1036_v37 = vpack.c.bf16 %v1032_v44, %v1032_v44 }
 0x639   :  { %v1038_v45 = vrot.slane %v1036_v37, 1 }
 0x63b   :  { %1073 = vmatmul.mubr.bf16.vlgmr.msra.gmra.mrb[24].mxu0 %v1038_v45  ;;  %1665 = vmatmul.mubr.bf16.vlgmr.msra.gmra.mrb[32].mxu1 %v1038_v45  ;;  %v1149_v45 = vld [vmem:[#allocation2 + $0x18] sm:$0xc0] }
 0x63c   :  { %1157 = vmatpush1.bf16.msra.mxu0 %v2290_v2  ;;  %1669 = vmatpush3.bf16.msra.mxu1 %v1827_v46 }
 0x63d   :  { %1158 = vmatprep.subr.bf16.mxu0 %v1828_v48  ;;  %1670 = vmatprep.subr.bf16.mxu1 %v1923_v5 }
 0x63e   :  { %1188 = vmatprep.mubr.bf16.mxu0 %v1922_v3  ;;  %1684 = vmatprep.mubr.msk.bf16.mxu1 %vm1924_vm2, %v1923_v5  ;;  %v1835_v3 = vld [vmem:[#allocation5 + $0x48] ss:$12 sps:$4 sm:$0xff]  }
 0x640   :  { %1159 = vmatpush1.bf16.msra.mxu0 %v1829_v49  ;;  %1671 = vmatpush3.bf16.msra.mxu1 %v1830_v47 }
 0x641   :  { %1160 = vmatprep.subr.bf16.mxu0 %v1831_v50  ;;  %1672 = vmatprep.subr.bf16.mxu1 %v1923_v5 }
 0x644   :  { %1161 = vmatpush1.bf16.msra.mxu0 %v1832_v51  ;;  %1673 = vmatpush3.bf16.msra.mxu1 %v1833_v52 }
 0x645   :  { %1162 = vmatprep.subr.bf16.mxu0 %v1834_v8  ;;  %1674 = vmatprep.subr.bf16.mxu1 %v1923_v5 }
 0x648   :  { %1163 = vmatpush1.bf16.msra.mxu0 %v1835_v3  ;;  %1675 = vmatpush3.bf16.msra.mxu1 %v2064_v34  ;;  %v1841_v34 = vld [vmem:[#allocation5 + $0x90] ss:$12 sps:$4 sm:$0xff]  }
 0x649   :  { %1164 = vmatprep.subr.bf16.mxu0 %v1836_v53  ;;  %1676 = vmatprep.subr.bf16.mxu1 %v1923_v5  ;;  %v1150_v3 = vld [vmem:[#allocation2 + $0x20] sm:$0xc0]  ;;  %v1151_v53 = vld [vmem:[#allocation2 + $0x28] sm:$0xc0] }
 0x64c   :  { %1165 = vmatpush1.bf16.msra.mxu0 %v1837_v54  ;;  %1677 = vmatpush3.bf16.msra.mxu1 %v2072_v38 }
 0x64d   :  { %1166 = vmatprep.subr.bf16.mxu0 %v1838_v55  ;;  %1678 = vmatprep.subr.bf16.mxu1 %v1923_v5 }
 0x650   :  { %1167 = vmatpush1.bf16.msra.mxu0 %v1839_v56  ;;  %1679 = vmatpush3.bf16.msra.mxu1 %v2077_v39 }
 0x651   :  { %1168 = vmatprep.subr.bf16.mxu0 %v1840_v57  ;;  %1680 = vmatprep.subr.bf16.mxu1 %v1923_v5 }
 0x654   :  { %1169 = vmatpush1.bf16.msra.mxu0 %v1841_v34  ;;  %1681 = vmatpush3.bf16.msra.mxu1 %v2084_v40 }
 0x655   :  { %1170 = vmatprep.subr.bf16.mxu0 %v1842_v58  ;;  %1682 = vmatprep.subr.bf16.mxu1 %v1923_v5 }
 0x658   :  { %1171 = vmatpush1.bf16.msra.mxu0 %v2066_v35  ;;  %1683 = vmatpush3.bf16.msra.mxu1 %v2090_v41  ;;  %v1034_v35 = vld [vmem:[#allocation2 + $0x20] sm:$0x30] }
 0x659   :  { %1688 = vmatprep.subr.bf16.mxu0 %v1923_v5 }
 0x70e   :  { %v1074_v38 = vpop.f32.mrb[24].mxu0  ;;  %v1115_v39 = vpop.f32.mrb[32].mxu1 }
 0x70f   :  { %v1124_v59 = vrot.slane %v1074_v38, 4  ;;  %v1076_v60 = vpop.f32.mrb[25].mxu0  ;;  %v1666_v61 = vpop.f32.mrb[33].mxu1  ;;  %v1126_v18 = vrot.slane %v1115_v39, 4 }
 0x710   :  { %v1078_v63 = vpop.f32.mrb[26].mxu0  ;;  %v1118_v0 = vpop.f32.mrb[34].mxu1  ;;  %v1125_v14 = vrot.slane %v1076_v60, 4 }
 0x711   :  { %v1130_v1 = vadd.f32 %v1124_v59, %v1033_v62  ;;  %v1079_v40 = vpop.f32.mrb[27].mxu0  ;;  %v1667_v2 = vpop.f32.mrb[35].mxu1  ;;  %v1132_v22 = vadd.f32 %v1126_v18, %v1035_v20 }
 0x712   :  { %v1131_v41 = vadd.f32 %v1125_v14, %v1034_v35  ;;  %v1430_v2 = vld [vmem:[%s2378_s5] ss:$0 sm:$0xff] }
 0x713   :  { %v1133_v13 = vmul.f32 0.5, %v1130_v1  ;;  %v1138_v23 = vmul.f32 0.5, %v1132_v22 }
 0x715   :  { %1809 = vtanh.f32 %v1133_v13 }
 0x716   :  { %1811 = vtanh.f32 %v1131_v41 }
 0x717   :  { %1813 = vtanh.f32 %v1138_v23 }
 0x71f   :  { %v1810_v24 = vpop.eup %1809 }
 0x720   :  { %v1135_v25 = vadd.f32 1.0, %v1810_v24  ;;  %v1812_v29 = vpop.eup %1811 }
 0x721   :  { %v1814_v31 = vpop.eup %1813 }
 0x722   :  { %v1136_v26 = vmul.f32 0.5, %v1135_v25  ;;  %v1140_v32 = vadd.f32 1.0, %v1814_v31 }
 0x724   :  { %v1145_v28 = vmul.f32 %v1143_v27, %v1136_v26  ;;  %v1141_v33 = vmul.f32 0.5, %v1140_v32 }
 0x726   :  { %v1146_v30 = vadd.f32 %v1812_v29, %v1145_v28 }
 0x728   :  { %1815 = vtanh.f32 %v1146_v30  ;;  %v1259_v58 = vrot.slane %v1146_v30, 6 }
 0x732   :  { %v1816_v4 = vpop.eup %1815 }
 0x733   :  { %v1148_v6 = vmul.f32 %v1816_v4, %v1141_v33 }
 0x735   :  { %v1152_v7 = vpack.c.bf16 %v1148_v6, %v1148_v6 }
 0x737   :  { %v1154_v10 = vrot.slane %v1152_v7, 2 }
 0x739   :  { %1189 = vmatmul.mubr.bf16.vlgmr.msra.gmra.mrb[28].mxu0 %v1154_v10  ;;  %1685 = vmatmul.mubr.bf16.vlgmr.msra.gmra.mrb[36].mxu1 %v1154_v10 }
 0x73a   :  { %1704 = vmatprep.mubr.msk.bf16.mxu0 %vm1924_vm2, %v1923_v5  ;;  %1689 = vmatpush3.bf16.msra.mxu0 %v1753_v11 }
 0x73b   :  { %1690 = vmatprep.subr.bf16.mxu0 %v1923_v5 }
 0x73e   :  { %1691 = vmatpush3.bf16.msra.mxu0 %v1754_v12 }
 0x73f   :  { %1692 = vmatprep.subr.bf16.mxu0 %v1923_v5 }
 0x742   :  { %1693 = vmatpush3.bf16.msra.mxu0 %v1755_v15 }
 0x743   :  { %1694 = vmatprep.subr.bf16.mxu0 %v1923_v5 }
 0x746   :  { %1695 = vmatpush3.bf16.msra.mxu0 %v1756_v17 }
 0x747   :  { %1696 = vmatprep.subr.bf16.mxu0 %v1923_v5 }
 0x74a   :  { %1697 = vmatpush3.bf16.msra.mxu0 %v1757_v19 }
 0x74b   :  { %1698 = vmatprep.subr.bf16.mxu0 %v1923_v5 }
 0x74e   :  { %1699 = vmatpush3.bf16.msra.mxu0 %v1758_v21 }
 0x74f   :  { %1700 = vmatprep.subr.bf16.mxu0 %v1923_v5 }
 0x752   :  { %1701 = vmatpush3.bf16.msra.mxu0 %v1759_v9 }
 0x753   :  { %1702 = vmatprep.subr.bf16.mxu0 %v1923_v5 }
 0x756   :  { %1703 = vmatpush3.bf16.msra.mxu0 %v1760_v16 }
 0x80c   :  { %v1190_v36 = vpop.f32.mrb[28].mxu0  ;;  %v1231_v42 = vpop.f32.mrb[36].mxu1 }
 0x80d   :  { %v1240_v43 = vrot.slane %v1190_v36, 2  ;;  %v1192_v44 = vpop.f32.mrb[29].mxu0  ;;  %v1686_v37 = vpop.f32.mrb[37].mxu1  ;;  %v1242_v8 = vrot.slane %v1231_v42, 2 }
 0x80e   :  { %v1194_v46 = vpop.f32.mrb[30].mxu0  ;;  %v1234_v48 = vpop.f32.mrb[38].mxu1  ;;  %v1241_v52 = vrot.slane %v1192_v44, 2 }
 0x80f   :  { %v1246_v49 = vadd.f32 %v1240_v43, %v1149_v45  ;;  %v1195_v47 = vpop.f32.mrb[31].mxu0  ;;  %v1687_v50 = vpop.f32.mrb[39].mxu1  ;;  %v1248_v5 = vadd.f32 %v1242_v8, %v1151_v53 }
 0x810   :  { %v1247_v54 = vadd.f32 %v1241_v52, %v1150_v3 }
 0x811   :  { %v1249_v51 = vmul.f32 0.5, %v1246_v49  ;;  %v1254_v55 = vmul.f32 0.5, %v1248_v5 }
 0x813   :  { %1817 = vtanh.f32 %v1249_v51 }
 0x814   :  { %1819 = vtanh.f32 %v1247_v54 }
 0x815   :  { %1821 = vtanh.f32 %v1254_v55 }
 0x81d   :  { %v1818_v56 = vpop.eup %1817 }
 0x81e   :  { %v1251_v57 = vadd.f32 1.0, %v1818_v56  ;;  %v1820_v39 = vpop.eup %1819 }
 0x81f   :  { %v1822_v60 = vpop.eup %1821 }
 0x820   :  { %v1252_v34 = vmul.f32 0.5, %v1251_v57  ;;  %v1256_v61 = vadd.f32 1.0, %v1822_v60 }
 0x822   :  { %v1261_v38 = vmul.f32 %v1259_v58, %v1252_v34  ;;  %v1257_v62 = vmul.f32 0.5, %v1256_v61 }
 0x824   :  { %v1262_v59 = vadd.f32 %v1820_v39, %v1261_v38 }
 0x826   :  { %1823 = vtanh.f32 %v1262_v59  ;;  %1266 = vst [vmem:[#allocation4 - $0x6] sm:$0xc0] %v1262_v59 }
 0x830   :  { %v1824_v63 = vpop.eup %1823 }
 0x831   :  { %v1264_v0 = vmul.f32 %v1824_v63, %v1257_v62 }
 0x833   :  { %1265 = vst [vmem:[#allocation3 - $0x6] sm:$0xc0] %v1264_v0  ;;  %v1270_v1 = vpack.c.bf16 %v1264_v0, %v1264_v0 }
 0x835   :  { %v1295_v40 = vrot.slane %v1270_v1, 3 }
 0x837   :  { %1705 = vmatmul.mubr.bf16.vlgmr.msra.gmra.mrb[32].mxu0 %v1295_v40 }
 0x90a   :  { %v1379_v13 = vpop.f32.mrb[32].mxu0 }
 0x90b   :  { %v1380_v14 = vadd.f32 %v1430_v2, %v1379_v13  ;;  %v1706_v18 = vpop.f32.mrb[33].mxu0 }
 0x90c   :  { %v1382_v35 = vpop.f32.mrb[34].mxu0 }
 0x90d   :  { %1385 = vst [vmem:[#allocation10] sm:$0x3] %v1380_v14  ;;  %v1707_v20 = vpop.f32.mrb[35].mxu0 }
 0x90e   :  { %1898 = shalt.err (!%p1895_p6)
}
 0x90f   :  { %s1899_s5 = scalar_lea.hbm %s2379_s6, 32 }
 0x910   :  { %p1900_p7 = scmp.ne.s32.totalorder %s2379_s6, %s1899_s5  ;;  %p1903_p8 = scmp.lt.u32.totalorder %s1899_s5, %s2379_s6 }
 0x912   :  { %p1905_p9 = pnand %p1903_p8, %p1900_p7 }
 0x914   :  { %1908 = shalt.err (!%p1905_p9)
}
 0x915   :  { %1395 = dma.vmem_to_hbm [thread:$0]  %s1393_s29, 32, %s2379_s6, [#allocation7]  }
 0x916   :  { %1913 = dma.done.wait [#allocation7], 32  }
 0x917   :  { %1914 = vsyncadd [#allocation7], 4294967264 }
 0x918   :  { %1399 = vsyncpa [#allocation6], 1 }
 0x919   :  { %1400 = vsyncpa [#allocation9], 1 }
 0x91a   :  { %1401 = vsyncpa [#allocation7], 1 }

// kernel: tpu_custom_call.1
= control target key start
LH: loop header
LB: loop body
LE: loop exit
PB: predicated region body
PF: predicated region fallthrough
CT: control target
= control target key end

     0   :  { %11 = vsyncpa [#allocation6], 0  ;;  %s2373_s0 = inlined_call_operand.vmem [shape: bf16[1,16,4], index: 0, kind: input, shape index: {}]   ;;  %s2374_s1 = inlined_call_operand.vmem [shape: bf16[4,384], index: 1, kind: input, shape index: {}]   ;;  %s2375_s2 = inlined_call_operand.vmem [shape: f32[1,384], index: 2, kind: input, shape index: {}]   ;;  %s2376_s3 = inlined_call_operand.hbm [shape: bf16[128,384], index: 3, kind: input, shape index: {}]   ;;  %s2377_s4 = inlined_call_operand.hbm [shape: bf16[128,128], index: 4, kind: input, shape index: {}]   ;;  %s2378_s5 = inlined_call_operand.vmem [shape: f32[1,128], index: 5, kind: input, shape index: {}]   ;;  %s2379_s6 = inlined_call_operand.hbm [shape: f32[2,128], index: 6, kind: output, shape index: {}]  }
   0x1   :  { %12 = vsyncpa [#allocation9], 0 }
   0x2   :  { %13 = vsyncpa [#allocation7], 0  ;;  %s1915_s21 = smov [#allocation5]   ;;  %s1843_s25 = scalar_lea.hbm %s2376_s3, 3072 }
   0x3   :  { %s25_s22 = sshll.u32 %s1915_s21, 4  ;;  %p1844_p0 = scmp.ne.s32.totalorder %s2376_s3, %s1843_s25  ;;  %s26_s22 = int_to_ptr.vmem [resolvable:$true] %s25_s22 }
   0x4   :  { %p1847_p1 = scmp.lt.u32.totalorder %s1843_s25, %s2376_s3 }
   0x6   :  { %p1849_p2 = pnand %p1847_p1, %p1844_p0 }
   0x8   :  { %1852 = shalt.err (!%p1849_p2)
}
   0x9   :  { %s1853_s30 = scalar_lea.vmem %s26_s22, 3072  ;;  %p1858_p4 = scmp.lt.s32.totalorder %s26_s22, %s26_s22 }
   0xa   :  { %p1854_p3 = scmp.ne.s32.totalorder %s26_s22, %s1853_s30  ;;  %p1859_p5 = scmp.lt.s32.totalorder %s1853_s30, %s1853_s30 }
   0xc   :  { %p1860_p6 = por %p1859_p5, %p1858_p4 }
   0xe   :  { %p1861_p7 = pnand %p1860_p6, %p1854_p3 }
  0x10   :  { %1864 = shalt.err (!%p1861_p7)
}
  0x11   :  { %s1916_s7 = smov 192   ;;  %s1917_s8 = smov 12  }
  0x12   :  { %31 = dma.hbm_to_vmem [thread:$0]  %s2376_s3, 3072, %s26_s22, [#allocation6], %s1916_s7, %s1916_s7, %s1917_s8  }
  0x13   :  { %s1918_s11 = smov [#allocation8]   ;;  %s1865_s15 = scalar_lea.hbm %s2377_s4, 1024 }
  0x14   :  { %s37_s12 = sshll.u32 %s1918_s11, 4  ;;  %p1866_p8 = scmp.ne.s32.totalorder %s2377_s4, %s1865_s15  ;;  %s38_s12 = int_to_ptr.vmem [resolvable:$true] %s37_s12 }
  0x15   :  { %p1869_p9 = scmp.lt.u32.totalorder %s1865_s15, %s2377_s4 }
  0x17   :  { %p1871_p10 = pnand %p1869_p9, %p1866_p8 }
  0x19   :  { %1874 = shalt.err (!%p1871_p10)
}
  0x1a   :  { %s1875_s20 = scalar_lea.vmem %s38_s12, 1024  ;;  %p1880_p12 = scmp.lt.s32.totalorder %s38_s12, %s38_s12 }
  0x1b   :  { %p1876_p11 = scmp.ne.s32.totalorder %s38_s12, %s1875_s20  ;;  %p1881_p13 = scmp.lt.s32.totalorder %s1875_s20, %s1875_s20 }
  0x1d   :  { %p1882_p0 = por %p1881_p13, %p1880_p12 }
  0x1f   :  { %p1883_p1 = pnand %p1882_p0, %p1876_p11 }
  0x21   :  { %1886 = shalt.err (!%p1883_p1)
}
  0x22   :  { %s1919_s3 = smov 64   ;;  %s1920_s21 = smov 4  }
  0x23   :  { %43 = dma.hbm_to_vmem [thread:$0]  %s2377_s4, 1024, %s38_s12, [#allocation9], %s1919_s3, %s1919_s3, %s1920_s21  }
  0x24   :  { %1909 = dma.done.wait [#allocation6], 3072  }
  0x25   :  { %1910 = vsyncadd [#allocation6], 4294964224 }
  0x26   :  { %1911 = dma.done.wait [#allocation9], 1024  }
  0x27   :  { %1912 = vsyncadd [#allocation9], 4294966272  ;;  %v96_v0 = vlaneseq  ;;  %v1921_v1 = vmov 1983009808   ;;  %v1922_v3 = vmov 0   ;;  %v1923_v5 = vmov 0.0  }
  0x28   :  { %v119_v2 = vunpack.c.l.s4 %v1921_v1  ;;  %179 = vmatprep.mubr.bf16.mxu1 %v1922_v3  ;;  %403 = vmatprep.mubr.bf16.mxu0 %v1922_v3  ;;  %57 = vst [vmem:[#allocation3] sm:$0x3] %v1923_v5  ;;  %58 = vst [vmem:[#allocation4] sm:$0x3] %v1923_v5  ;;  %v1992_v8 = vld [vmem:[#allocation5 + $0x4] ss:$12 sps:$4 sm:$0xff]  }
  0x29   :  { %v1987_v4 = vshrl.u32 %v96_v0, 7  ;;  %v1994_v9 = vld [vmem:[#allocation5] ss:$12 sps:$4 sm:$0xff]   ;;  %v93_v10 = vld [vmem:[%s2374_s1] sm:$0x3f]  ;;  %vm137_vm0 = vcmask 1041408   ;;  %371 = vmatprep.subr.bf16.mxu0 %v1992_v8 }
  0x2a   :  { %v120_v6 = vunpack.c.0.s8 %v119_v2  ;;  %v117_v11 = vcombine.high %v93_v10, %v93_v10  ;;  %v2000_v13 = vld [vmem:[#allocation5 + $0x1c] ss:$12 sps:$4 sm:$0xff]   ;;  %372 = vmatpush1.bf16.msra.mxu0 %v1994_v9  ;;  %v2003_v14 = vld [vmem:[#allocation5 + $0x18] ss:$12 sps:$4 sm:$0xff]   ;;  %v2007_v18 = vld [vmem:[#allocation5 + $0x34] ss:$12 sps:$4 sm:$0xff]  }
  0x2b   :  { %373 = vmatprep.subr.bf16.mxu0 %v2000_v13  ;;  %v1726_v19 = vld [vmem:[%s2373_s0] sm:$0xff]   ;;  %vm133_vm1 = vcmask 31744   ;;  %v2014_v20 = vld [vmem:[#allocation5 + $0x30] ss:$12 sps:$4 sm:$0xff]   ;;  %v2019_v22 = vld [vmem:[#allocation5 + $0x4c] ss:$12 sps:$4 sm:$0xff]  }
  0x2c   :  { %v123_v7 = vsub.s32 %v120_v6, %v1987_v4  ;;  %v2023_v23 = vld [vmem:[#allocation5 + $0x48] ss:$12 sps:$4 sm:$0xff]   ;;  %vm1924_vm2 = vmmov 0   ;;  %v2028_v24 = vld [vmem:[#allocation5 + $0x64] ss:$12 sps:$4 sm:$0xff]   ;;  %v98_v42 = vsub.s32 0, %v1987_v4 }
  0x2d   :  { %v2032_v25 = vld [vmem:[#allocation5 + $0x8] ss:$12 sps:$4 sm:$0xff]   ;;  %v2034_v26 = vld [vmem:[#allocation5 + $0x60] ss:$12 sps:$4 sm:$0xff]   ;;  %v2044_v29 = vld [vmem:[#allocation5 + $0x78] ss:$12 sps:$4 sm:$0xff]  }
  0x2e   :  { %v124_v12 = vrot.slane %v93_v10, %v123_v7  ;;  %v131_v17 = vrot.slane %v117_v11, %v123_v7  ;;  %374 = vmatpush1.bf16.msra.mxu0 %v2003_v14  ;;  %v2037_v27 = vld [vmem:[#allocation5 + $0x7c] ss:$12 sps:$4 sm:$0xff]   ;;  %v2040_v28 = vld [vmem:[#allocation5 + $0x20] ss:$12 sps:$4 sm:$0xff]   ;;  %v2050_v31 = vld [vmem:[#allocation5 + $0x38] ss:$12 sps:$4 sm:$0xff]  }
  0x2f   :  { %375 = vmatprep.subr.bf16.mxu0 %v2007_v18  ;;  %v2048_v30 = vld [vmem:[#allocation5 + $0x94] ss:$12 sps:$4 sm:$0xff]   ;;  %v2052_v32 = vld [vmem:[#allocation5 + $0x90] ss:$12 sps:$4 sm:$0xff]   ;;  %v2056_v33 = vld [vmem:[#allocation5 + $0xac] ss:$12 sps:$4 sm:$0xff]  }
  0x30   :  { %v132_v15 = vcombine.high %v124_v12, %v124_v12  ;;  %v139_v16 = vsel %vm137_vm0, %v124_v12, 0  ;;  %v145_v21 = vsel %vm137_vm0, %v131_v17, 0  ;;  %v2064_v34 = vld [vmem:[#allocation5 + $0x50] ss:$12 sps:$4 sm:$0xff]   ;;  %v2066_v35 = vld [vmem:[#allocation5 + $0xa8] ss:$12 sps:$4 sm:$0xff]  }
  0x31   :  { %v237_v36 = vld [vmem:[#allocation3] sm:$0x3]  ;;  %v2072_v38 = vld [vmem:[#allocation5 + $0x68] ss:$12 sps:$4 sm:$0xff]   ;;  %v2077_v39 = vld [vmem:[#allocation5 + $0x80] ss:$12 sps:$4 sm:$0xff]  }
  0x32   :  { %1403 = vmatprep.subr.msk.bf16.mxu1 %vm137_vm0, %v132_v15  ;;  %376 = vmatpush1.bf16.msra.mxu0 %v2014_v20  ;;  %v242_v37 = vpack.c.bf16 %v237_v36, %v237_v36  ;;  %v2084_v40 = vld [vmem:[#allocation5 + $0x98] ss:$12 sps:$4 sm:$0xff]   ;;  %v2090_v41 = vld [vmem:[#allocation5 + $0xb0] ss:$12 sps:$4 sm:$0xff]   ;;  %v102_v44 = vsub.s32 1, %v1987_v4  ;;  %v106_v50 = vsub.s32 2, %v1987_v4 }
  0x33   :  { %148 = vmatpush1.bf16.msra.mxu1 %v139_v16  ;;  %377 = vmatprep.subr.bf16.mxu0 %v2019_v22  ;;  %v94_v43 = vld [vmem:[%s2375_s2] sm:$0x7]  ;;  %s1925_s28 = smov [#allocation10]  }
  0x34   :  { %1522 = vmatprep.subr.bf16.mxu1 %v1923_v5  ;;  %v99_v45 = vrot.slane %v94_v43, %v98_v42  ;;  %v103_v46 = vrot.slane %v94_v43, %v102_v44  ;;  %v107_v56 = vrot.slane %v94_v43, %v106_v50  ;;  %s1392_s29 = sshll.u32 %s1925_s28, 4  ;;  %s1393_s29 = int_to_ptr.vmem [resolvable:$true] %s1392_s29 }
  0x35   :  { %s1887_s30 = scalar_lea.vmem %s1393_s29, 32  ;;  %p1892_p3 = scmp.lt.s32.totalorder %s1393_s29, %s1393_s29 }
  0x36   :  { %1404 = vmatmul.mubr.msk.bf16.vlgmr.msra.gmra.mrb[0].mxu1 %vm133_vm1, %v1726_v19  ;;  %378 = vmatpush1.bf16.msra.mxu0 %v2023_v23  ;;  %p1888_p2 = scmp.ne.s32.totalorder %s1393_s29, %s1887_s30  ;;  %p1893_p4 = scmp.lt.s32.totalorder %s1887_s30, %s1887_s30 }
  0x37   :  { %1523 = vmatpush3.bf16.msra.mxu1 %v145_v21  ;;  %1524 = vmatprep.mubr.msk.bf16.mxu1 %vm1924_vm2, %v1923_v5 }
  0x38   :  { %1528 = vmatprep.subr.bf16.mxu1 %v1923_v5  ;;  %379 = vmatprep.subr.bf16.mxu0 %v2028_v24  ;;  %p1894_p5 = por %p1893_p4, %p1892_p3 }
  0x3a   :  { %380 = vmatpush1.bf16.msra.mxu0 %v2034_v26  ;;  %p1895_p6 = pnand %p1894_p5, %p1888_p2 }
  0x3b   :  { %381 = vmatprep.subr.bf16.mxu0 %v2037_v27 }
  0x3e   :  { %1525 = vmatmul.mubr.msk.bf16.vlgmr.msra.gmra.mrb[4].mxu1 %vm133_vm1, %v1726_v19  ;;  %382 = vmatpush1.bf16.msra.mxu0 %v2044_v29  ;;  %v238_v19 = vld [vmem:[#allocation4] sm:$0x3] }
  0x3f   :  { %1529 = vmatpush3.bf16.msra.mxu1 %v2032_v25  ;;  %1544 = vmatprep.mubr.msk.bf16.mxu1 %vm1924_vm2, %v1923_v5 }
  0x40   :  { %1530 = vmatprep.subr.bf16.mxu1 %v1923_v5  ;;  %383 = vmatprep.subr.bf16.mxu0 %v2048_v30 }
  0x42   :  { %384 = vmatpush1.bf16.msra.mxu0 %v2052_v32 }
  0x43   :  { %1531 = vmatpush3.bf16.msra.mxu1 %v2040_v28  ;;  %385 = vmatprep.subr.bf16.mxu0 %v2056_v33 }
  0x44   :  { %1532 = vmatprep.subr.bf16.mxu1 %v1923_v5 }
  0x46   :  { %386 = vmatpush1.bf16.msra.mxu0 %v2066_v35 }
  0x47   :  { %1533 = vmatpush3.bf16.msra.mxu1 %v2050_v31  ;;  %472 = vmatprep.subr.bf16.mxu0 %v1992_v8 }
  0x48   :  { %1534 = vmatprep.subr.bf16.mxu1 %v1923_v5 }
  0x49   :  { %404 = vmatmul.mubr.bf16.vlgmr.msra.gmra.mrb[0].mxu0 %v242_v37 }
  0x4a   :  { %473 = vmatpush1.bf16.msra.mxu0 %v1994_v9  ;;  %504 = vmatprep.mubr.bf16.mxu0 %v1922_v3 }
  0x4b   :  { %1535 = vmatpush3.bf16.msra.mxu1 %v2064_v34  ;;  %474 = vmatprep.subr.bf16.mxu0 %v2000_v13 }
  0x4c   :  { %1536 = vmatprep.subr.bf16.mxu1 %v1923_v5 }
  0x4e   :  { %475 = vmatpush1.bf16.msra.mxu0 %v2003_v14 }
  0x4f   :  { %1537 = vmatpush3.bf16.msra.mxu1 %v2072_v38  ;;  %476 = vmatprep.subr.bf16.mxu0 %v2007_v18 }
  0x50   :  { %1538 = vmatprep.subr.bf16.mxu1 %v1923_v5 }
  0x52   :  { %477 = vmatpush1.bf16.msra.mxu0 %v2014_v20 }
  0x53   :  { %1539 = vmatpush3.bf16.msra.mxu1 %v2077_v39  ;;  %478 = vmatprep.subr.bf16.mxu0 %v2019_v22 }
  0x54   :  { %1540 = vmatprep.subr.bf16.mxu1 %v1923_v5 }
  0x56   :  { %479 = vmatpush1.bf16.msra.mxu0 %v2023_v23 }
  0x57   :  { %1541 = vmatpush3.bf16.msra.mxu1 %v2084_v40  ;;  %480 = vmatprep.subr.bf16.mxu0 %v2028_v24 }
  0x58   :  { %1542 = vmatprep.subr.bf16.mxu1 %v1923_v5 }
  0x5a   :  { %481 = vmatpush1.bf16.msra.mxu0 %v2034_v26 }
  0x5b   :  { %1543 = vmatpush3.bf16.msra.mxu1 %v2090_v41  ;;  %482 = vmatprep.subr.bf16.mxu0 %v2037_v27 }
  0x5c   :  { %1548 = vmatprep.subr.bf16.mxu1 %v1923_v5 }
  0x5e   :  { %1545 = vmatmul.mubr.bf16.vlgmr.msra.gmra.mrb[8].mxu1 %v242_v37  ;;  %483 = vmatpush1.bf16.msra.mxu0 %v2044_v29 }
  0x5f   :  { %1549 = vmatpush3.bf16.msra.mxu1 %v2032_v25  ;;  %1564 = vmatprep.mubr.msk.bf16.mxu1 %vm1924_vm2, %v1923_v5 }
  0x60   :  { %1550 = vmatprep.subr.bf16.mxu1 %v1923_v5  ;;  %484 = vmatprep.subr.bf16.mxu0 %v2048_v30 }
  0x62   :  { %485 = vmatpush1.bf16.msra.mxu0 %v2052_v32 }
  0x63   :  { %1551 = vmatpush3.bf16.msra.mxu1 %v2040_v28  ;;  %486 = vmatprep.subr.bf16.mxu0 %v2056_v33 }
  0x64   :  { %1552 = vmatprep.subr.bf16.mxu1 %v1923_v5 }
  0x66   :  { %487 = vmatpush1.bf16.msra.mxu0 %v2066_v35 }
  0x67   :  { %1553 = vmatpush3.bf16.msra.mxu1 %v2050_v31  ;;  %588 = vmatprep.subr.bf16.mxu0 %v1992_v8 }
  0x68   :  { %1554 = vmatprep.subr.bf16.mxu1 %v1923_v5 }
  0x6b   :  { %1555 = vmatpush3.bf16.msra.mxu1 %v2064_v34 }
  0x6c   :  { %1556 = vmatprep.subr.bf16.mxu1 %v1923_v5 }
  0x6f   :  { %1557 = vmatpush3.bf16.msra.mxu1 %v2072_v38 }
  0x70   :  { %1558 = vmatprep.subr.bf16.mxu1 %v1923_v5 }
  0x73   :  { %1559 = vmatpush3.bf16.msra.mxu1 %v2077_v39 }
  0x74   :  { %1560 = vmatprep.subr.bf16.mxu1 %v1923_v5 }
  0x77   :  { %1561 = vmatpush3.bf16.msra.mxu1 %v2084_v40 }
  0x78   :  { %1562 = vmatprep.subr.bf16.mxu1 %v1923_v5 }
  0x7b   :  { %1563 = vmatpush3.bf16.msra.mxu1 %v2090_v41 }
  0x7c   :  { %1568 = vmatprep.subr.bf16.mxu1 %v1923_v5 }
 0x109   :  { %v181_v47 = vpop.f32.mrb[0].mxu1 }
 0x10a   :  { %v182_v48 = vadd.f32 %v181_v47, %v99_v45  ;;  %v183_v49 = vpop.f32.mrb[1].mxu1 }
 0x10b   :  { %v184_v51 = vadd.f32 %v183_v49, %v103_v46  ;;  %v185_v52 = vpop.f32.mrb[2].mxu1 }
 0x10c   :  { %231 = vst [vmem:[#allocation2] sm:$0xff] %v182_v48  ;;  %v186_v53 = vadd.f32 %v185_v52, %v99_v45  ;;  %v187_v54 = vpop.f32.mrb[3].mxu1 }
 0x10d   :  { %232 = vst [vmem:[#allocation2 + $0x8] sm:$0xff] %v184_v51  ;;  %v188_v55 = vadd.f32 %v187_v54, %v103_v46 }
 0x10e   :  { %234 = vst [vmem:[#allocation2 + $0x18] sm:$0xff] %v186_v53 }
 0x10f   :  { %235 = vst [vmem:[#allocation2 + $0x20] sm:$0xff] %v188_v55 }
 0x111   :  { %v224_v57 = vpop.f32.mrb[4].mxu1 }
 0x112   :  { %v225_v58 = vadd.f32 %v224_v57, %v107_v56  ;;  %v1526_v59 = vpop.f32.mrb[5].mxu1 }
 0x113   :  { %v227_v60 = vpop.f32.mrb[6].mxu1  ;;  %v239_v63 = vld [vmem:[#allocation2] sm:$0x3]  ;;  %v468_v59 = vld [vmem:[#allocation2] sm:$0xc] }
 0x114   :  { %233 = vst [vmem:[#allocation2 + $0x10] sm:$0xff] %v225_v58  ;;  %v228_v61 = vadd.f32 %v227_v60, %v107_v56  ;;  %v1527_v62 = vpop.f32.mrb[7].mxu1  ;;  %v240_v10 = vld [vmem:[#allocation2 + $0x8] sm:$0x3] }
 0x116   :  { %236 = vst [vmem:[#allocation2 + $0x28] sm:$0xff] %v228_v61 }
 0x11b   :  { %v241_v16 = vld [vmem:[#allocation2 + $0x10] sm:$0x3] }
 0x11c   :  { %v405_v0 = vpop.f32.mrb[0].mxu0 }
 0x11d   :  { %v452_v1 = vadd.f32 %v405_v0, %v239_v63  ;;  %v407_v2 = vpop.f32.mrb[1].mxu0 }
 0x11e   :  { %v409_v4 = vpop.f32.mrb[2].mxu0  ;;  %v453_v11 = vadd.f32 %v407_v2, %v240_v10 }
 0x11f   :  { %v455_v6 = vmul.f32 0.5, %v452_v1  ;;  %v410_v7 = vpop.f32.mrb[3].mxu0 }
 0x120   :  { %v470_v7 = vld [vmem:[#allocation2 + $0x10] sm:$0xc] }
 0x121   :  { %1761 = vtanh.f32 %v455_v6  ;;  %v469_v6 = vld [vmem:[#allocation2 + $0x8] sm:$0xc] }
 0x122   :  { %1763 = vtanh.f32 %v453_v11 }
 0x12b   :  { %v1762_v12 = vpop.eup %1761 }
 0x12c   :  { %v457_v15 = vadd.f32 1.0, %v1762_v12  ;;  %v1764_v46 = vpop.eup %1763 }
 0x12e   :  { %v458_v37 = vmul.f32 0.5, %v457_v15 }
 0x130   :  { %v464_v45 = vmul.f32 %v458_v37, %v238_v19 }
 0x131   :  { %v446_v17 = vpop.f32.mrb[8].mxu1 }
 0x132   :  { %v454_v21 = vadd.f32 %v446_v17, %v241_v16  ;;  %v1546_v36 = vpop.f32.mrb[9].mxu1  ;;  %v2131_v47 = vadd.f32 %v1764_v46, %v464_v45 }
 0x133   :  { %v449_v42 = vpop.f32.mrb[10].mxu1 }
 0x134   :  { %v460_v43 = vmul.f32 0.5, %v454_v21  ;;  %v1547_v44 = vpop.f32.mrb[11].mxu1  ;;  %v575_v19 = vrot.slane %v2131_v47, 6 }
 0x136   :  { %1765 = vtanh.f32 %v460_v43 }
 0x137   :  { %1767 = vtanh.f32 %v2131_v47 }
 0x140   :  { %v1766_v48 = vpop.eup %1765 }
 0x141   :  { %v462_v49 = vadd.f32 1.0, %v1766_v48  ;;  %v1768_v50 = vpop.eup %1767 }
 0x143   :  { %v463_v51 = vmul.f32 0.5, %v462_v49 }
 0x145   :  { %v467_v52 = vmul.f32 %v1768_v50, %v463_v51 }
 0x147   :  { %v471_v53 = vpack.c.bf16 %v467_v52, %v467_v52 }
 0x149   :  { %505 = vmatmul.mubr.bf16.vlgmr.msra.gmra.mrb[4].mxu0 %v471_v53  ;;  %1565 = vmatmul.mubr.bf16.vlgmr.msra.gmra.mrb[12].mxu1 %v471_v53 }
 0x14a   :  { %589 = vmatpush1.bf16.msra.mxu0 %v1994_v9  ;;  %1569 = vmatpush3.bf16.msra.mxu1 %v2032_v25 }
 0x14b   :  { %590 = vmatprep.subr.bf16.mxu0 %v2000_v13  ;;  %1570 = vmatprep.subr.bf16.mxu1 %v1923_v5 }
 0x14c   :  { %620 = vmatprep.mubr.bf16.mxu0 %v1922_v3  ;;  %1584 = vmatprep.mubr.msk.bf16.mxu1 %vm1924_vm2, %v1923_v5 }
 0x14e   :  { %591 = vmatpush1.bf16.msra.mxu0 %v2003_v14  ;;  %1571 = vmatpush3.bf16.msra.mxu1 %v2040_v28 }
 0x14f   :  { %592 = vmatprep.subr.bf16.mxu0 %v2007_v18  ;;  %1572 = vmatprep.subr.bf16.mxu1 %v1923_v5 }
 0x152   :  { %593 = vmatpush1.bf16.msra.mxu0 %v2014_v20  ;;  %1573 = vmatpush3.bf16.msra.mxu1 %v2050_v31 }
 0x153   :  { %594 = vmatprep.subr.bf16.mxu0 %v2019_v22  ;;  %1574 = vmatprep.subr.bf16.mxu1 %v1923_v5 }
 0x156   :  { %595 = vmatpush1.bf16.msra.mxu0 %v2023_v23  ;;  %1575 = vmatpush3.bf16.msra.mxu1 %v2064_v34 }
 0x157   :  { %596 = vmatprep.subr.bf16.mxu0 %v2028_v24  ;;  %1576 = vmatprep.subr.bf16.mxu1 %v1923_v5 }
 0x15a   :  { %597 = vmatpush1.bf16.msra.mxu0 %v2034_v26  ;;  %1577 = vmatpush3.bf16.msra.mxu1 %v2072_v38 }
 0x15b   :  { %598 = vmatprep.subr.bf16.mxu0 %v2037_v27  ;;  %1578 = vmatprep.subr.bf16.mxu1 %v1923_v5 }
 0x15e   :  { %599 = vmatpush1.bf16.msra.mxu0 %v2044_v29  ;;  %1579 = vmatpush3.bf16.msra.mxu1 %v2077_v39 }
 0x15f   :  { %600 = vmatprep.subr.bf16.mxu0 %v2048_v30  ;;  %1580 = vmatprep.subr.bf16.mxu1 %v1923_v5 }
 0x162   :  { %601 = vmatpush1.bf16.msra.mxu0 %v2052_v32  ;;  %1581 = vmatpush3.bf16.msra.mxu1 %v2084_v40 }
 0x163   :  { %602 = vmatprep.subr.bf16.mxu0 %v2056_v33  ;;  %1582 = vmatprep.subr.bf16.mxu1 %v1923_v5 }
 0x166   :  { %603 = vmatpush1.bf16.msra.mxu0 %v2066_v35  ;;  %1583 = vmatpush3.bf16.msra.mxu1 %v2090_v41 }
 0x167   :  { %704 = vmatprep.subr.bf16.mxu0 %v1992_v8  ;;  %1588 = vmatprep.subr.bf16.mxu1 %v1923_v5 }
 0x21c   :  { %v506_v54 = vpop.f32.mrb[4].mxu0  ;;  %v547_v55 = vpop.f32.mrb[12].mxu1 }
 0x21d   :  { %v556_v56 = vrot.slane %v506_v54, 6  ;;  %v508_v57 = vpop.f32.mrb[5].mxu0  ;;  %v1566_v58 = vpop.f32.mrb[13].mxu1  ;;  %v558_v4 = vrot.slane %v547_v55, 6  ;;  %v581_v54 = vld [vmem:[#allocation2] sm:$0x30] }
 0x21e   :  { %v510_v60 = vpop.f32.mrb[6].mxu0  ;;  %v550_v61 = vpop.f32.mrb[14].mxu1  ;;  %v557_v2 = vrot.slane %v508_v57, 6 }
 0x21f   :  { %v562_v62 = vadd.f32 %v556_v56, %v468_v59  ;;  %v511_v63 = vpop.f32.mrb[7].mxu0  ;;  %v1567_v0 = vpop.f32.mrb[15].mxu1  ;;  %v564_v11 = vadd.f32 %v558_v4, %v470_v7 }
 0x220   :  { %v563_v10 = vadd.f32 %v557_v2, %v469_v6  ;;  %v582_v63 = vld [vmem:[#allocation2 + $0x8] sm:$0x30]  ;;  %v583_v0 = vld [vmem:[#allocation2 + $0x10] sm:$0x30] }
 0x221   :  { %v565_v1 = vmul.f32 0.5, %v562_v62  ;;  %v570_v12 = vmul.f32 0.5, %v564_v11 }
 0x223   :  { %1769 = vtanh.f32 %v565_v1 }
 0x224   :  { %1771 = vtanh.f32 %v563_v10 }
 0x225   :  { %1773 = vtanh.f32 %v570_v12 }
 0x22d   :  { %v1770_v15 = vpop.eup %1769 }
 0x22e   :  { %v567_v16 = vadd.f32 1.0, %v1770_v15  ;;  %v1772_v36 = vpop.eup %1771 }
 0x22f   :  { %v1774_v42 = vpop.eup %1773 }
 0x230   :  { %v568_v17 = vmul.f32 0.5, %v567_v16  ;;  %v572_v43 = vadd.f32 1.0, %v1774_v42 }
 0x232   :  { %v577_v21 = vmul.f32 %v575_v19, %v568_v17  ;;  %v573_v44 = vmul.f32 0.5, %v572_v43 }
 0x234   :  { %v2170_v37 = vadd.f32 %v1772_v36, %v577_v21 }
 0x236   :  { %1775 = vtanh.f32 %v2170_v37  ;;  %v691_v11 = vrot.slane %v2170_v37, 6 }
 0x240   :  { %v1776_v45 = vpop.eup %1775 }
 0x241   :  { %v580_v46 = vmul.f32 %v1776_v45, %v573_v44 }
 0x243   :  { %v584_v48 = vpack.c.bf16 %v580_v46, %v580_v46 }
 0x245   :  { %v586_v49 = vrot.slane %v584_v48, 1 }
 0x247   :  { %621 = vmatmul.mubr.bf16.vlgmr.msra.gmra.mrb[8].mxu0 %v586_v49  ;;  %1585 = vmatmul.mubr.bf16.vlgmr.msra.gmra.mrb[16].mxu1 %v586_v49 }
 0x248   :  { %705 = vmatpush1.bf16.msra.mxu0 %v1994_v9  ;;  %1589 = vmatpush3.bf16.msra.mxu1 %v2032_v25 }
 0x249   :  { %706 = vmatprep.subr.bf16.mxu0 %v2000_v13  ;;  %1590 = vmatprep.subr.bf16.mxu1 %v1923_v5 }
 0x24a   :  { %736 = vmatprep.mubr.bf16.mxu0 %v1922_v3  ;;  %1604 = vmatprep.mubr.msk.bf16.mxu1 %vm1924_vm2, %v1923_v5 }
 0x24c   :  { %707 = vmatpush1.bf16.msra.mxu0 %v2003_v14  ;;  %1591 = vmatpush3.bf16.msra.mxu1 %v2040_v28 }
 0x24d   :  { %708 = vmatprep.subr.bf16.mxu0 %v2007_v18  ;;  %1592 = vmatprep.subr.bf16.mxu1 %v1923_v5 }
 0x250   :  { %709 = vmatpush1.bf16.msra.mxu0 %v2014_v20  ;;  %1593 = vmatpush3.bf16.msra.mxu1 %v2050_v31 }
 0x251   :  { %710 = vmatprep.subr.bf16.mxu0 %v2019_v22  ;;  %1594 = vmatprep.subr.bf16.mxu1 %v1923_v5 }
 0x254   :  { %711 = vmatpush1.bf16.msra.mxu0 %v2023_v23  ;;  %1595 = vmatpush3.bf16.msra.mxu1 %v2064_v34 }
 0x255   :  { %712 = vmatprep.subr.bf16.mxu0 %v2028_v24  ;;  %1596 = vmatprep.subr.bf16.mxu1 %v1923_v5 }
 0x258   :  { %713 = vmatpush1.bf16.msra.mxu0 %v2034_v26  ;;  %1597 = vmatpush3.bf16.msra.mxu1 %v2072_v38 }
 0x259   :  { %714 = vmatprep.subr.bf16.mxu0 %v2037_v27  ;;  %1598 = vmatprep.subr.bf16.mxu1 %v1923_v5 }
 0x25c   :  { %715 = vmatpush1.bf16.msra.mxu0 %v2044_v29  ;;  %1599 = vmatpush3.bf16.msra.mxu1 %v2077_v39 }
 0x25d   :  { %716 = vmatprep.subr.bf16.mxu0 %v2048_v30  ;;  %1600 = vmatprep.subr.bf16.mxu1 %v1923_v5 }
 0x260   :  { %717 = vmatpush1.bf16.msra.mxu0 %v2052_v32  ;;  %1601 = vmatpush3.bf16.msra.mxu1 %v2084_v40 }
 0x261   :  { %718 = vmatprep.subr.bf16.mxu0 %v2056_v33  ;;  %1602 = vmatprep.subr.bf16.mxu1 %v1923_v5 }
 0x264   :  { %719 = vmatpush1.bf16.msra.mxu0 %v2066_v35  ;;  %1603 = vmatpush3.bf16.msra.mxu1 %v2090_v41 }
 0x265   :  { %820 = vmatprep.subr.bf16.mxu0 %v1992_v8  ;;  %1608 = vmatprep.subr.bf16.mxu1 %v1923_v5 }
 0x31a   :  { %v622_v47 = vpop.f32.mrb[8].mxu0  ;;  %v663_v50 = vpop.f32.mrb[16].mxu1 }
 0x31b   :  { %v672_v51 = vrot.slane %v622_v47, 4  ;;  %v624_v52 = vpop.f32.mrb[9].mxu0  ;;  %v1586_v53 = vpop.f32.mrb[17].mxu1  ;;  %v674_v62 = vrot.slane %v663_v50, 4  ;;  %v697_v47 = vld [vmem:[#allocation2] sm:$0xc0] }
 0x31c   :  { %v626_v55 = vpop.f32.mrb[10].mxu0  ;;  %v666_v56 = vpop.f32.mrb[18].mxu1  ;;  %v673_v61 = vrot.slane %v624_v52, 4 }
 0x31d   :  { %v678_v57 = vadd.f32 %v672_v51, %v581_v54  ;;  %v627_v58 = vpop.f32.mrb[11].mxu0  ;;  %v1587_v59 = vpop.f32.mrb[19].mxu1  ;;  %v680_v2 = vadd.f32 %v674_v62, %v583_v0 }
 0x31e   :  { %v679_v1 = vadd.f32 %v673_v61, %v582_v63  ;;  %v698_v58 = vld [vmem:[#allocation2 + $0x8] sm:$0xc0]  ;;  %v699_v59 = vld [vmem:[#allocation2 + $0x10] sm:$0xc0] }
 0x31f   :  { %v681_v60 = vmul.f32 0.5, %v678_v57  ;;  %v686_v4 = vmul.f32 0.5, %v680_v2 }
 0x321   :  { %1777 = vtanh.f32 %v681_v60 }
 0x322   :  { %1779 = vtanh.f32 %v679_v1 }
 0x323   :  { %1781 = vtanh.f32 %v686_v4 }
 0x32b   :  { %v1778_v6 = vpop.eup %1777 }
 0x32c   :  { %v683_v7 = vadd.f32 1.0, %v1778_v6  ;;  %v1780_v15 = vpop.eup %1779 }
 0x32d   :  { %v1782_v17 = vpop.eup %1781 }
 0x32e   :  { %v684_v10 = vmul.f32 0.5, %v683_v7  ;;  %v688_v19 = vadd.f32 1.0, %v1782_v17 }
 0x330   :  { %v693_v12 = vmul.f32 %v691_v11, %v684_v10  ;;  %v689_v21 = vmul.f32 0.5, %v688_v19 }
 0x332   :  { %v2209_v16 = vadd.f32 %v1780_v15, %v693_v12 }
 0x334   :  { %1783 = vtanh.f32 %v2209_v16  ;;  %v807_v2 = vrot.slane %v2209_v16, 6 }
 0x33e   :  { %v1784_v36 = vpop.eup %1783 }
 0x33f   :  { %v696_v42 = vmul.f32 %v1784_v36, %v689_v21 }
 0x341   :  { %v700_v43 = vpack.c.bf16 %v696_v42, %v696_v42 }
 0x343   :  { %v702_v44 = vrot.slane %v700_v43, 2 }
 0x345   :  { %737 = vmatmul.mubr.bf16.vlgmr.msra.gmra.mrb[12].mxu0 %v702_v44  ;;  %1605 = vmatmul.mubr.bf16.vlgmr.msra.gmra.mrb[20].mxu1 %v702_v44 }
 0x346   :  { %821 = vmatpush1.bf16.msra.mxu0 %v1994_v9  ;;  %1609 = vmatpush3.bf16.msra.mxu1 %v2032_v25 }
 0x347   :  { %822 = vmatprep.subr.bf16.mxu0 %v2000_v13  ;;  %1610 = vmatprep.subr.bf16.mxu1 %v1923_v5 }
 0x348   :  { %852 = vmatprep.mubr.bf16.mxu0 %v1922_v3  ;;  %1624 = vmatprep.mubr.msk.bf16.mxu1 %vm1924_vm2, %v1923_v5 }
 0x34a   :  { %823 = vmatpush1.bf16.msra.mxu0 %v2003_v14  ;;  %1611 = vmatpush3.bf16.msra.mxu1 %v2040_v28 }
 0x34b   :  { %824 = vmatprep.subr.bf16.mxu0 %v2007_v18  ;;  %1612 = vmatprep.subr.bf16.mxu1 %v1923_v5 }
 0x34e   :  { %825 = vmatpush1.bf16.msra.mxu0 %v2014_v20  ;;  %1613 = vmatpush3.bf16.msra.mxu1 %v2050_v31 }
 0x34f   :  { %826 = vmatprep.subr.bf16.mxu0 %v2019_v22  ;;  %1614 = vmatprep.subr.bf16.mxu1 %v1923_v5 }
 0x352   :  { %827 = vmatpush1.bf16.msra.mxu0 %v2023_v23  ;;  %1615 = vmatpush3.bf16.msra.mxu1 %v2064_v34 }
 0x353   :  { %828 = vmatprep.subr.bf16.mxu0 %v2028_v24  ;;  %1616 = vmatprep.subr.bf16.mxu1 %v1923_v5 }
 0x356   :  { %829 = vmatpush1.bf16.msra.mxu0 %v2034_v26  ;;  %1617 = vmatpush3.bf16.msra.mxu1 %v2072_v38 }
 0x357   :  { %830 = vmatprep.subr.bf16.mxu0 %v2037_v27  ;;  %1618 = vmatprep.subr.bf16.mxu1 %v1923_v5 }
 0x35a   :  { %831 = vmatpush1.bf16.msra.mxu0 %v2044_v29  ;;  %1619 = vmatpush3.bf16.msra.mxu1 %v2077_v39 }
 0x35b   :  { %832 = vmatprep.subr.bf16.mxu0 %v2048_v30  ;;  %1620 = vmatprep.subr.bf16.mxu1 %v1923_v5 }
 0x35e   :  { %833 = vmatpush1.bf16.msra.mxu0 %v2052_v32  ;;  %1621 = vmatpush3.bf16.msra.mxu1 %v2084_v40 }
 0x35f   :  { %834 = vmatprep.subr.bf16.mxu0 %v2056_v33  ;;  %1622 = vmatprep.subr.bf16.mxu1 %v1923_v5 }
 0x362   :  { %835 = vmatpush1.bf16.msra.mxu0 %v2066_v35  ;;  %1623 = vmatpush3.bf16.msra.mxu1 %v2090_v41 }
 0x363   :  { %924 = vmatprep.subr.bf16.mxu0 %v1992_v8  ;;  %1628 = vmatprep.subr.bf16.mxu1 %v1923_v5 }
 0x418   :  { %v738_v37 = vpop.f32.mrb[12].mxu0  ;;  %v779_v45 = vpop.f32.mrb[20].mxu1 }
 0x419   :  { %v788_v46 = vrot.slane %v738_v37, 2  ;;  %v740_v48 = vpop.f32.mrb[13].mxu0  ;;  %v1606_v49 = vpop.f32.mrb[21].mxu1  ;;  %v790_v57 = vrot.slane %v779_v45, 2 }
 0x41a   :  { %v742_v50 = vpop.f32.mrb[14].mxu0  ;;  %v782_v51 = vpop.f32.mrb[22].mxu1  ;;  %v789_v56 = vrot.slane %v740_v48, 2 }
 0x41b   :  { %v794_v52 = vadd.f32 %v788_v46, %v697_v47  ;;  %v743_v53 = vpop.f32.mrb[15].mxu0  ;;  %v1607_v54 = vpop.f32.mrb[23].mxu1  ;;  %v796_v61 = vadd.f32 %v790_v57, %v699_v59  ;;  %v814_v47 = vld [vmem:[#allocation2 + $0x20] sm:$0x3]  ;;  %v815_v50 = vld [vmem:[#allocation2 + $0x28] sm:$0x3] }
 0x41c   :  { %v795_v60 = vadd.f32 %v789_v56, %v698_v58 }
 0x41d   :  { %v797_v55 = vmul.f32 0.5, %v794_v52  ;;  %v802_v62 = vmul.f32 0.5, %v796_v61 }
 0x41f   :  { %1785 = vtanh.f32 %v797_v55 }
 0x420   :  { %1787 = vtanh.f32 %v795_v60 }
 0x421   :  { %1789 = vtanh.f32 %v802_v62 }
 0x429   :  { %v1786_v63 = vpop.eup %1785 }
 0x42a   :  { %v799_v0 = vadd.f32 1.0, %v1786_v63  ;;  %v1788_v6 = vpop.eup %1787 }
 0x42b   :  { %v1790_v10 = vpop.eup %1789 }
 0x42c   :  { %v800_v1 = vmul.f32 0.5, %v799_v0  ;;  %v804_v11 = vadd.f32 1.0, %v1790_v10 }
 0x42e   :  { %v809_v4 = vmul.f32 %v807_v2, %v800_v1  ;;  %v805_v12 = vmul.f32 0.5, %v804_v11  ;;  %v2290_v2 = vld [vmem:[#allocation5] ss:$12 sps:$4 sm:$0xff]  }
 0x430   :  { %v2248_v7 = vadd.f32 %v1788_v6, %v809_v4  ;;  %v922_v4 = vld [vmem:[#allocation2 + $0x28] sm:$0xc] }
 0x432   :  { %1791 = vtanh.f32 %v2248_v7  ;;  %v914_v56 = vrot.slane %v2248_v7, 6 }
 0x43c   :  { %v1792_v15 = vpop.eup %1791 }
 0x43d   :  { %v812_v17 = vmul.f32 %v1792_v15, %v805_v12 }
 0x43f   :  { %v816_v19 = vpack.c.bf16 %v812_v17, %v812_v17 }
 0x441   :  { %v818_v21 = vrot.slane %v816_v19, 3 }
 0x443   :  { %853 = vmatmul.mubr.bf16.vlgmr.msra.gmra.mrb[16].mxu0 %v818_v21  ;;  %1625 = vmatmul.mubr.bf16.vlgmr.msra.gmra.mrb[24].mxu1 %v818_v21 }
 0x444   :  { %925 = vmatpush1.bf16.msra.mxu0 %v1994_v9  ;;  %1629 = vmatpush3.bf16.msra.mxu1 %v2032_v25  ;;  %v813_v9 = vld [vmem:[#allocation2 + $0x18] sm:$0x3] }
 0x445   :  { %926 = vmatprep.subr.bf16.mxu0 %v2000_v13  ;;  %1630 = vmatprep.subr.bf16.mxu1 %v1923_v5 }
 0x446   :  { %956 = vmatprep.mubr.bf16.mxu0 %v1922_v3  ;;  %1644 = vmatprep.mubr.msk.bf16.mxu1 %vm1924_vm2, %v1923_v5 }
 0x448   :  { %927 = vmatpush1.bf16.msra.mxu0 %v2003_v14  ;;  %1631 = vmatpush3.bf16.msra.mxu1 %v2040_v28 }
 0x449   :  { %928 = vmatprep.subr.bf16.mxu0 %v2007_v18  ;;  %1632 = vmatprep.subr.bf16.mxu1 %v1923_v5 }
 0x44c   :  { %929 = vmatpush1.bf16.msra.mxu0 %v2014_v20  ;;  %1633 = vmatpush3.bf16.msra.mxu1 %v2050_v31 }
 0x44d   :  { %930 = vmatprep.subr.bf16.mxu0 %v2019_v22  ;;  %1634 = vmatprep.subr.bf16.mxu1 %v1923_v5 }
 0x450   :  { %931 = vmatpush1.bf16.msra.mxu0 %v2023_v23  ;;  %1635 = vmatpush3.bf16.msra.mxu1 %v2064_v34 }
 0x451   :  { %932 = vmatprep.subr.bf16.mxu0 %v2028_v24  ;;  %1636 = vmatprep.subr.bf16.mxu1 %v1923_v5 }
 0x454   :  { %933 = vmatpush1.bf16.msra.mxu0 %v2034_v26  ;;  %1637 = vmatpush3.bf16.msra.mxu1 %v2072_v38 }
 0x455   :  { %934 = vmatprep.subr.bf16.mxu0 %v2037_v27  ;;  %1638 = vmatprep.subr.bf16.mxu1 %v1923_v5 }
 0x458   :  { %935 = vmatpush1.bf16.msra.mxu0 %v2044_v29  ;;  %1639 = vmatpush3.bf16.msra.mxu1 %v2077_v39 }
 0x459   :  { %936 = vmatprep.subr.bf16.mxu0 %v2048_v30  ;;  %1640 = vmatprep.subr.bf16.mxu1 %v1923_v5 }
 0x45c   :  { %937 = vmatpush1.bf16.msra.mxu0 %v2052_v32  ;;  %1641 = vmatpush3.bf16.msra.mxu1 %v2084_v40 }
 0x45d   :  { %938 = vmatprep.subr.bf16.mxu0 %v2056_v33  ;;  %1642 = vmatprep.subr.bf16.mxu1 %v1923_v5 }
 0x460   :  { %939 = vmatpush1.bf16.msra.mxu0 %v2066_v35  ;;  %1643 = vmatpush3.bf16.msra.mxu1 %v2090_v41 }
 0x461   :  { %1040 = vmatprep.subr.bf16.mxu0 %v1992_v8  ;;  %1648 = vmatprep.subr.bf16.mxu1 %v1923_v5 }
 0x516   :  { %v854_v16 = vpop.f32.mrb[16].mxu0  ;;  %v895_v36 = vpop.f32.mrb[24].mxu1 }
 0x517   :  { %v901_v42 = vadd.f32 %v854_v16, %v813_v9  ;;  %v856_v43 = vpop.f32.mrb[17].mxu0  ;;  %v1626_v44 = vpop.f32.mrb[25].mxu1  ;;  %v903_v52 = vadd.f32 %v895_v36, %v815_v50  ;;  %v1831_v50 = vld [vmem:[#allocation5 + $0x34] ss:$12 sps:$4 sm:$0xff]  }
 0x518   :  { %v858_v37 = vpop.f32.mrb[18].mxu0  ;;  %v898_v45 = vpop.f32.mrb[26].mxu1  ;;  %v902_v51 = vadd.f32 %v856_v43, %v814_v47  ;;  %v1830_v47 = vld [vmem:[#allocation5 + $0x20] ss:$12 sps:$4 sm:$0xff]  }
 0x519   :  { %v904_v46 = vmul.f32 0.5, %v901_v42  ;;  %v859_v48 = vpop.f32.mrb[19].mxu0  ;;  %v1627_v49 = vpop.f32.mrb[27].mxu1  ;;  %v909_v8 = vmul.f32 0.5, %v903_v52  ;;  %v1833_v52 = vld [vmem:[#allocation5 + $0x38] ss:$12 sps:$4 sm:$0xff]  }
 0x51a   :  { %v1828_v48 = vld [vmem:[#allocation5 + $0x1c] ss:$12 sps:$4 sm:$0xff]   ;;  %v1829_v49 = vld [vmem:[#allocation5 + $0x18] ss:$12 sps:$4 sm:$0xff]  }
 0x51b   :  { %1793 = vtanh.f32 %v904_v46  ;;  %v1827_v46 = vld [vmem:[#allocation5 + $0x8] ss:$12 sps:$4 sm:$0xff]  }
 0x51c   :  { %1795 = vtanh.f32 %v902_v51  ;;  %v1832_v51 = vld [vmem:[#allocation5 + $0x30] ss:$12 sps:$4 sm:$0xff]  }
 0x51d   :  { %1797 = vtanh.f32 %v909_v8  ;;  %v1834_v8 = vld [vmem:[#allocation5 + $0x4c] ss:$12 sps:$4 sm:$0xff]  }
 0x525   :  { %v1794_v53 = vpop.eup %1793 }
 0x526   :  { %v906_v54 = vadd.f32 1.0, %v1794_v53  ;;  %v1796_v58 = vpop.eup %1795  ;;  %v1836_v53 = vld [vmem:[#allocation5 + $0x64] ss:$12 sps:$4 sm:$0xff]  }
 0x527   :  { %v1798_v60 = vpop.eup %1797 }
 0x528   :  { %v907_v55 = vmul.f32 0.5, %v906_v54  ;;  %v911_v61 = vadd.f32 1.0, %v1798_v60  ;;  %v1837_v54 = vld [vmem:[#allocation5 + $0x60] ss:$12 sps:$4 sm:$0xff]  }
 0x52a   :  { %v916_v57 = vmul.f32 %v914_v56, %v907_v55  ;;  %v912_v62 = vmul.f32 0.5, %v911_v61  ;;  %v1838_v55 = vld [vmem:[#allocation5 + $0x7c] ss:$12 sps:$4 sm:$0xff]   ;;  %v1839_v56 = vld [vmem:[#allocation5 + $0x78] ss:$12 sps:$4 sm:$0xff]  }
 0x52c   :  { %v2287_v59 = vadd.f32 %v1796_v58, %v916_v57  ;;  %v1840_v57 = vld [vmem:[#allocation5 + $0x94] ss:$12 sps:$4 sm:$0xff]   ;;  %v1842_v58 = vld [vmem:[#allocation5 + $0xac] ss:$12 sps:$4 sm:$0xff]  }
 0x52e   :  { %1799 = vtanh.f32 %v2287_v59  ;;  %v1027_v17 = vrot.slane %v2287_v59, 6 }
 0x538   :  { %v1800_v63 = vpop.eup %1799 }
 0x539   :  { %v919_v0 = vmul.f32 %v1800_v63, %v912_v62  ;;  %v1033_v62 = vld [vmem:[#allocation2 + $0x18] sm:$0x30] }
 0x53b   :  { %v923_v1 = vpack.c.bf16 %v919_v0, %v919_v0 }
 0x53d   :  { %957 = vmatmul.mubr.bf16.vlgmr.msra.gmra.mrb[20].mxu0 %v923_v1  ;;  %1645 = vmatmul.mubr.bf16.vlgmr.msra.gmra.mrb[28].mxu1 %v923_v1 }
 0x53e   :  { %1041 = vmatpush1.bf16.msra.mxu0 %v2290_v2  ;;  %1649 = vmatpush3.bf16.msra.mxu1 %v2032_v25 }
 0x53f   :  { %1042 = vmatprep.subr.bf16.mxu0 %v2000_v13  ;;  %1650 = vmatprep.subr.bf16.mxu1 %v1923_v5  ;;  %v1826_v13 = vld [vmem:[#allocation5 + $0x4] ss:$12 sps:$4 sm:$0xff]  }
 0x540   :  { %1072 = vmatprep.mubr.bf16.mxu0 %v1922_v3  ;;  %1664 = vmatprep.mubr.msk.bf16.mxu1 %vm1924_vm2, %v1923_v5 }
 0x542   :  { %1043 = vmatpush1.bf16.msra.mxu0 %v2003_v14  ;;  %1651 = vmatpush3.bf16.msra.mxu1 %v2040_v28 }
 0x543   :  { %1044 = vmatprep.subr.bf16.mxu0 %v2007_v18  ;;  %1652 = vmatprep.subr.bf16.mxu1 %v1923_v5 }
 0x546   :  { %1045 = vmatpush1.bf16.msra.mxu0 %v2014_v20  ;;  %1653 = vmatpush3.bf16.msra.mxu1 %v2050_v31 }
 0x547   :  { %1046 = vmatprep.subr.bf16.mxu0 %v2019_v22  ;;  %1654 = vmatprep.subr.bf16.mxu1 %v1923_v5 }
 0x54a   :  { %1047 = vmatpush1.bf16.msra.mxu0 %v2023_v23  ;;  %1655 = vmatpush3.bf16.msra.mxu1 %v2064_v34 }
 0x54b   :  { %1048 = vmatprep.subr.bf16.mxu0 %v2028_v24  ;;  %1656 = vmatprep.subr.bf16.mxu1 %v1923_v5  ;;  %v920_v24 = vld [vmem:[#allocation2 + $0x18] sm:$0xc] }
 0x54e   :  { %1049 = vmatpush1.bf16.msra.mxu0 %v2034_v26  ;;  %1657 = vmatpush3.bf16.msra.mxu1 %v2072_v38 }
 0x54f   :  { %1050 = vmatprep.subr.bf16.mxu0 %v2037_v27  ;;  %1658 = vmatprep.subr.bf16.mxu1 %v1923_v5 }
 0x552   :  { %1051 = vmatpush1.bf16.msra.mxu0 %v2044_v29  ;;  %1659 = vmatpush3.bf16.msra.mxu1 %v2077_v39 }
 0x553   :  { %1052 = vmatprep.subr.bf16.mxu0 %v2048_v30  ;;  %1660 = vmatprep.subr.bf16.mxu1 %v1923_v5 }
 0x556   :  { %1053 = vmatpush1.bf16.msra.mxu0 %v2052_v32  ;;  %1661 = vmatpush3.bf16.msra.mxu1 %v2084_v40 }
 0x557   :  { %1054 = vmatprep.subr.bf16.mxu0 %v2056_v33  ;;  %1662 = vmatprep.subr.bf16.mxu1 %v1923_v5  ;;  %v921_v33 = vld [vmem:[#allocation2 + $0x20] sm:$0xc] }
 0x55a   :  { %1055 = vmatpush1.bf16.msra.mxu0 %v2066_v35  ;;  %1663 = vmatpush3.bf16.msra.mxu1 %v2090_v41 }
 0x55b   :  { %1156 = vmatprep.subr.bf16.mxu0 %v1826_v13  ;;  %1668 = vmatprep.subr.bf16.mxu1 %v1923_v5 }
 0x610   :  { %v958_v14 = vpop.f32.mrb[20].mxu0  ;;  %v999_v18 = vpop.f32.mrb[28].mxu1 }
 0x611   :  { %v1008_v20 = vrot.slane %v958_v14, 6  ;;  %v960_v22 = vpop.f32.mrb[21].mxu0  ;;  %v1646_v23 = vpop.f32.mrb[29].mxu1  ;;  %v1010_v32 = vrot.slane %v999_v18, 6 }
 0x612   :  { %v962_v25 = vpop.f32.mrb[22].mxu0  ;;  %v1002_v26 = vpop.f32.mrb[30].mxu1  ;;  %v1009_v31 = vrot.slane %v960_v22, 6 }
 0x613   :  { %v1014_v27 = vadd.f32 %v1008_v20, %v920_v24  ;;  %v963_v28 = vpop.f32.mrb[23].mxu0  ;;  %v1647_v29 = vpop.f32.mrb[31].mxu1  ;;  %v1016_v7 = vadd.f32 %v1010_v32, %v922_v4  ;;  %v1035_v20 = vld [vmem:[#allocation2 + $0x28] sm:$0x30] }
 0x614   :  { %v1015_v6 = vadd.f32 %v1009_v31, %v921_v33 }
 0x615   :  { %v1017_v30 = vmul.f32 0.5, %v1014_v27  ;;  %v1022_v10 = vmul.f32 0.5, %v1016_v7 }
 0x617   :  { %1801 = vtanh.f32 %v1017_v30 }
 0x618   :  { %1803 = vtanh.f32 %v1015_v6 }
 0x619   :  { %1805 = vtanh.f32 %v1022_v10 }
 0x621   :  { %v1802_v11 = vpop.eup %1801 }
 0x622   :  { %v1019_v12 = vadd.f32 1.0, %v1802_v11  ;;  %v1804_v21 = vpop.eup %1803  ;;  %v1753_v11 = vld [vmem:[#allocation8] sm:$0xff]  }
 0x623   :  { %v1806_v16 = vpop.eup %1805 }
 0x624   :  { %v1020_v15 = vmul.f32 0.5, %v1019_v12  ;;  %v1024_v36 = vadd.f32 1.0, %v1806_v16  ;;  %v1754_v12 = vld [vmem:[#allocation8 + $0x8] sm:$0xff]   ;;  %v1760_v16 = vld [vmem:[#allocation8 + $0x38] sm:$0xff]  }
 0x626   :  { %v1029_v19 = vmul.f32 %v1027_v17, %v1020_v15  ;;  %v1025_v42 = vmul.f32 0.5, %v1024_v36  ;;  %v1755_v15 = vld [vmem:[#allocation8 + $0x10] sm:$0xff]   ;;  %v1756_v17 = vld [vmem:[#allocation8 + $0x18] sm:$0xff]  }
 0x628   :  { %v2327_v9 = vadd.f32 %v1804_v21, %v1029_v19  ;;  %v1757_v19 = vld [vmem:[#allocation8 + $0x20] sm:$0xff]   ;;  %v1758_v21 = vld [vmem:[#allocation8 + $0x28] sm:$0xff]  }
 0x62a   :  { %1807 = vtanh.f32 %v2327_v9  ;;  %v1143_v27 = vrot.slane %v2327_v9, 6  ;;  %v1759_v9 = vld [vmem:[#allocation8 + $0x30] sm:$0xff]  }
 0x634   :  { %v1808_v43 = vpop.eup %1807 }
 0x635   :  { %v1032_v44 = vmul.f32 %v1808_v43, %v1025_v42 }
 0x637   :  { %v1036_v37 = vpack.c.bf16 %v1032_v44, %v1032_v44 }
 0x639   :  { %v1038_v45 = vrot.slane %v1036_v37, 1 }
 0x63b   :  { %1073 = vmatmul.mubr.bf16.vlgmr.msra.gmra.mrb[24].mxu0 %v1038_v45  ;;  %1665 = vmatmul.mubr.bf16.vlgmr.msra.gmra.mrb[32].mxu1 %v1038_v45  ;;  %v1149_v45 = vld [vmem:[#allocation2 + $0x18] sm:$0xc0] }
 0x63c   :  { %1157 = vmatpush1.bf16.msra.mxu0 %v2290_v2  ;;  %1669 = vmatpush3.bf16.msra.mxu1 %v1827_v46 }
 0x63d   :  { %1158 = vmatprep.subr.bf16.mxu0 %v1828_v48  ;;  %1670 = vmatprep.subr.bf16.mxu1 %v1923_v5 }
 0x63e   :  { %1188 = vmatprep.mubr.bf16.mxu0 %v1922_v3  ;;  %1684 = vmatprep.mubr.msk.bf16.mxu1 %vm1924_vm2, %v1923_v5  ;;  %v1835_v3 = vld [vmem:[#allocation5 + $0x48] ss:$12 sps:$4 sm:$0xff]  }
 0x640   :  { %1159 = vmatpush1.bf16.msra.mxu0 %v1829_v49  ;;  %1671 = vmatpush3.bf16.msra.mxu1 %v1830_v47 }
 0x641   :  { %1160 = vmatprep.subr.bf16.mxu0 %v1831_v50  ;;  %1672 = vmatprep.subr.bf16.mxu1 %v1923_v5 }
 0x644   :  { %1161 = vmatpush1.bf16.msra.mxu0 %v1832_v51  ;;  %1673 = vmatpush3.bf16.msra.mxu1 %v1833_v52 }
 0x645   :  { %1162 = vmatprep.subr.bf16.mxu0 %v1834_v8  ;;  %1674 = vmatprep.subr.bf16.mxu1 %v1923_v5 }
 0x648   :  { %1163 = vmatpush1.bf16.msra.mxu0 %v1835_v3  ;;  %1675 = vmatpush3.bf16.msra.mxu1 %v2064_v34  ;;  %v1841_v34 = vld [vmem:[#allocation5 + $0x90] ss:$12 sps:$4 sm:$0xff]  }
 0x649   :  { %1164 = vmatprep.subr.bf16.mxu0 %v1836_v53  ;;  %1676 = vmatprep.subr.bf16.mxu1 %v1923_v5  ;;  %v1150_v3 = vld [vmem:[#allocation2 + $0x20] sm:$0xc0]  ;;  %v1151_v53 = vld [vmem:[#allocation2 + $0x28] sm:$0xc0] }
 0x64c   :  { %1165 = vmatpush1.bf16.msra.mxu0 %v1837_v54  ;;  %1677 = vmatpush3.bf16.msra.mxu1 %v2072_v38 }
 0x64d   :  { %1166 = vmatprep.subr.bf16.mxu0 %v1838_v55  ;;  %1678 = vmatprep.subr.bf16.mxu1 %v1923_v5 }
 0x650   :  { %1167 = vmatpush1.bf16.msra.mxu0 %v1839_v56  ;;  %1679 = vmatpush3.bf16.msra.mxu1 %v2077_v39 }
 0x651   :  { %1168 = vmatprep.subr.bf16.mxu0 %v1840_v57  ;;  %1680 = vmatprep.subr.bf16.mxu1 %v1923_v5 }
 0x654   :  { %1169 = vmatpush1.bf16.msra.mxu0 %v1841_v34  ;;  %1681 = vmatpush3.bf16.msra.mxu1 %v2084_v40 }
 0x655   :  { %1170 = vmatprep.subr.bf16.mxu0 %v1842_v58  ;;  %1682 = vmatprep.subr.bf16.mxu1 %v1923_v5 }
 0x658   :  { %1171 = vmatpush1.bf16.msra.mxu0 %v2066_v35  ;;  %1683 = vmatpush3.bf16.msra.mxu1 %v2090_v41  ;;  %v1034_v35 = vld [vmem:[#allocation2 + $0x20] sm:$0x30] }
 0x659   :  { %1688 = vmatprep.subr.bf16.mxu0 %v1923_v5 }
 0x70e   :  { %v1074_v38 = vpop.f32.mrb[24].mxu0  ;;  %v1115_v39 = vpop.f32.mrb[32].mxu1 }
 0x70f   :  { %v1124_v59 = vrot.slane %v1074_v38, 4  ;;  %v1076_v60 = vpop.f32.mrb[25].mxu0  ;;  %v1666_v61 = vpop.f32.mrb[33].mxu1  ;;  %v1126_v18 = vrot.slane %v1115_v39, 4 }
 0x710   :  { %v1078_v63 = vpop.f32.mrb[26].mxu0  ;;  %v1118_v0 = vpop.f32.mrb[34].mxu1  ;;  %v1125_v14 = vrot.slane %v1076_v60, 4 }
 0x711   :  { %v1130_v1 = vadd.f32 %v1124_v59, %v1033_v62  ;;  %v1079_v40 = vpop.f32.mrb[27].mxu0  ;;  %v1667_v2 = vpop.f32.mrb[35].mxu1  ;;  %v1132_v22 = vadd.f32 %v1126_v18, %v1035_v20 }
 0x712   :  { %v1131_v41 = vadd.f32 %v1125_v14, %v1034_v35  ;;  %v1430_v2 = vld [vmem:[%s2378_s5] ss:$0 sm:$0xff] }
 0x713   :  { %v1133_v13 = vmul.f32 0.5, %v1130_v1  ;;  %v1138_v23 = vmul.f32 0.5, %v1132_v22 }
 0x715   :  { %1809 = vtanh.f32 %v1133_v13 }
 0x716   :  { %1811 = vtanh.f32 %v1131_v41 }
 0x717   :  { %1813 = vtanh.f32 %v1138_v23 }
 0x71f   :  { %v1810_v24 = vpop.eup %1809 }
 0x720   :  { %v1135_v25 = vadd.f32 1.0, %v1810_v24  ;;  %v1812_v29 = vpop.eup %1811 }
 0x721   :  { %v1814_v31 = vpop.eup %1813 }
 0x722   :  { %v1136_v26 = vmul.f32 0.5, %v1135_v25  ;;  %v1140_v32 = vadd.f32 1.0, %v1814_v31 }
 0x724   :  { %v1145_v28 = vmul.f32 %v1143_v27, %v1136_v26  ;;  %v1141_v33 = vmul.f32 0.5, %v1140_v32 }
 0x726   :  { %v1146_v30 = vadd.f32 %v1812_v29, %v1145_v28 }
 0x728   :  { %1815 = vtanh.f32 %v1146_v30  ;;  %v1259_v58 = vrot.slane %v1146_v30, 6 }
 0x732   :  { %v1816_v4 = vpop.eup %1815 }
 0x733   :  { %v1148_v6 = vmul.f32 %v1816_v4, %v1141_v33 }
 0x735   :  { %v1152_v7 = vpack.c.bf16 %v1148_v6, %v1148_v6 }
 0x737   :  { %v1154_v10 = vrot.slane %v1152_v7, 2 }
 0x739   :  { %1189 = vmatmul.mubr.bf16.vlgmr.msra.gmra.mrb[28].mxu0 %v1154_v10  ;;  %1685 = vmatmul.mubr.bf16.vlgmr.msra.gmra.mrb[36].mxu1 %v1154_v10 }
 0x73a   :  { %1704 = vmatprep.mubr.msk.bf16.mxu0 %vm1924_vm2, %v1923_v5  ;;  %1689 = vmatpush3.bf16.msra.mxu0 %v1753_v11 }
 0x73b   :  { %1690 = vmatprep.subr.bf16.mxu0 %v1923_v5 }
 0x73e   :  { %1691 = vmatpush3.bf16.msra.mxu0 %v1754_v12 }
 0x73f   :  { %1692 = vmatprep.subr.bf16.mxu0 %v1923_v5 }
 0x742   :  { %1693 = vmatpush3.bf16.msra.mxu0 %v1755_v15 }
 0x743   :  { %1694 = vmatprep.subr.bf16.mxu0 %v1923_v5 }
 0x746   :  { %1695 = vmatpush3.bf16.msra.mxu0 %v1756_v17 }
 0x747   :  { %1696 = vmatprep.subr.bf16.mxu0 %v1923_v5 }
 0x74a   :  { %1697 = vmatpush3.bf16.msra.mxu0 %v1757_v19 }
 0x74b   :  { %1698 = vmatprep.subr.bf16.mxu0 %v1923_v5 }
 0x74e   :  { %1699 = vmatpush3.bf16.msra.mxu0 %v1758_v21 }
 0x74f   :  { %1700 = vmatprep.subr.bf16.mxu0 %v1923_v5 }
 0x752   :  { %1701 = vmatpush3.bf16.msra.mxu0 %v1759_v9 }
 0x753   :  { %1702 = vmatprep.subr.bf16.mxu0 %v1923_v5 }
 0x756   :  { %1703 = vmatpush3.bf16.msra.mxu0 %v1760_v16 }
 0x80c   :  { %v1190_v36 = vpop.f32.mrb[28].mxu0  ;;  %v1231_v42 = vpop.f32.mrb[36].mxu1 }
 0x80d   :  { %v1240_v43 = vrot.slane %v1190_v36, 2  ;;  %v1192_v44 = vpop.f32.mrb[29].mxu0  ;;  %v1686_v37 = vpop.f32.mrb[37].mxu1  ;;  %v1242_v8 = vrot.slane %v1231_v42, 2 }
 0x80e   :  { %v1194_v46 = vpop.f32.mrb[30].mxu0  ;;  %v1234_v48 = vpop.f32.mrb[38].mxu1  ;;  %v1241_v52 = vrot.slane %v1192_v44, 2 }
 0x80f   :  { %v1246_v49 = vadd.f32 %v1240_v43, %v1149_v45  ;;  %v1195_v47 = vpop.f32.mrb[31].mxu0  ;;  %v1687_v50 = vpop.f32.mrb[39].mxu1  ;;  %v1248_v5 = vadd.f32 %v1242_v8, %v1151_v53 }
 0x810   :  { %v1247_v54 = vadd.f32 %v1241_v52, %v1150_v3 }
 0x811   :  { %v1249_v51 = vmul.f32 0.5, %v1246_v49  ;;  %v1254_v55 = vmul.f32 0.5, %v1248_v5 }
 0x813   :  { %1817 = vtanh.f32 %v1249_v51 }
 0x814   :  { %1819 = vtanh.f32 %v1247_v54 }
 0x815   :  { %1821 = vtanh.f32 %v1254_v55 }
 0x81d   :  { %v1818_v56 = vpop.eup %1817 }
 0x81e   :  { %v1251_v57 = vadd.f32 1.0, %v1818_v56  ;;  %v1820_v39 = vpop.eup %1819 }
 0x81f   :  { %v1822_v60 = vpop.eup %1821 }
 0x820   :  { %v1252_v34 = vmul.f32 0.5, %v1251_v57  ;;  %v1256_v61 = vadd.f32 1.0, %v1822_v60 }
 0x822   :  { %v1261_v38 = vmul.f32 %v1259_v58, %v1252_v34  ;;  %v1257_v62 = vmul.f32 0.5, %v1256_v61 }
 0x824   :  { %v1262_v59 = vadd.f32 %v1820_v39, %v1261_v38 }
 0x826   :  { %1823 = vtanh.f32 %v1262_v59  ;;  %1266 = vst [vmem:[#allocation4 - $0x6] sm:$0xc0] %v1262_v59 }
 0x830   :  { %v1824_v63 = vpop.eup %1823 }
 0x831   :  { %v1264_v0 = vmul.f32 %v1824_v63, %v1257_v62 }
 0x833   :  { %1265 = vst [vmem:[#allocation3 - $0x6] sm:$0xc0] %v1264_v0  ;;  %v1270_v1 = vpack.c.bf16 %v1264_v0, %v1264_v0 }
 0x835   :  { %v1295_v40 = vrot.slane %v1270_v1, 3 }
 0x837   :  { %1705 = vmatmul.mubr.bf16.vlgmr.msra.gmra.mrb[32].mxu0 %v1295_v40 }
 0x90a   :  { %v1379_v13 = vpop.f32.mrb[32].mxu0 }
 0x90b   :  { %v1380_v14 = vadd.f32 %v1430_v2, %v1379_v13  ;;  %v1706_v18 = vpop.f32.mrb[33].mxu0 }
 0x90c   :  { %v1382_v35 = vpop.f32.mrb[34].mxu0 }
 0x90d   :  { %1385 = vst [vmem:[#allocation10] sm:$0x3] %v1380_v14  ;;  %v1707_v20 = vpop.f32.mrb[35].mxu0 }
 0x90e   :  { %1898 = shalt.err (!%p1895_p6)
}
 0x90f   :  { %s1899_s5 = scalar_lea.hbm %s2379_s6, 32 }
 0x910   :  { %p1900_p7 = scmp.ne.s32.totalorder %s2379_s6, %s1899_s5  ;;  %p1903_p8 = scmp.lt.u32.totalorder %s1899_s5, %s2379_s6 }
 0x912   :  { %p1905_p9 = pnand %p1903_p8, %p1900_p7 }
 0x914   :  { %1908 = shalt.err (!%p1905_p9)
}
 0x915   :  { %1395 = dma.vmem_to_hbm [thread:$0]  %s1393_s29, 32, %s2379_s6, [#allocation7]  }
 0x916   :  { %1913 = dma.done.wait [#allocation7], 32  }
 0x917   :  { %1914 = vsyncadd [#allocation7], 4294967264 }
 0x918   :  { %1399 = vsyncpa [#allocation6], 1 }
 0x919   :  { %1400 = vsyncpa [#allocation9], 1 }
 0x91a   :  { %1401 = vsyncpa [#allocation7], 1 }

</bundles_post_ra>
